<compile_context>
chip_gen: v6e
topology: v6e:2x2x1
jax: 0.10.0
libtpu: 0.0.40
codegen_flags: <defaults>
</compile_context>

<pallas_src>
import jax
import jax.numpy as jnp
from jax import lax
from jax.experimental import pallas as pl
from jax.experimental.pallas import tpu as pltpu


# ----------------------------------------------------------------------------
# Fused Pallas kernel: embedding output -> 3 BiLSTM layers -> mean over time
# ----------------------------------------------------------------------------
def _make_fused_encoder_kernel(n_layers, T, B, E, H):
    """Build the fused kernel.

    Kernel refs (in order):
      x_ref                      (T*B, E)   f32   time-major flattened embeddings
      per layer l (4 refs each):
        w_ih_cat                 (D_in, 8H) bf16  [fwd 4H | bwd 4H], D_in = E or 2H
        w_hh_fwd                 (H, 4H)    bf16
        w_hh_bwd                 (H, 4H)    bf16
        bias_cat                 (1, 8H)    f32   (b_ih + b_hh, fwd|bwd)
      out_ref                    (B, 2H)    f32   mean over time of last layer
      scratch:
        act_a, act_b             (T*B, 2H)  f32   inter-layer activations (ping-pong)
        pre_ref                  (T*B, 8H)  f32   hoisted gate pre-activations
    """
    H4 = 4 * H
    H8 = 8 * H
    NW = 4  # weight refs per layer

    def kernel(*refs):
        x_in_ref = refs[0]
        w_refs = refs[1:1 + n_layers * NW]
        out_ref = refs[1 + n_layers * NW]
        act_a, act_b, pre_ref = refs[2 + n_layers * NW:]

        inv_T = jnp.float32(1.0 / T)

        def run_layer(layer, src_ref, dst_ref, is_last):
            base = layer * NW
            w_ih = w_refs[base + 0][...]      # (D_in, 8H) bf16
            w_hh_f = w_refs[base + 1][...]    # (H, 4H)    bf16  (hoisted out of loop)
            w_hh_b = w_refs[base + 2][...]    # (H, 4H)    bf16
            bias = w_refs[base + 3][...]      # (1, 8H)    f32

            # -- Hoisted input projection for the whole sequence, both directions:
            #    one (T*B, D_in) @ (D_in, 8H) MXU matmul, bias folded in.
            x = src_ref[...].astype(jnp.bfloat16)
            pre_ref[...] = (
                jnp.dot(x, w_ih, preferred_element_type=jnp.float32) + bias
            )

            zeros = jnp.zeros((B, H), jnp.float32)
            init = (zeros, zeros, zeros, zeros, zeros, zeros)

            def step(t, carry):
                h_f, c_f, h_b, c_b, acc_f, acc_b = carry
                s = T - 1 - t  # backward direction processes time T-1..0

                # Only the recurrent term remains on the serial path.
                g_f = pre_ref[pl.ds(t * B, B), 0:H4] + jnp.dot(
                    h_f.astype(jnp.bfloat16), w_hh_f,
                    preferred_element_type=jnp.float32)
                g_b = pre_ref[pl.ds(s * B, B), H4:H8] + jnp.dot(
                    h_b.astype(jnp.bfloat16), w_hh_b,
                    preferred_element_type=jnp.float32)

                def lstm_cell(g, c):
                    i = jax.nn.sigmoid(g[:, 0 * H:1 * H])
                    f = jax.nn.sigmoid(g[:, 1 * H:2 * H])
                    gg = jnp.tanh(g[:, 2 * H:3 * H])
                    o = jax.nn.sigmoid(g[:, 3 * H:4 * H])
                    c_new = f * c + i * gg
                    h_new = o * jnp.tanh(c_new)
                    return h_new, c_new

                h_f, c_f = lstm_cell(g_f, c_f)   # two independent dependency
                h_b, c_b = lstm_cell(g_b, c_b)   # chains interleave per iteration

                if is_last:
                    # Fused mean-over-time: accumulate, never write (T,B,2H) out.
                    acc_f = acc_f + h_f
                    acc_b = acc_b + h_b
                else:
                    dst_ref[pl.ds(t * B, B), 0:H] = h_f          # time-aligned
                    dst_ref[pl.ds(s * B, B), H:2 * H] = h_b      # re-aligned bwd
                return (h_f, c_f, h_b, c_b, acc_f, acc_b)

            carry = lax.fori_loop(0, T, step, init, unroll=True)

            if is_last:
                _, _, _, _, acc_f, acc_b = carry
                out_ref[...] = (
                    jnp.concatenate([acc_f, acc_b], axis=-1) * inv_T
                ).astype(out_ref.dtype)

        bufs = (act_a, act_b)
        run_layer(0, x_in_ref, bufs[0], is_last=(n_layers == 1))
        for l in range(1, n_layers):
            run_layer(l, bufs[(l - 1) % 2], bufs[l % 2],
                      is_last=(l == n_layers - 1))

    return kernel


# ----------------------------------------------------------------------------
# Wrapper
# ----------------------------------------------------------------------------
def sentence_encoder_forward(params, inputs):
    """== SentenceEncoderRNN.forward (eval mode, hidden=None)."""
    # Embedding gather is glue (pure indexing); done in XLA outside the kernel.
    emb = jnp.take(params["embedding"], inputs, axis=0)          # (B, T, E)
    B, T, E = emb.shape
    H = params["hidden_per_dir"]
    layers = params["layers"]
    n_layers = len(layers)

    # time-major, flattened to (T*B, E) so the hoisted projection is one matmul
    x = jnp.transpose(emb, (1, 0, 2)).reshape(T * B, E).astype(jnp.float32)

    flat_w = []
    for lp in layers:
        flat_w.extend(lp)   # (w_ih_cat, w_hh_f, w_hh_b, bias_cat) per layer

    kernel = _make_fused_encoder_kernel(n_layers, T, B, E, H)
    n_in = 1 + len(flat_w)

    # TODO(synk): for multi-chip / v7x megacore, add a batch grid axis marked
    # "parallel" and stream x over T chunks when T*B no longer fits VMEM.
    return pl.pallas_call(
        kernel,
        out_shape=jax.ShapeDtypeStruct((B, 2 * H), jnp.float32),
        in_specs=[pl.BlockSpec(memory_space=pltpu.MemorySpace.VMEM)] * n_in,
        out_specs=pl.BlockSpec(memory_space=pltpu.MemorySpace.VMEM),
        scratch_shapes=[
            pltpu.VMEM((T * B, 2 * H), jnp.float32),   # inter-layer act (ping)
            pltpu.VMEM((T * B, 2 * H), jnp.float32),   # inter-layer act (pong)
            pltpu.VMEM((T * B, 8 * H), jnp.float32),   # hoisted gate pre-activations
        ],
        compiler_params=pltpu.CompilerParams(vmem_limit_bytes=32 * 1024 * 1024),
    )(x, *flat_w)


# ----------------------------------------------------------------------------
# Parameter construction (mirrors nn.Embedding + nn.LSTM shapes, pre-packed)
# ----------------------------------------------------------------------------
def init_params(key, vocab_size, embedding_dim, hidden_size, n_layers=3,
                bidirectional=True):
    assert bidirectional, "kernel implements the bidirectional default"
    num_dir = 2
    assert hidden_size % num_dir == 0
    H = hidden_size // num_dir

    keys = jax.random.split(key, 1 + n_layers * num_dir * 4)
    kidx = 0

    def nxt():
        nonlocal kidx
        k = keys[kidx]
        kidx += 1
        return k

    params = {
        "embedding": jax.random.normal(nxt(), (vocab_size, embedding_dim),
                                       jnp.float32) * 0.1,
        "layers": [],
        "hidden_per_dir": H,
    }
    scale = 1.0 / float(jnp.sqrt(H))
    for layer in range(n_layers):
        d_in = embedding_dim if layer == 0 else num_dir * H
        dirs = []
        for _ in range(num_dir):   # fwd, bwd
            w_ih = jax.random.uniform(nxt(), (4 * H, d_in), jnp.float32,
                                      -scale, scale)
            w_hh = jax.random.uniform(nxt(), (4 * H, H), jnp.float32,
                                      -scale, scale)
            b_ih = jax.random.uniform(nxt(), (4 * H,), jnp.float32,
                                      -scale, scale)
            b_hh = jax.random.uniform(nxt(), (4 * H,), jnp.float32,
                                      -scale, scale)
            dirs.append((w_ih, w_hh, b_ih, b_hh))
        (wif, whf, bif, bhf), (wib, whb, bib, bhb) = dirs
        # Pre-transpose + pack: input weights of both directions concatenated on
        # the gate axis (8H = 128 lanes when H=16); biases combined and folded.
        w_ih_cat = jnp.concatenate([wif.T, wib.T], axis=1).astype(jnp.bfloat16)
        w_hh_f = whf.T.astype(jnp.bfloat16)
        w_hh_b = whb.T.astype(jnp.bfloat16)
        bias_cat = jnp.concatenate([bif + bhf, bib + bhb])[None, :].astype(
            jnp.float32)
        params["layers"].append((w_ih_cat, w_hh_f, w_hh_b, bias_cat))
    return params


# ----------------------------------------------------------------------------
# Pure-JAX reference (same packed/bf16 weights) for a sanity check
# ----------------------------------------------------------------------------
def _reference_forward(params, inputs):
    emb = jnp.take(params["embedding"], inputs, axis=0).astype(jnp.float32)
    x = jnp.transpose(emb, (1, 0, 2))                      # (T, B, E)
    H = params["hidden_per_dir"]
    B = x.shape[1]

    def run_dir(x_seq, w_i, w_h, b):
        def step(carry, x_t):
            h, c = carry
            g = x_t @ w_i + h @ w_h + b
            i = jax.nn.sigmoid(g[:, 0 * H:1 * H])
            f = jax.nn.sigmoid(g[:, 1 * H:2 * H])
            gg = jnp.tanh(g[:, 2 * H:3 * H])
            o = jax.nn.sigmoid(g[:, 3 * H:4 * H])
            c = f * c + i * gg
            h = o * jnp.tanh(c)
            return (h, c), h
        init = (jnp.zeros((B, H), jnp.float32), jnp.zeros((B, H), jnp.float32))
        _, hs = lax.scan(step, init, x_seq)
        return hs

    for (w_ih_cat, w_hh_f, w_hh_b, bias_cat) in params["layers"]:
        w_ih = w_ih_cat.astype(jnp.float32)
        wf, wb = w_ih[:, :4 * H], w_ih[:, 4 * H:]
        bf, bb = bias_cat[0, :4 * H], bias_cat[0, 4 * H:]
        fwd = run_dir(x, wf, w_hh_f.astype(jnp.float32), bf)
        bwd = run_dir(x[::-1], wb, w_hh_b.astype(jnp.float32), bb)[::-1]
        x = jnp.concatenate([fwd, bwd], axis=-1)
    return jnp.mean(x, axis=0)                             # (B, 2H)


# ----------------------------------------------------------------------------
if __name__ == "__main__":
    VOCAB = 50
    EMB_DIM = 16
    HIDDEN = 32      # total output width (16 per direction)
    N_LAYERS = 3
    B, T = 2, 8

    key = jax.random.PRNGKey(0)
    pkey, ikey = jax.random.split(key)
    params = init_params(pkey, VOCAB, EMB_DIM, HIDDEN, N_LAYERS,
                         bidirectional=True)
    inputs = jax.random.randint(ikey, (B, T), 0, VOCAB, dtype=jnp.int32)

    out = sentence_encoder_forward(params, inputs)
    out = jax.block_until_ready(out)
    assert out.shape == (B, HIDDEN), out.shape

    ref = jax.block_until_ready(_reference_forward(params, inputs))
    # kernel uses bf16 matmul inputs (f32 accumulate); allow small drift
    assert jnp.max(jnp.abs(out - ref)) < 5e-2, jnp.max(jnp.abs(out - ref))

    print("KERNEL_OK")
</pallas_src>

<mosaic_0001>
module attributes {stable_mosaic.version = 11 : i64} {
  func.func @kernel(%arg0: memref<16x16xf32, #tpu.memory_space<vmem>>, %arg1: memref<16x128xbf16, #tpu.memory_space<vmem>>, %arg2: memref<16x64xbf16, #tpu.memory_space<vmem>>, %arg3: memref<16x64xbf16, #tpu.memory_space<vmem>>, %arg4: memref<1x128xf32, #tpu.memory_space<vmem>>, %arg5: memref<32x128xbf16, #tpu.memory_space<vmem>>, %arg6: memref<16x64xbf16, #tpu.memory_space<vmem>>, %arg7: memref<16x64xbf16, #tpu.memory_space<vmem>>, %arg8: memref<1x128xf32, #tpu.memory_space<vmem>>, %arg9: memref<32x128xbf16, #tpu.memory_space<vmem>>, %arg10: memref<16x64xbf16, #tpu.memory_space<vmem>>, %arg11: memref<16x64xbf16, #tpu.memory_space<vmem>>, %arg12: memref<1x128xf32, #tpu.memory_space<vmem>>, %arg13: memref<2x32xf32, #tpu.memory_space<vmem>>, %arg14: memref<16x32xf32, #tpu.memory_space<vmem>>, %arg15: memref<16x32xf32, #tpu.memory_space<vmem>>, %arg16: memref<16x128xf32, #tpu.memory_space<vmem>>) attributes {dimension_semantics = [], scalar_prefetch = 0 : i64, scratch_operands = 3 : i64, tpu.core_type = #tpu.core_type<tc>} {
    %c0 = arith.constant 0 : index
    %c0_0 = arith.constant 0 : index
    %0 = vector.load %arg1[%c0, %c0_0] : memref<16x128xbf16, #tpu.memory_space<vmem>>, vector<16x128xbf16>
    %c0_1 = arith.constant 0 : index
    %c0_2 = arith.constant 0 : index
    %1 = vector.load %arg2[%c0_1, %c0_2] : memref<16x64xbf16, #tpu.memory_space<vmem>>, vector<16x64xbf16>
    %c0_3 = arith.constant 0 : index
    %c0_4 = arith.constant 0 : index
    %2 = vector.load %arg3[%c0_3, %c0_4] : memref<16x64xbf16, #tpu.memory_space<vmem>>, vector<16x64xbf16>
    %c0_5 = arith.constant 0 : index
    %c0_6 = arith.constant 0 : index
    %3 = vector.load %arg4[%c0_5, %c0_6] : memref<1x128xf32, #tpu.memory_space<vmem>>, vector<1x128xf32>
    %c0_7 = arith.constant 0 : index
    %c0_8 = arith.constant 0 : index
    %4 = vector.load %arg0[%c0_7, %c0_8] : memref<16x16xf32, #tpu.memory_space<vmem>>, vector<16x16xf32>
    %5 = arith.truncf %4 : vector<16x16xf32> to vector<16x16xbf16>
    %cst = arith.constant dense<0.000000e+00> : vector<16x128xf32>
    %6 = tpu.matmul %5, %0, %cst {dimension_numbers = #tpu.dot_dimension_numbers<[1], [0], [0], [1], [0, 0, 1, 1], [], []>} : vector<16x16xbf16>, vector<16x128xbf16>, vector<16x128xf32> -> vector<16x128xf32>
    %7 = vector.broadcast %3 : vector<1x128xf32> to vector<16x128xf32>
    %8 = arith.addf %6, %7 : vector<16x128xf32>
    %c0_9 = arith.constant 0 : index
    %c0_10 = arith.constant 0 : index
    %9 = vector.load %arg16[%c0_9, %c0_10] : memref<16x128xf32, #tpu.memory_space<vmem>>, vector<16x128xf32>
    tpu.vector_store %arg16[%c0_9, %c0_10], %8 {strides = array<i32>} : memref<16x128xf32, #tpu.memory_space<vmem>>, vector<16x128xf32>,
    %cst_11 = arith.constant 0.000000e+00 : f32
    %10 = vector.broadcast %cst_11 : f32 to vector<2x16xf32>
    %c0_i32 = arith.constant 0 : i32
    %c7_i32 = arith.constant 7 : i32
    %11 = arith.subi %c7_i32, %c0_i32 : i32
    %c2_i32 = arith.constant 2 : i32
    %12 = arith.muli %c0_i32, %c2_i32 : i32
    %13 = arith.index_cast %12 : i32 to index
    %c0_12 = arith.constant 0 : index
    %14 = vector.load %arg16[%13, %c0_12] : memref<16x128xf32, #tpu.memory_space<vmem>>, vector<2x64xf32>
    %15 = arith.truncf %10 : vector<2x16xf32> to vector<2x16xbf16>
    %cst_13 = arith.constant dense<0.000000e+00> : vector<2x64xf32>
    %16 = tpu.matmul %15, %1, %cst_13 {dimension_numbers = #tpu.dot_dimension_numbers<[1], [0], [0], [1], [0, 0, 1, 1], [], []>} : vector<2x16xbf16>, vector<16x64xbf16>, vector<2x64xf32> -> vector<2x64xf32>
    %17 = arith.addf %14, %16 : vector<2x64xf32>
    %c2_i32_14 = arith.constant 2 : i32
    %18 = arith.muli %11, %c2_i32_14 : i32
    %19 = arith.index_cast %18 : i32 to index
    %c64 = arith.constant 64 : index
    %20 = vector.load %arg16[%19, %c64] : memref<16x128xf32, #tpu.memory_space<vmem>>, vector<2x64xf32>
    %21 = arith.truncf %10 : vector<2x16xf32> to vector<2x16xbf16>
    %cst_15 = arith.constant dense<0.000000e+00> : vector<2x64xf32>
    %22 = tpu.matmul %21, %2, %cst_15 {dimension_numbers = #tpu.dot_dimension_numbers<[1], [0], [0], [1], [0, 0, 1, 1], [], []>} : vector<2x16xbf16>, vector<16x64xbf16>, vector<2x64xf32> -> vector<2x64xf32>
    %23 = arith.addf %20, %22 : vector<2x64xf32>
    %24 = vector.extract_strided_slice %17 {offsets = [0, 0], sizes = [2, 16], strides = [1, 1]} : vector<2x64xf32> to vector<2x16xf32>
    %25 = arith.negf %24 : vector<2x16xf32>
    %26 = math.exp %25 : vector<2x16xf32>
    %cst_16 = arith.constant 1.000000e+00 : f32
    %27 = vector.broadcast %cst_16 : f32 to vector<2x16xf32>
    %28 = arith.addf %27, %26 : vector<2x16xf32>
    %29 = arith.divf %27, %28 : vector<2x16xf32>
    %30 = vector.extract_strided_slice %17 {offsets = [0, 16], sizes = [2, 16], strides = [1, 1]} : vector<2x64xf32> to vector<2x16xf32>
    %31 = arith.negf %30 : vector<2x16xf32>
    %32 = math.exp %31 : vector<2x16xf32>
    %cst_17 = arith.constant 1.000000e+00 : f32
    %33 = vector.broadcast %cst_17 : f32 to vector<2x16xf32>
    %34 = arith.addf %33, %32 : vector<2x16xf32>
    %35 = arith.divf %33, %34 : vector<2x16xf32>
    %36 = vector.extract_strided_slice %17 {offsets = [0, 32], sizes = [2, 16], strides = [1, 1]} : vector<2x64xf32> to vector<2x16xf32>
    %37 = math.tanh %36 : vector<2x16xf32>
    %38 = vector.extract_strided_slice %17 {offsets = [0, 48], sizes = [2, 16], strides = [1, 1]} : vector<2x64xf32> to vector<2x16xf32>
    %39 = arith.negf %38 : vector<2x16xf32>
    %40 = math.exp %39 : vector<2x16xf32>
    %cst_18 = arith.constant 1.000000e+00 : f32
    %41 = vector.broadcast %cst_18 : f32 to vector<2x16xf32>
    %42 = arith.addf %41, %40 : vector<2x16xf32>
    %43 = arith.divf %41, %42 : vector<2x16xf32>
    %44 = arith.mulf %35, %10 : vector<2x16xf32>
    %45 = arith.mulf %29, %37 : vector<2x16xf32>
    %46 = arith.addf %44, %45 : vector<2x16xf32>
    %47 = math.tanh %46 : vector<2x16xf32>
    %48 = arith.mulf %43, %47 : vector<2x16xf32>
    %49 = vector.extract_strided_slice %23 {offsets = [0, 0], sizes = [2, 16], strides = [1, 1]} : vector<2x64xf32> to vector<2x16xf32>
    %50 = arith.negf %49 : vector<2x16xf32>
    %51 = math.exp %50 : vector<2x16xf32>
    %cst_19 = arith.constant 1.000000e+00 : f32
    %52 = vector.broadcast %cst_19 : f32 to vector<2x16xf32>
    %53 = arith.addf %52, %51 : vector<2x16xf32>
    %54 = arith.divf %52, %53 : vector<2x16xf32>
    %55 = vector.extract_strided_slice %23 {offsets = [0, 16], sizes = [2, 16], strides = [1, 1]} : vector<2x64xf32> to vector<2x16xf32>
    %56 = arith.negf %55 : vector<2x16xf32>
    %57 = math.exp %56 : vector<2x16xf32>
    %cst_20 = arith.constant 1.000000e+00 : f32
    %58 = vector.broadcast %cst_20 : f32 to vector<2x16xf32>
    %59 = arith.addf %58, %57 : vector<2x16xf32>
    %60 = arith.divf %58, %59 : vector<2x16xf32>
    %61 = vector.extract_strided_slice %23 {offsets = [0, 32], sizes = [2, 16], strides = [1, 1]} : vector<2x64xf32> to vector<2x16xf32>
    %62 = math.tanh %61 : vector<2x16xf32>
    %63 = vector.extract_strided_slice %23 {offsets = [0, 48], sizes = [2, 16], strides = [1, 1]} : vector<2x64xf32> to vector<2x16xf32>
    %64 = arith.negf %63 : vector<2x16xf32>
    %65 = math.exp %64 : vector<2x16xf32>
    %cst_21 = arith.constant 1.000000e+00 : f32
    %66 = vector.broadcast %cst_21 : f32 to vector<2x16xf32>
    %67 = arith.addf %66, %65 : vector<2x16xf32>
    %68 = arith.divf %66, %67 : vector<2x16xf32>
    %69 = arith.mulf %60, %10 : vector<2x16xf32>
    %70 = arith.mulf %54, %62 : vector<2x16xf32>
    %71 = arith.addf %69, %70 : vector<2x16xf32>
    %72 = math.tanh %71 : vector<2x16xf32>
    %73 = arith.mulf %68, %72 : vector<2x16xf32>
    %c2_i32_22 = arith.constant 2 : i32
    %74 = arith.muli %c0_i32, %c2_i32_22 : i32
    %75 = arith.index_cast %74 : i32 to index
    %c0_23 = arith.constant 0 : index
    %76 = vector.load %arg14[%75, %c0_23] : memref<16x32xf32, #tpu.memory_space<vmem>>, vector<2x16xf32>
    tpu.vector_store %arg14[%75, %c0_23], %48 {strides = array<i32>} : memref<16x32xf32, #tpu.memory_space<vmem>>, vector<2x16xf32>,
    %c2_i32_24 = arith.constant 2 : i32
    %77 = arith.muli %11, %c2_i32_24 : i32
    %78 = arith.index_cast %77 : i32 to index
    %c16 = arith.constant 16 : index
    %79 = vector.load %arg14[%78, %c16] : memref<16x32xf32, #tpu.memory_space<vmem>>, vector<2x16xf32>
    tpu.vector_store %arg14[%78, %c16], %73 {strides = array<i32>} : memref<16x32xf32, #tpu.memory_space<vmem>>, vector<2x16xf32>,
    %c1_i32 = arith.constant 1 : i32
    %c7_i32_25 = arith.constant 7 : i32
    %80 = arith.subi %c7_i32_25, %c1_i32 : i32
    %c2_i32_26 = arith.constant 2 : i32
    %81 = arith.muli %c1_i32, %c2_i32_26 : i32
    %82 = arith.index_cast %81 : i32 to index
    %c0_27 = arith.constant 0 : index
    %83 = vector.load %arg16[%82, %c0_27] : memref<16x128xf32, #tpu.memory_space<vmem>>, vector<2x64xf32>
    %84 = arith.truncf %48 : vector<2x16xf32> to vector<2x16xbf16>
    %cst_28 = arith.constant dense<0.000000e+00> : vector<2x64xf32>
    %85 = tpu.matmul %84, %1, %cst_28 {dimension_numbers = #tpu.dot_dimension_numbers<[1], [0], [0], [1], [0, 0, 1, 1], [], []>} : vector<2x16xbf16>, vector<16x64xbf16>, vector<2x64xf32> -> vector<2x64xf32>
    %86 = arith.addf %83, %85 : vector<2x64xf32>
    %c2_i32_29 = arith.constant 2 : i32
    %87 = arith.muli %80, %c2_i32_29 : i32
    %88 = arith.index_cast %87 : i32 to index
    %c64_30 = arith.constant 64 : index
    %89 = vector.load %arg16[%88, %c64_30] : memref<16x128xf32, #tpu.memory_space<vmem>>, vector<2x64xf32>
    %90 = arith.truncf %73 : vector<2x16xf32> to vector<2x16xbf16>
    %cst_31 = arith.constant dense<0.000000e+00> : vector<2x64xf32>
    %91 = tpu.matmul %90, %2, %cst_31 {dimension_numbers = #tpu.dot_dimension_numbers<[1], [0], [0], [1], [0, 0, 1, 1], [], []>} : vector<2x16xbf16>, vector<16x64xbf16>, vector<2x64xf32> -> vector<2x64xf32>
    %92 = arith.addf %89, %91 : vector<2x64xf32>
    %93 = vector.extract_strided_slice %86 {offsets = [0, 0], sizes = [2, 16], strides = [1, 1]} : vector<2x64xf32> to vector<2x16xf32>
    %94 = arith.negf %93 : vector<2x16xf32>
    %95 = math.exp %94 : vector<2x16xf32>
    %cst_32 = arith.constant 1.000000e+00 : f32
    %96 = vector.broadcast %cst_32 : f32 to vector<2x16xf32>
    %97 = arith.addf %96, %95 : vector<2x16xf32>
    %98 = arith.divf %96, %97 : vector<2x16xf32>
    %99 = vector.extract_strided_slice %86 {offsets = [0, 16], sizes = [2, 16], strides = [1, 1]} : vector<2x64xf32> to vector<2x16xf32>
    %100 = arith.negf %99 : vector<2x16xf32>
    %101 = math.exp %100 : vector<2x16xf32>
    %cst_33 = arith.constant 1.000000e+00 : f32
    %102 = vector.broadcast %cst_33 : f32 to vector<2x16xf32>
    %103 = arith.addf %102, %101 : vector<2x16xf32>
    %104 = arith.divf %102, %103 : vector<2x16xf32>
    %105 = vector.extract_strided_slice %86 {offsets = [0, 32], sizes = [2, 16], strides = [1, 1]} : vector<2x64xf32> to vector<2x16xf32>
    %106 = math.tanh %105 : vector<2x16xf32>
    %107 = vector.extract_strided_slice %86 {offsets = [0, 48], sizes = [2, 16], strides = [1, 1]} : vector<2x64xf32> to vector<2x16xf32>
    %108 = arith.negf %107 : vector<2x16xf32>
    %109 = math.exp %108 : vector<2x16xf32>
    %cst_34 = arith.constant 1.000000e+00 : f32
    %110 = vector.broadcast %cst_34 : f32 to vector<2x16xf32>
    %111 = arith.addf %110, %109 : vector<2x16xf32>
    %112 = arith.divf %110, %111 : vector<2x16xf32>
    %113 = arith.mulf %104, %46 : vector<2x16xf32>
    %114 = arith.mulf %98, %106 : vector<2x16xf32>
    %115 = arith.addf %113, %114 : vector<2x16xf32>
    %116 = math.tanh %115 : vector<2x16xf32>
    %117 = arith.mulf %112, %116 : vector<2x16xf32>
    %118 = vector.extract_strided_slice %92 {offsets = [0, 0], sizes = [2, 16], strides = [1, 1]} : vector<2x64xf32> to vector<2x16xf32>
    %119 = arith.negf %118 : vector<2x16xf32>
    %120 = math.exp %119 : vector<2x16xf32>
    %cst_35 = arith.constant 1.000000e+00 : f32
    %121 = vector.broadcast %cst_35 : f32 to vector<2x16xf32>
    %122 = arith.addf %121, %120 : vector<2x16xf32>
    %123 = arith.divf %121, %122 : vector<2x16xf32>
    %124 = vector.extract_strided_slice %92 {offsets = [0, 16], sizes = [2, 16], strides = [1, 1]} : vector<2x64xf32> to vector<2x16xf32>
    %125 = arith.negf %124 : vector<2x16xf32>
    %126 = math.exp %125 : vector<2x16xf32>
    %cst_36 = arith.constant 1.000000e+00 : f32
    %127 = vector.broadcast %cst_36 : f32 to vector<2x16xf32>
    %128 = arith.addf %127, %126 : vector<2x16xf32>
    %129 = arith.divf %127, %128 : vector<2x16xf32>
    %130 = vector.extract_strided_slice %92 {offsets = [0, 32], sizes = [2, 16], strides = [1, 1]} : vector<2x64xf32> to vector<2x16xf32>
    %131 = math.tanh %130 : vector<2x16xf32>
    %132 = vector.extract_strided_slice %92 {offsets = [0, 48], sizes = [2, 16], strides = [1, 1]} : vector<2x64xf32> to vector<2x16xf32>
    %133 = arith.negf %132 : vector<2x16xf32>
    %134 = math.exp %133 : vector<2x16xf32>
    %cst_37 = arith.constant 1.000000e+00 : f32
    %135 = vector.broadcast %cst_37 : f32 to vector<2x16xf32>
    %136 = arith.addf %135, %134 : vector<2x16xf32>
    %137 = arith.divf %135, %136 : vector<2x16xf32>
    %138 = arith.mulf %129, %71 : vector<2x16xf32>
    %139 = arith.mulf %123, %131 : vector<2x16xf32>
    %140 = arith.addf %138, %139 : vector<2x16xf32>
    %141 = math.tanh %140 : vector<2x16xf32>
    %142 = arith.mulf %137, %141 : vector<2x16xf32>
    %c2_i32_38 = arith.constant 2 : i32
    %143 = arith.muli %c1_i32, %c2_i32_38 : i32
    %144 = arith.index_cast %143 : i32 to index
    %c0_39 = arith.constant 0 : index
    %145 = vector.load %arg14[%144, %c0_39] : memref<16x32xf32, #tpu.memory_space<vmem>>, vector<2x16xf32>
    tpu.vector_store %arg14[%144, %c0_39], %117 {strides = array<i32>} : memref<16x32xf32, #tpu.memory_space<vmem>>, vector<2x16xf32>,
    %c2_i32_40 = arith.constant 2 : i32
    %146 = arith.muli %80, %c2_i32_40 : i32
    %147 = arith.index_cast %146 : i32 to index
    %c16_41 = arith.constant 16 : index
    %148 = vector.load %arg14[%147, %c16_41] : memref<16x32xf32, #tpu.memory_space<vmem>>, vector<2x16xf32>
    tpu.vector_store %arg14[%147, %c16_41], %142 {strides = array<i32>} : memref<16x32xf32, #tpu.memory_space<vmem>>, vector<2x16xf32>,
    %c2_i32_42 = arith.constant 2 : i32
    %c7_i32_43 = arith.constant 7 : i32
    %149 = arith.subi %c7_i32_43, %c2_i32_42 : i32
    %c2_i32_44 = arith.constant 2 : i32
    %150 = arith.muli %c2_i32_42, %c2_i32_44 : i32
    %151 = arith.index_cast %150 : i32 to index
    %c0_45 = arith.constant 0 : index
    %152 = vector.load %arg16[%151, %c0_45] : memref<16x128xf32, #tpu.memory_space<vmem>>, vector<2x64xf32>
    %153 = arith.truncf %117 : vector<2x16xf32> to vector<2x16xbf16>
    %cst_46 = arith.constant dense<0.000000e+00> : vector<2x64xf32>
    %154 = tpu.matmul %153, %1, %cst_46 {dimension_numbers = #tpu.dot_dimension_numbers<[1], [0], [0], [1], [0, 0, 1, 1], [], []>} : vector<2x16xbf16>, vector<16x64xbf16>, vector<2x64xf32> -> vector<2x64xf32>
    %155 = arith.addf %152, %154 : vector<2x64xf32>
    %c2_i32_47 = arith.constant 2 : i32
    %156 = arith.muli %149, %c2_i32_47 : i32
    %157 = arith.index_cast %156 : i32 to index
    %c64_48 = arith.constant 64 : index
    %158 = vector.load %arg16[%157, %c64_48] : memref<16x128xf32, #tpu.memory_space<vmem>>, vector<2x64xf32>
    %159 = arith.truncf %142 : vector<2x16xf32> to vector<2x16xbf16>
    %cst_49 = arith.constant dense<0.000000e+00> : vector<2x64xf32>
    %160 = tpu.matmul %159, %2, %cst_49 {dimension_numbers = #tpu.dot_dimension_numbers<[1], [0], [0], [1], [0, 0, 1, 1], [], []>} : vector<2x16xbf16>, vector<16x64xbf16>, vector<2x64xf32> -> vector<2x64xf32>
    %161 = arith.addf %158, %160 : vector<2x64xf32>
    %162 = vector.extract_strided_slice %155 {offsets = [0, 0], sizes = [2, 16], strides = [1, 1]} : vector<2x64xf32> to vector<2x16xf32>
    %163 = arith.negf %162 : vector<2x16xf32>
    %164 = math.exp %163 : vector<2x16xf32>
    %cst_50 = arith.constant 1.000000e+00 : f32
    %165 = vector.broadcast %cst_50 : f32 to vector<2x16xf32>
    %166 = arith.addf %165, %164 : vector<2x16xf32>
    %167 = arith.divf %165, %166 : vector<2x16xf32>
    %168 = vector.extract_strided_slice %155 {offsets = [0, 16], sizes = [2, 16], strides = [1, 1]} : vector<2x64xf32> to vector<2x16xf32>
    %169 = arith.negf %168 : vector<2x16xf32>
    %170 = math.exp %169 : vector<2x16xf32>
    %cst_51 = arith.constant 1.000000e+00 : f32
    %171 = vector.broadcast %cst_51 : f32 to vector<2x16xf32>
    %172 = arith.addf %171, %170 : vector<2x16xf32>
    %173 = arith.divf %171, %172 : vector<2x16xf32>
    %174 = vector.extract_strided_slice %155 {offsets = [0, 32], sizes = [2, 16], strides = [1, 1]} : vector<2x64xf32> to vector<2x16xf32>
    %175 = math.tanh %174 : vector<2x16xf32>
    %176 = vector.extract_strided_slice %155 {offsets = [0, 48], sizes = [2, 16], strides = [1, 1]} : vector<2x64xf32> to vector<2x16xf32>
    %177 = arith.negf %176 : vector<2x16xf32>
    %178 = math.exp %177 : vector<2x16xf32>
    %cst_52 = arith.constant 1.000000e+00 : f32
    %179 = vector.broadcast %cst_52 : f32 to vector<2x16xf32>
    %180 = arith.addf %179, %178 : vector<2x16xf32>
    %181 = arith.divf %179, %180 : vector<2x16xf32>
    %182 = arith.mulf %173, %115 : vector<2x16xf32>
    %183 = arith.mulf %167, %175 : vector<2x16xf32>
    %184 = arith.addf %182, %183 : vector<2x16xf32>
    %185 = math.tanh %184 : vector<2x16xf32>
    %186 = arith.mulf %181, %185 : vector<2x16xf32>
    %187 = vector.extract_strided_slice %161 {offsets = [0, 0], sizes = [2, 16], strides = [1, 1]} : vector<2x64xf32> to vector<2x16xf32>
    %188 = arith.negf %187 : vector<2x16xf32>
    %189 = math.exp %188 : vector<2x16xf32>
    %cst_53 = arith.constant 1.000000e+00 : f32
    %190 = vector.broadcast %cst_53 : f32 to vector<2x16xf32>
    %191 = arith.addf %190, %189 : vector<2x16xf32>
    %192 = arith.divf %190, %191 : vector<2x16xf32>
    %193 = vector.extract_strided_slice %161 {offsets = [0, 16], sizes = [2, 16], strides = [1, 1]} : vector<2x64xf32> to vector<2x16xf32>
    %194 = arith.negf %193 : vector<2x16xf32>
    %195 = math.exp %194 : vector<2x16xf32>
    %cst_54 = arith.constant 1.000000e+00 : f32
    %196 = vector.broadcast %cst_54 : f32 to vector<2x16xf32>
    %197 = arith.addf %196, %195 : vector<2x16xf32>
    %198 = arith.divf %196, %197 : vector<2x16xf32>
    %199 = vector.extract_strided_slice %161 {offsets = [0, 32], sizes = [2, 16], strides = [1, 1]} : vector<2x64xf32> to vector<2x16xf32>
    %200 = math.tanh %199 : vector<2x16xf32>
    %201 = vector.extract_strided_slice %161 {offsets = [0, 48], sizes = [2, 16], strides = [1, 1]} : vector<2x64xf32> to vector<2x16xf32>
    %202 = arith.negf %201 : vector<2x16xf32>
    %203 = math.exp %202 : vector<2x16xf32>
    %cst_55 = arith.constant 1.000000e+00 : f32
    %204 = vector.broadcast %cst_55 : f32 to vector<2x16xf32>
    %205 = arith.addf %204, %203 : vector<2x16xf32>
    %206 = arith.divf %204, %205 : vector<2x16xf32>
    %207 = arith.mulf %198, %140 : vector<2x16xf32>
    %208 = arith.mulf %192, %200 : vector<2x16xf32>
    %209 = arith.addf %207, %208 : vector<2x16xf32>
    %210 = math.tanh %209 : vector<2x16xf32>
    %211 = arith.mulf %206, %210 : vector<2x16xf32>
    %c2_i32_56 = arith.constant 2 : i32
    %212 = arith.muli %c2_i32_42, %c2_i32_56 : i32
    %213 = arith.index_cast %212 : i32 to index
    %c0_57 = arith.constant 0 : index
    %214 = vector.load %arg14[%213, %c0_57] : memref<16x32xf32, #tpu.memory_space<vmem>>, vector<2x16xf32>
    tpu.vector_store %arg14[%213, %c0_57], %186 {strides = array<i32>} : memref<16x32xf32, #tpu.memory_space<vmem>>, vector<2x16xf32>,
    %c2_i32_58 = arith.constant 2 : i32
    %215 = arith.muli %149, %c2_i32_58 : i32
    %216 = arith.index_cast %215 : i32 to index
    %c16_59 = arith.constant 16 : index
    %217 = vector.load %arg14[%216, %c16_59] : memref<16x32xf32, #tpu.memory_space<vmem>>, vector<2x16xf32>
    tpu.vector_store %arg14[%216, %c16_59], %211 {strides = array<i32>} : memref<16x32xf32, #tpu.memory_space<vmem>>, vector<2x16xf32>,
    %c3_i32 = arith.constant 3 : i32
    %c7_i32_60 = arith.constant 7 : i32
    %218 = arith.subi %c7_i32_60, %c3_i32 : i32
    %c2_i32_61 = arith.constant 2 : i32
    %219 = arith.muli %c3_i32, %c2_i32_61 : i32
    %220 = arith.index_cast %219 : i32 to index
    %c0_62 = arith.constant 0 : index
    %221 = vector.load %arg16[%220, %c0_62] : memref<16x128xf32, #tpu.memory_space<vmem>>, vector<2x64xf32>
    %222 = arith.truncf %186 : vector<2x16xf32> to vector<2x16xbf16>
    %cst_63 = arith.constant dense<0.000000e+00> : vector<2x64xf32>
    %223 = tpu.matmul %222, %1, %cst_63 {dimension_numbers = #tpu.dot_dimension_numbers<[1], [0], [0], [1], [0, 0, 1, 1], [], []>} : vector<2x16xbf16>, vector<16x64xbf16>, vector<2x64xf32> -> vector<2x64xf32>
    %224 = arith.addf %221, %223 : vector<2x64xf32>
    %c2_i32_64 = arith.constant 2 : i32
    %225 = arith.muli %218, %c2_i32_64 : i32
    %226 = arith.index_cast %225 : i32 to index
    %c64_65 = arith.constant 64 : index
    %227 = vector.load %arg16[%226, %c64_65] : memref<16x128xf32, #tpu.memory_space<vmem>>, vector<2x64xf32>
    %228 = arith.truncf %211 : vector<2x16xf32> to vector<2x16xbf16>
    %cst_66 = arith.constant dense<0.000000e+00> : vector<2x64xf32>
    %229 = tpu.matmul %228, %2, %cst_66 {dimension_numbers = #tpu.dot_dimension_numbers<[1], [0], [0], [1], [0, 0, 1, 1], [], []>} : vector<2x16xbf16>, vector<16x64xbf16>, vector<2x64xf32> -> vector<2x64xf32>
    %230 = arith.addf %227, %229 : vector<2x64xf32>
    %231 = vector.extract_strided_slice %224 {offsets = [0, 0], sizes = [2, 16], strides = [1, 1]} : vector<2x64xf32> to vector<2x16xf32>
    %232 = arith.negf %231 : vector<2x16xf32>
    %233 = math.exp %232 : vector<2x16xf32>
    %cst_67 = arith.constant 1.000000e+00 : f32
    %234 = vector.broadcast %cst_67 : f32 to vector<2x16xf32>
    %235 = arith.addf %234, %233 : vector<2x16xf32>
    %236 = arith.divf %234, %235 : vector<2x16xf32>
    %237 = vector.extract_strided_slice %224 {offsets = [0, 16], sizes = [2, 16], strides = [1, 1]} : vector<2x64xf32> to vector<2x16xf32>
    %238 = arith.negf %237 : vector<2x16xf32>
    %239 = math.exp %238 : vector<2x16xf32>
    %cst_68 = arith.constant 1.000000e+00 : f32
    %240 = vector.broadcast %cst_68 : f32 to vector<2x16xf32>
    %241 = arith.addf %240, %239 : vector<2x16xf32>
    %242 = arith.divf %240, %241 : vector<2x16xf32>
    %243 = vector.extract_strided_slice %224 {offsets = [0, 32], sizes = [2, 16], strides = [1, 1]} : vector<2x64xf32> to vector<2x16xf32>
    %244 = math.tanh %243 : vector<2x16xf32>
    %245 = vector.extract_strided_slice %224 {offsets = [0, 48], sizes = [2, 16], strides = [1, 1]} : vector<2x64xf32> to vector<2x16xf32>
    %246 = arith.negf %245 : vector<2x16xf32>
    %247 = math.exp %246 : vector<2x16xf32>
    %cst_69 = arith.constant 1.000000e+00 : f32
    %248 = vector.broadcast %cst_69 : f32 to vector<2x16xf32>
    %249 = arith.addf %248, %247 : vector<2x16xf32>
    %250 = arith.divf %248, %249 : vector<2x16xf32>
    %251 = arith.mulf %242, %184 : vector<2x16xf32>
    %252 = arith.mulf %236, %244 : vector<2x16xf32>
    %253 = arith.addf %251, %252 : vector<2x16xf32>
    %254 = math.tanh %253 : vector<2x16xf32>
    %255 = arith.mulf %250, %254 : vector<2x16xf32>
    %256 = vector.extract_strided_slice %230 {offsets = [0, 0], sizes = [2, 16], strides = [1, 1]} : vector<2x64xf32> to vector<2x16xf32>
    %257 = arith.negf %256 : vector<2x16xf32>
    %258 = math.exp %257 : vector<2x16xf32>
    %cst_70 = arith.constant 1.000000e+00 : f32
    %259 = vector.broadcast %cst_70 : f32 to vector<2x16xf32>
    %260 = arith.addf %259, %258 : vector<2x16xf32>
    %261 = arith.divf %259, %260 : vector<2x16xf32>
    %262 = vector.extract_strided_slice %230 {offsets = [0, 16], sizes = [2, 16], strides = [1, 1]} : vector<2x64xf32> to vector<2x16xf32>
    %263 = arith.negf %262 : vector<2x16xf32>
    %264 = math.exp %263 : vector<2x16xf32>
    %cst_71 = arith.constant 1.000000e+00 : f32
    %265 = vector.broadcast %cst_71 : f32 to vector<2x16xf32>
    %266 = arith.addf %265, %264 : vector<2x16xf32>
    %267 = arith.divf %265, %266 : vector<2x16xf32>
    %268 = vector.extract_strided_slice %230 {offsets = [0, 32], sizes = [2, 16], strides = [1, 1]} : vector<2x64xf32> to vector<2x16xf32>
    %269 = math.tanh %268 : vector<2x16xf32>
    %270 = vector.extract_strided_slice %230 {offsets = [0, 48], sizes = [2, 16], strides = [1, 1]} : vector<2x64xf32> to vector<2x16xf32>
    %271 = arith.negf %270 : vector<2x16xf32>
    %272 = math.exp %271 : vector<2x16xf32>
    %cst_72 = arith.constant 1.000000e+00 : f32
    %273 = vector.broadcast %cst_72 : f32 to vector<2x16xf32>
    %274 = arith.addf %273, %272 : vector<2x16xf32>
    %275 = arith.divf %273, %274 : vector<2x16xf32>
    %276 = arith.mulf %267, %209 : vector<2x16xf32>
    %277 = arith.mulf %261, %269 : vector<2x16xf32>
    %278 = arith.addf %276, %277 : vector<2x16xf32>
    %279 = math.tanh %278 : vector<2x16xf32>
    %280 = arith.mulf %275, %279 : vector<2x16xf32>
    %c2_i32_73 = arith.constant 2 : i32
    %281 = arith.muli %c3_i32, %c2_i32_73 : i32
    %282 = arith.index_cast %281 : i32 to index
    %c0_74 = arith.constant 0 : index
    %283 = vector.load %arg14[%282, %c0_74] : memref<16x32xf32, #tpu.memory_space<vmem>>, vector<2x16xf32>
    tpu.vector_store %arg14[%282, %c0_74], %255 {strides = array<i32>} : memref<16x32xf32, #tpu.memory_space<vmem>>, vector<2x16xf32>,
    %c2_i32_75 = arith.constant 2 : i32
    %284 = arith.muli %218, %c2_i32_75 : i32
    %285 = arith.index_cast %284 : i32 to index
    %c16_76 = arith.constant 16 : index
    %286 = vector.load %arg14[%285, %c16_76] : memref<16x32xf32, #tpu.memory_space<vmem>>, vector<2x16xf32>
    tpu.vector_store %arg14[%285, %c16_76], %280 {strides = array<i32>} : memref<16x32xf32, #tpu.memory_space<vmem>>, vector<2x16xf32>,
    %c4_i32 = arith.constant 4 : i32
    %c7_i32_77 = arith.constant 7 : i32
    %287 = arith.subi %c7_i32_77, %c4_i32 : i32
    %c2_i32_78 = arith.constant 2 : i32
    %288 = arith.muli %c4_i32, %c2_i32_78 : i32
    %289 = arith.index_cast %288 : i32 to index
    %c0_79 = arith.constant 0 : index
    %290 = vector.load %arg16[%289, %c0_79] : memref<16x128xf32, #tpu.memory_space<vmem>>, vector<2x64xf32>
    %291 = arith.truncf %255 : vector<2x16xf32> to vector<2x16xbf16>
    %cst_80 = arith.constant dense<0.000000e+00> : vector<2x64xf32>
    %292 = tpu.matmul %291, %1, %cst_80 {dimension_numbers = #tpu.dot_dimension_numbers<[1], [0], [0], [1], [0, 0, 1, 1], [], []>} : vector<2x16xbf16>, vector<16x64xbf16>, vector<2x64xf32> -> vector<2x64xf32>
    %293 = arith.addf %290, %292 : vector<2x64xf32>
    %c2_i32_81 = arith.constant 2 : i32
    %294 = arith.muli %287, %c2_i32_81 : i32
    %295 = arith.index_cast %294 : i32 to index
    %c64_82 = arith.constant 64 : index
    %296 = vector.load %arg16[%295, %c64_82] : memref<16x128xf32, #tpu.memory_space<vmem>>, vector<2x64xf32>
    %297 = arith.truncf %280 : vector<2x16xf32> to vector<2x16xbf16>
    %cst_83 = arith.constant dense<0.000000e+00> : vector<2x64xf32>
    %298 = tpu.matmul %297, %2, %cst_83 {dimension_numbers = #tpu.dot_dimension_numbers<[1], [0], [0], [1], [0, 0, 1, 1], [], []>} : vector<2x16xbf16>, vector<16x64xbf16>, vector<2x64xf32> -> vector<2x64xf32>
    %299 = arith.addf %296, %298 : vector<2x64xf32>
    %300 = vector.extract_strided_slice %293 {offsets = [0, 0], sizes = [2, 16], strides = [1, 1]} : vector<2x64xf32> to vector<2x16xf32>
    %301 = arith.negf %300 : vector<2x16xf32>
    %302 = math.exp %301 : vector<2x16xf32>
    %cst_84 = arith.constant 1.000000e+00 : f32
    %303 = vector.broadcast %cst_84 : f32 to vector<2x16xf32>
    %304 = arith.addf %303, %302 : vector<2x16xf32>
    %305 = arith.divf %303, %304 : vector<2x16xf32>
    %306 = vector.extract_strided_slice %293 {offsets = [0, 16], sizes = [2, 16], strides = [1, 1]} : vector<2x64xf32> to vector<2x16xf32>
    %307 = arith.negf %306 : vector<2x16xf32>
    %308 = math.exp %307 : vector<2x16xf32>
    %cst_85 = arith.constant 1.000000e+00 : f32
    %309 = vector.broadcast %cst_85 : f32 to vector<2x16xf32>
    %310 = arith.addf %309, %308 : vector<2x16xf32>
    %311 = arith.divf %309, %310 : vector<2x16xf32>
    %312 = vector.extract_strided_slice %293 {offsets = [0, 32], sizes = [2, 16], strides = [1, 1]} : vector<2x64xf32> to vector<2x16xf32>
    %313 = math.tanh %312 : vector<2x16xf32>
    %314 = vector.extract_strided_slice %293 {offsets = [0, 48], sizes = [2, 16], strides = [1, 1]} : vector<2x64xf32> to vector<2x16xf32>
    %315 = arith.negf %314 : vector<2x16xf32>
    %316 = math.exp %315 : vector<2x16xf32>
    %cst_86 = arith.constant 1.000000e+00 : f32
    %317 = vector.broadcast %cst_86 : f32 to vector<2x16xf32>
    %318 = arith.addf %317, %316 : vector<2x16xf32>
    %319 = arith.divf %317, %318 : vector<2x16xf32>
    %320 = arith.mulf %311, %253 : vector<2x16xf32>
    %321 = arith.mulf %305, %313 : vector<2x16xf32>
    %322 = arith.addf %320, %321 : vector<2x16xf32>
    %323 = math.tanh %322 : vector<2x16xf32>
    %324 = arith.mulf %319, %323 : vector<2x16xf32>
    %325 = vector.extract_strided_slice %299 {offsets = [0, 0], sizes = [2, 16], strides = [1, 1]} : vector<2x64xf32> to vector<2x16xf32>
    %326 = arith.negf %325 : vector<2x16xf32>
    %327 = math.exp %326 : vector<2x16xf32>
    %cst_87 = arith.constant 1.000000e+00 : f32
    %328 = vector.broadcast %cst_87 : f32 to vector<2x16xf32>
    %329 = arith.addf %328, %327 : vector<2x16xf32>
    %330 = arith.divf %328, %329 : vector<2x16xf32>
    %331 = vector.extract_strided_slice %299 {offsets = [0, 16], sizes = [2, 16], strides = [1, 1]} : vector<2x64xf32> to vector<2x16xf32>
    %332 = arith.negf %331 : vector<2x16xf32>
    %333 = math.exp %332 : vector<2x16xf32>
    %cst_88 = arith.constant 1.000000e+00 : f32
    %334 = vector.broadcast %cst_88 : f32 to vector<2x16xf32>
    %335 = arith.addf %334, %333 : vector<2x16xf32>
    %336 = arith.divf %334, %335 : vector<2x16xf32>
    %337 = vector.extract_strided_slice %299 {offsets = [0, 32], sizes = [2, 16], strides = [1, 1]} : vector<2x64xf32> to vector<2x16xf32>
    %338 = math.tanh %337 : vector<2x16xf32>
    %339 = vector.extract_strided_slice %299 {offsets = [0, 48], sizes = [2, 16], strides = [1, 1]} : vector<2x64xf32> to vector<2x16xf32>
    %340 = arith.negf %339 : vector<2x16xf32>
    %341 = math.exp %340 : vector<2x16xf32>
    %cst_89 = arith.constant 1.000000e+00 : f32
    %342 = vector.broadcast %cst_89 : f32 to vector<2x16xf32>
    %343 = arith.addf %342, %341 : vector<2x16xf32>
    %344 = arith.divf %342, %343 : vector<2x16xf32>
    %345 = arith.mulf %336, %278 : vector<2x16xf32>
    %346 = arith.mulf %330, %338 : vector<2x16xf32>
    %347 = arith.addf %345, %346 : vector<2x16xf32>
    %348 = math.tanh %347 : vector<2x16xf32>
    %349 = arith.mulf %344, %348 : vector<2x16xf32>
    %c2_i32_90 = arith.constant 2 : i32
    %350 = arith.muli %c4_i32, %c2_i32_90 : i32
    %351 = arith.index_cast %350 : i32 to index
    %c0_91 = arith.constant 0 : index
    %352 = vector.load %arg14[%351, %c0_91] : memref<16x32xf32, #tpu.memory_space<vmem>>, vector<2x16xf32>
    tpu.vector_store %arg14[%351, %c0_91], %324 {strides = array<i32>} : memref<16x32xf32, #tpu.memory_space<vmem>>, vector<2x16xf32>,
    %c2_i32_92 = arith.constant 2 : i32
    %353 = arith.muli %287, %c2_i32_92 : i32
    %354 = arith.index_cast %353 : i32 to index
    %c16_93 = arith.constant 16 : index
    %355 = vector.load %arg14[%354, %c16_93] : memref<16x32xf32, #tpu.memory_space<vmem>>, vector<2x16xf32>
    tpu.vector_store %arg14[%354, %c16_93], %349 {strides = array<i32>} : memref<16x32xf32, #tpu.memory_space<vmem>>, vector<2x16xf32>,
    %c5_i32 = arith.constant 5 : i32
    %c7_i32_94 = arith.constant 7 : i32
    %356 = arith.subi %c7_i32_94, %c5_i32 : i32
    %c2_i32_95 = arith.constant 2 : i32
    %357 = arith.muli %c5_i32, %c2_i32_95 : i32
    %358 = arith.index_cast %357 : i32 to index
    %c0_96 = arith.constant 0 : index
    %359 = vector.load %arg16[%358, %c0_96] : memref<16x128xf32, #tpu.memory_space<vmem>>, vector<2x64xf32>
    %360 = arith.truncf %324 : vector<2x16xf32> to vector<2x16xbf16>
    %cst_97 = arith.constant dense<0.000000e+00> : vector<2x64xf32>
    %361 = tpu.matmul %360, %1, %cst_97 {dimension_numbers = #tpu.dot_dimension_numbers<[1], [0], [0], [1], [0, 0, 1, 1], [], []>} : vector<2x16xbf16>, vector<16x64xbf16>, vector<2x64xf32> -> vector<2x64xf32>
    %362 = arith.addf %359, %361 : vector<2x64xf32>
    %c2_i32_98 = arith.constant 2 : i32
    %363 = arith.muli %356, %c2_i32_98 : i32
    %364 = arith.index_cast %363 : i32 to index
    %c64_99 = arith.constant 64 : index
    %365 = vector.load %arg16[%364, %c64_99] : memref<16x128xf32, #tpu.memory_space<vmem>>, vector<2x64xf32>
    %366 = arith.truncf %349 : vector<2x16xf32> to vector<2x16xbf16>
    %cst_100 = arith.constant dense<0.000000e+00> : vector<2x64xf32>
    %367 = tpu.matmul %366, %2, %cst_100 {dimension_numbers = #tpu.dot_dimension_numbers<[1], [0], [0], [1], [0, 0, 1, 1], [], []>} : vector<2x16xbf16>, vector<16x64xbf16>, vector<2x64xf32> -> vector<2x64xf32>
    %368 = arith.addf %365, %367 : vector<2x64xf32>
    %369 = vector.extract_strided_slice %362 {offsets = [0, 0], sizes = [2, 16], strides = [1, 1]} : vector<2x64xf32> to vector<2x16xf32>
    %370 = arith.negf %369 : vector<2x16xf32>
    %371 = math.exp %370 : vector<2x16xf32>
    %cst_101 = arith.constant 1.000000e+00 : f32
    %372 = vector.broadcast %cst_101 : f32 to vector<2x16xf32>
    %373 = arith.addf %372, %371 : vector<2x16xf32>
    %374 = arith.divf %372, %373 : vector<2x16xf32>
    %375 = vector.extract_strided_slice %362 {offsets = [0, 16], sizes = [2, 16], strides = [1, 1]} : vector<2x64xf32> to vector<2x16xf32>
    %376 = arith.negf %375 : vector<2x16xf32>
    %377 = math.exp %376 : vector<2x16xf32>
    %cst_102 = arith.constant 1.000000e+00 : f32
    %378 = vector.broadcast %cst_102 : f32 to vector<2x16xf32>
    %379 = arith.addf %378, %377 : vector<2x16xf32>
    %380 = arith.divf %378, %379 : vector<2x16xf32>
    %381 = vector.extract_strided_slice %362 {offsets = [0, 32], sizes = [2, 16], strides = [1, 1]} : vector<2x64xf32> to vector<2x16xf32>
    %382 = math.tanh %381 : vector<2x16xf32>
    %383 = vector.extract_strided_slice %362 {offsets = [0, 48], sizes = [2, 16], strides = [1, 1]} : vector<2x64xf32> to vector<2x16xf32>
    %384 = arith.negf %383 : vector<2x16xf32>
    %385 = math.exp %384 : vector<2x16xf32>
    %cst_103 = arith.constant 1.000000e+00 : f32
    %386 = vector.broadcast %cst_103 : f32 to vector<2x16xf32>
    %387 = arith.addf %386, %385 : vector<2x16xf32>
    %388 = arith.divf %386, %387 : vector<2x16xf32>
    %389 = arith.mulf %380, %322 : vector<2x16xf32>
    %390 = arith.mulf %374, %382 : vector<2x16xf32>
    %391 = arith.addf %389, %390 : vector<2x16xf32>
    %392 = math.tanh %391 : vector<2x16xf32>
    %393 = arith.mulf %388, %392 : vector<2x16xf32>
    %394 = vector.extract_strided_slice %368 {offsets = [0, 0], sizes = [2, 16], strides = [1, 1]} : vector<2x64xf32> to vector<2x16xf32>
    %395 = arith.negf %394 : vector<2x16xf32>
    %396 = math.exp %395 : vector<2x16xf32>
    %cst_104 = arith.constant 1.000000e+00 : f32
    %397 = vector.broadcast %cst_104 : f32 to vector<2x16xf32>
    %398 = arith.addf %397, %396 : vector<2x16xf32>
    %399 = arith.divf %397, %398 : vector<2x16xf32>
    %400 = vector.extract_strided_slice %368 {offsets = [0, 16], sizes = [2, 16], strides = [1, 1]} : vector<2x64xf32> to vector<2x16xf32>
    %401 = arith.negf %400 : vector<2x16xf32>
    %402 = math.exp %401 : vector<2x16xf32>
    %cst_105 = arith.constant 1.000000e+00 : f32
    %403 = vector.broadcast %cst_105 : f32 to vector<2x16xf32>
    %404 = arith.addf %403, %402 : vector<2x16xf32>
    %405 = arith.divf %403, %404 : vector<2x16xf32>
    %406 = vector.extract_strided_slice %368 {offsets = [0, 32], sizes = [2, 16], strides = [1, 1]} : vector<2x64xf32> to vector<2x16xf32>
    %407 = math.tanh %406 : vector<2x16xf32>
    %408 = vector.extract_strided_slice %368 {offsets = [0, 48], sizes = [2, 16], strides = [1, 1]} : vector<2x64xf32> to vector<2x16xf32>
    %409 = arith.negf %408 : vector<2x16xf32>
    %410 = math.exp %409 : vector<2x16xf32>
    %cst_106 = arith.constant 1.000000e+00 : f32
    %411 = vector.broadcast %cst_106 : f32 to vector<2x16xf32>
    %412 = arith.addf %411, %410 : vector<2x16xf32>
    %413 = arith.divf %411, %412 : vector<2x16xf32>
    %414 = arith.mulf %405, %347 : vector<2x16xf32>
    %415 = arith.mulf %399, %407 : vector<2x16xf32>
    %416 = arith.addf %414, %415 : vector<2x16xf32>
    %417 = math.tanh %416 : vector<2x16xf32>
    %418 = arith.mulf %413, %417 : vector<2x16xf32>
    %c2_i32_107 = arith.constant 2 : i32
    %419 = arith.muli %c5_i32, %c2_i32_107 : i32
    %420 = arith.index_cast %419 : i32 to index
    %c0_108 = arith.constant 0 : index
    %421 = vector.load %arg14[%420, %c0_108] : memref<16x32xf32, #tpu.memory_space<vmem>>, vector<2x16xf32>
    tpu.vector_store %arg14[%420, %c0_108], %393 {strides = array<i32>} : memref<16x32xf32, #tpu.memory_space<vmem>>, vector<2x16xf32>,
    %c2_i32_109 = arith.constant 2 : i32
    %422 = arith.muli %356, %c2_i32_109 : i32
    %423 = arith.index_cast %422 : i32 to index
    %c16_110 = arith.constant 16 : index
    %424 = vector.load %arg14[%423, %c16_110] : memref<16x32xf32, #tpu.memory_space<vmem>>, vector<2x16xf32>
    tpu.vector_store %arg14[%423, %c16_110], %418 {strides = array<i32>} : memref<16x32xf32, #tpu.memory_space<vmem>>, vector<2x16xf32>,
    %c6_i32 = arith.constant 6 : i32
    %c7_i32_111 = arith.constant 7 : i32
    %425 = arith.subi %c7_i32_111, %c6_i32 : i32
    %c2_i32_112 = arith.constant 2 : i32
    %426 = arith.muli %c6_i32, %c2_i32_112 : i32
    %427 = arith.index_cast %426 : i32 to index
    %c0_113 = arith.constant 0 : index
    %428 = vector.load %arg16[%427, %c0_113] : memref<16x128xf32, #tpu.memory_space<vmem>>, vector<2x64xf32>
    %429 = arith.truncf %393 : vector<2x16xf32> to vector<2x16xbf16>
    %cst_114 = arith.constant dense<0.000000e+00> : vector<2x64xf32>
    %430 = tpu.matmul %429, %1, %cst_114 {dimension_numbers = #tpu.dot_dimension_numbers<[1], [0], [0], [1], [0, 0, 1, 1], [], []>} : vector<2x16xbf16>, vector<16x64xbf16>, vector<2x64xf32> -> vector<2x64xf32>
    %431 = arith.addf %428, %430 : vector<2x64xf32>
    %c2_i32_115 = arith.constant 2 : i32
    %432 = arith.muli %425, %c2_i32_115 : i32
    %433 = arith.index_cast %432 : i32 to index
    %c64_116 = arith.constant 64 : index
    %434 = vector.load %arg16[%433, %c64_116] : memref<16x128xf32, #tpu.memory_space<vmem>>, vector<2x64xf32>
    %435 = arith.truncf %418 : vector<2x16xf32> to vector<2x16xbf16>
    %cst_117 = arith.constant dense<0.000000e+00> : vector<2x64xf32>
    %436 = tpu.matmul %435, %2, %cst_117 {dimension_numbers = #tpu.dot_dimension_numbers<[1], [0], [0], [1], [0, 0, 1, 1], [], []>} : vector<2x16xbf16>, vector<16x64xbf16>, vector<2x64xf32> -> vector<2x64xf32>
    %437 = arith.addf %434, %436 : vector<2x64xf32>
    %438 = vector.extract_strided_slice %431 {offsets = [0, 0], sizes = [2, 16], strides = [1, 1]} : vector<2x64xf32> to vector<2x16xf32>
    %439 = arith.negf %438 : vector<2x16xf32>
    %440 = math.exp %439 : vector<2x16xf32>
    %cst_118 = arith.constant 1.000000e+00 : f32
    %441 = vector.broadcast %cst_118 : f32 to vector<2x16xf32>
    %442 = arith.addf %441, %440 : vector<2x16xf32>
    %443 = arith.divf %441, %442 : vector<2x16xf32>
    %444 = vector.extract_strided_slice %431 {offsets = [0, 16], sizes = [2, 16], strides = [1, 1]} : vector<2x64xf32> to vector<2x16xf32>
    %445 = arith.negf %444 : vector<2x16xf32>
    %446 = math.exp %445 : vector<2x16xf32>
    %cst_119 = arith.constant 1.000000e+00 : f32
    %447 = vector.broadcast %cst_119 : f32 to vector<2x16xf32>
    %448 = arith.addf %447, %446 : vector<2x16xf32>
    %449 = arith.divf %447, %448 : vector<2x16xf32>
    %450 = vector.extract_strided_slice %431 {offsets = [0, 32], sizes = [2, 16], strides = [1, 1]} : vector<2x64xf32> to vector<2x16xf32>
    %451 = math.tanh %450 : vector<2x16xf32>
    %452 = vector.extract_strided_slice %431 {offsets = [0, 48], sizes = [2, 16], strides = [1, 1]} : vector<2x64xf32> to vector<2x16xf32>
    %453 = arith.negf %452 : vector<2x16xf32>
    %454 = math.exp %453 : vector<2x16xf32>
    %cst_120 = arith.constant 1.000000e+00 : f32
    %455 = vector.broadcast %cst_120 : f32 to vector<2x16xf32>
    %456 = arith.addf %455, %454 : vector<2x16xf32>
    %457 = arith.divf %455, %456 : vector<2x16xf32>
    %458 = arith.mulf %449, %391 : vector<2x16xf32>
    %459 = arith.mulf %443, %451 : vector<2x16xf32>
    %460 = arith.addf %458, %459 : vector<2x16xf32>
    %461 = math.tanh %460 : vector<2x16xf32>
    %462 = arith.mulf %457, %461 : vector<2x16xf32>
    %463 = vector.extract_strided_slice %437 {offsets = [0, 0], sizes = [2, 16], strides = [1, 1]} : vector<2x64xf32> to vector<2x16xf32>
    %464 = arith.negf %463 : vector<2x16xf32>
    %465 = math.exp %464 : vector<2x16xf32>
    %cst_121 = arith.constant 1.000000e+00 : f32
    %466 = vector.broadcast %cst_121 : f32 to vector<2x16xf32>
    %467 = arith.addf %466, %465 : vector<2x16xf32>
    %468 = arith.divf %466, %467 : vector<2x16xf32>
    %469 = vector.extract_strided_slice %437 {offsets = [0, 16], sizes = [2, 16], strides = [1, 1]} : vector<2x64xf32> to vector<2x16xf32>
    %470 = arith.negf %469 : vector<2x16xf32>
    %471 = math.exp %470 : vector<2x16xf32>
    %cst_122 = arith.constant 1.000000e+00 : f32
    %472 = vector.broadcast %cst_122 : f32 to vector<2x16xf32>
    %473 = arith.addf %472, %471 : vector<2x16xf32>
    %474 = arith.divf %472, %473 : vector<2x16xf32>
    %475 = vector.extract_strided_slice %437 {offsets = [0, 32], sizes = [2, 16], strides = [1, 1]} : vector<2x64xf32> to vector<2x16xf32>
    %476 = math.tanh %475 : vector<2x16xf32>
    %477 = vector.extract_strided_slice %437 {offsets = [0, 48], sizes = [2, 16], strides = [1, 1]} : vector<2x64xf32> to vector<2x16xf32>
    %478 = arith.negf %477 : vector<2x16xf32>
    %479 = math.exp %478 : vector<2x16xf32>
    %cst_123 = arith.constant 1.000000e+00 : f32
    %480 = vector.broadcast %cst_123 : f32 to vector<2x16xf32>
    %481 = arith.addf %480, %479 : vector<2x16xf32>
    %482 = arith.divf %480, %481 : vector<2x16xf32>
    %483 = arith.mulf %474, %416 : vector<2x16xf32>
    %484 = arith.mulf %468, %476 : vector<2x16xf32>
    %485 = arith.addf %483, %484 : vector<2x16xf32>
    %486 = math.tanh %485 : vector<2x16xf32>
    %487 = arith.mulf %482, %486 : vector<2x16xf32>
    %c2_i32_124 = arith.constant 2 : i32
    %488 = arith.muli %c6_i32, %c2_i32_124 : i32
    %489 = arith.index_cast %488 : i32 to index
    %c0_125 = arith.constant 0 : index
    %490 = vector.load %arg14[%489, %c0_125] : memref<16x32xf32, #tpu.memory_space<vmem>>, vector<2x16xf32>
    tpu.vector_store %arg14[%489, %c0_125], %462 {strides = array<i32>} : memref<16x32xf32, #tpu.memory_space<vmem>>, vector<2x16xf32>,
    %c2_i32_126 = arith.constant 2 : i32
    %491 = arith.muli %425, %c2_i32_126 : i32
    %492 = arith.index_cast %491 : i32 to index
    %c16_127 = arith.constant 16 : index
    %493 = vector.load %arg14[%492, %c16_127] : memref<16x32xf32, #tpu.memory_space<vmem>>, vector<2x16xf32>
    tpu.vector_store %arg14[%492, %c16_127], %487 {strides = array<i32>} : memref<16x32xf32, #tpu.memory_space<vmem>>, vector<2x16xf32>,
    %c7_i32_128 = arith.constant 7 : i32
    %c7_i32_129 = arith.constant 7 : i32
    %494 = arith.subi %c7_i32_129, %c7_i32_128 : i32
    %c2_i32_130 = arith.constant 2 : i32
    %495 = arith.muli %c7_i32_128, %c2_i32_130 : i32
    %496 = arith.index_cast %495 : i32 to index
    %c0_131 = arith.constant 0 : index
    %497 = vector.load %arg16[%496, %c0_131] : memref<16x128xf32, #tpu.memory_space<vmem>>, vector<2x64xf32>
    %498 = arith.truncf %462 : vector<2x16xf32> to vector<2x16xbf16>
    %cst_132 = arith.constant dense<0.000000e+00> : vector<2x64xf32>
    %499 = tpu.matmul %498, %1, %cst_132 {dimension_numbers = #tpu.dot_dimension_numbers<[1], [0], [0], [1], [0, 0, 1, 1], [], []>} : vector<2x16xbf16>, vector<16x64xbf16>, vector<2x64xf32> -> vector<2x64xf32>
    %500 = arith.addf %497, %499 : vector<2x64xf32>
    %c2_i32_133 = arith.constant 2 : i32
    %501 = arith.muli %494, %c2_i32_133 : i32
    %502 = arith.index_cast %501 : i32 to index
    %c64_134 = arith.constant 64 : index
    %503 = vector.load %arg16[%502, %c64_134] : memref<16x128xf32, #tpu.memory_space<vmem>>, vector<2x64xf32>
    %504 = arith.truncf %487 : vector<2x16xf32> to vector<2x16xbf16>
    %cst_135 = arith.constant dense<0.000000e+00> : vector<2x64xf32>
    %505 = tpu.matmul %504, %2, %cst_135 {dimension_numbers = #tpu.dot_dimension_numbers<[1], [0], [0], [1], [0, 0, 1, 1], [], []>} : vector<2x16xbf16>, vector<16x64xbf16>, vector<2x64xf32> -> vector<2x64xf32>
    %506 = arith.addf %503, %505 : vector<2x64xf32>
    %507 = vector.extract_strided_slice %500 {offsets = [0, 0], sizes = [2, 16], strides = [1, 1]} : vector<2x64xf32> to vector<2x16xf32>
    %508 = arith.negf %507 : vector<2x16xf32>
    %509 = math.exp %508 : vector<2x16xf32>
    %cst_136 = arith.constant 1.000000e+00 : f32
    %510 = vector.broadcast %cst_136 : f32 to vector<2x16xf32>
    %511 = arith.addf %510, %509 : vector<2x16xf32>
    %512 = arith.divf %510, %511 : vector<2x16xf32>
    %513 = vector.extract_strided_slice %500 {offsets = [0, 16], sizes = [2, 16], strides = [1, 1]} : vector<2x64xf32> to vector<2x16xf32>
    %514 = arith.negf %513 : vector<2x16xf32>
    %515 = math.exp %514 : vector<2x16xf32>
    %cst_137 = arith.constant 1.000000e+00 : f32
    %516 = vector.broadcast %cst_137 : f32 to vector<2x16xf32>
    %517 = arith.addf %516, %515 : vector<2x16xf32>
    %518 = arith.divf %516, %517 : vector<2x16xf32>
    %519 = vector.extract_strided_slice %500 {offsets = [0, 32], sizes = [2, 16], strides = [1, 1]} : vector<2x64xf32> to vector<2x16xf32>
    %520 = math.tanh %519 : vector<2x16xf32>
    %521 = vector.extract_strided_slice %500 {offsets = [0, 48], sizes = [2, 16], strides = [1, 1]} : vector<2x64xf32> to vector<2x16xf32>
    %522 = arith.negf %521 : vector<2x16xf32>
    %523 = math.exp %522 : vector<2x16xf32>
    %cst_138 = arith.constant 1.000000e+00 : f32
    %524 = vector.broadcast %cst_138 : f32 to vector<2x16xf32>
    %525 = arith.addf %524, %523 : vector<2x16xf32>
    %526 = arith.divf %524, %525 : vector<2x16xf32>
    %527 = arith.mulf %518, %460 : vector<2x16xf32>
    %528 = arith.mulf %512, %520 : vector<2x16xf32>
    %529 = arith.addf %527, %528 : vector<2x16xf32>
    %530 = math.tanh %529 : vector<2x16xf32>
    %531 = arith.mulf %526, %530 : vector<2x16xf32>
    %532 = vector.extract_strided_slice %506 {offsets = [0, 0], sizes = [2, 16], strides = [1, 1]} : vector<2x64xf32> to vector<2x16xf32>
    %533 = arith.negf %532 : vector<2x16xf32>
    %534 = math.exp %533 : vector<2x16xf32>
    %cst_139 = arith.constant 1.000000e+00 : f32
    %535 = vector.broadcast %cst_139 : f32 to vector<2x16xf32>
    %536 = arith.addf %535, %534 : vector<2x16xf32>
    %537 = arith.divf %535, %536 : vector<2x16xf32>
    %538 = vector.extract_strided_slice %506 {offsets = [0, 16], sizes = [2, 16], strides = [1, 1]} : vector<2x64xf32> to vector<2x16xf32>
    %539 = arith.negf %538 : vector<2x16xf32>
    %540 = math.exp %539 : vector<2x16xf32>
    %cst_140 = arith.constant 1.000000e+00 : f32
    %541 = vector.broadcast %cst_140 : f32 to vector<2x16xf32>
    %542 = arith.addf %541, %540 : vector<2x16xf32>
    %543 = arith.divf %541, %542 : vector<2x16xf32>
    %544 = vector.extract_strided_slice %506 {offsets = [0, 32], sizes = [2, 16], strides = [1, 1]} : vector<2x64xf32> to vector<2x16xf32>
    %545 = math.tanh %544 : vector<2x16xf32>
    %546 = vector.extract_strided_slice %506 {offsets = [0, 48], sizes = [2, 16], strides = [1, 1]} : vector<2x64xf32> to vector<2x16xf32>
    %547 = arith.negf %546 : vector<2x16xf32>
    %548 = math.exp %547 : vector<2x16xf32>
    %cst_141 = arith.constant 1.000000e+00 : f32
    %549 = vector.broadcast %cst_141 : f32 to vector<2x16xf32>
    %550 = arith.addf %549, %548 : vector<2x16xf32>
    %551 = arith.divf %549, %550 : vector<2x16xf32>
    %552 = arith.mulf %543, %485 : vector<2x16xf32>
    %553 = arith.mulf %537, %545 : vector<2x16xf32>
    %554 = arith.addf %552, %553 : vector<2x16xf32>
    %555 = math.tanh %554 : vector<2x16xf32>
    %556 = arith.mulf %551, %555 : vector<2x16xf32>
    %c2_i32_142 = arith.constant 2 : i32
    %557 = arith.muli %c7_i32_128, %c2_i32_142 : i32
    %558 = arith.index_cast %557 : i32 to index
    %c0_143 = arith.constant 0 : index
    %559 = vector.load %arg14[%558, %c0_143] : memref<16x32xf32, #tpu.memory_space<vmem>>, vector<2x16xf32>
    tpu.vector_store %arg14[%558, %c0_143], %531 {strides = array<i32>} : memref<16x32xf32, #tpu.memory_space<vmem>>, vector<2x16xf32>,
    %c2_i32_144 = arith.constant 2 : i32
    %560 = arith.muli %494, %c2_i32_144 : i32
    %561 = arith.index_cast %560 : i32 to index
    %c16_145 = arith.constant 16 : index
    %562 = vector.load %arg14[%561, %c16_145] : memref<16x32xf32, #tpu.memory_space<vmem>>, vector<2x16xf32>
    tpu.vector_store %arg14[%561, %c16_145], %556 {strides = array<i32>} : memref<16x32xf32, #tpu.memory_space<vmem>>, vector<2x16xf32>,
    %c8_i32 = arith.constant 8 : i32
    %c0_146 = arith.constant 0 : index
    %c0_147 = arith.constant 0 : index
    %563 = vector.load %arg5[%c0_146, %c0_147] : memref<32x128xbf16, #tpu.memory_space<vmem>>, vector<32x128xbf16>
    %c0_148 = arith.constant 0 : index
    %c0_149 = arith.constant 0 : index
    %564 = vector.load %arg6[%c0_148, %c0_149] : memref<16x64xbf16, #tpu.memory_space<vmem>>, vector<16x64xbf16>
    %c0_150 = arith.constant 0 : index
    %c0_151 = arith.constant 0 : index
    %565 = vector.load %arg7[%c0_150, %c0_151] : memref<16x64xbf16, #tpu.memory_space<vmem>>, vector<16x64xbf16>
    %c0_152 = arith.constant 0 : index
    %c0_153 = arith.constant 0 : index
    %566 = vector.load %arg8[%c0_152, %c0_153] : memref<1x128xf32, #tpu.memory_space<vmem>>, vector<1x128xf32>
    %c0_154 = arith.constant 0 : index
    %c0_155 = arith.constant 0 : index
    %567 = vector.load %arg14[%c0_154, %c0_155] : memref<16x32xf32, #tpu.memory_space<vmem>>, vector<16x32xf32>
    %568 = arith.truncf %567 : vector<16x32xf32> to vector<16x32xbf16>
    %cst_156 = arith.constant dense<0.000000e+00> : vector<16x128xf32>
    %569 = tpu.matmul %568, %563, %cst_156 {dimension_numbers = #tpu.dot_dimension_numbers<[1], [0], [0], [1], [0, 0, 1, 1], [], []>} : vector<16x32xbf16>, vector<32x128xbf16>, vector<16x128xf32> -> vector<16x128xf32>
    %570 = vector.broadcast %566 : vector<1x128xf32> to vector<16x128xf32>
    %571 = arith.addf %569, %570 : vector<16x128xf32>
    %c0_157 = arith.constant 0 : index
    %c0_158 = arith.constant 0 : index
    %572 = vector.load %arg16[%c0_157, %c0_158] : memref<16x128xf32, #tpu.memory_space<vmem>>, vector<16x128xf32>
    tpu.vector_store %arg16[%c0_157, %c0_158], %571 {strides = array<i32>} : memref<16x128xf32, #tpu.memory_space<vmem>>, vector<16x128xf32>,
    %cst_159 = arith.constant 0.000000e+00 : f32
    %573 = vector.broadcast %cst_159 : f32 to vector<2x16xf32>
    %c0_i32_160 = arith.constant 0 : i32
    %c7_i32_161 = arith.constant 7 : i32
    %574 = arith.subi %c7_i32_161, %c0_i32_160 : i32
    %c2_i32_162 = arith.constant 2 : i32
    %575 = arith.muli %c0_i32_160, %c2_i32_162 : i32
    %576 = arith.index_cast %575 : i32 to index
    %c0_163 = arith.constant 0 : index
    %577 = vector.load %arg16[%576, %c0_163] : memref<16x128xf32, #tpu.memory_space<vmem>>, vector<2x64xf32>
    %578 = arith.truncf %573 : vector<2x16xf32> to vector<2x16xbf16>
    %cst_164 = arith.constant dense<0.000000e+00> : vector<2x64xf32>
    %579 = tpu.matmul %578, %564, %cst_164 {dimension_numbers = #tpu.dot_dimension_numbers<[1], [0], [0], [1], [0, 0, 1, 1], [], []>} : vector<2x16xbf16>, vector<16x64xbf16>, vector<2x64xf32> -> vector<2x64xf32>
    %580 = arith.addf %577, %579 : vector<2x64xf32>
    %c2_i32_165 = arith.constant 2 : i32
    %581 = arith.muli %574, %c2_i32_165 : i32
    %582 = arith.index_cast %581 : i32 to index
    %c64_166 = arith.constant 64 : index
    %583 = vector.load %arg16[%582, %c64_166] : memref<16x128xf32, #tpu.memory_space<vmem>>, vector<2x64xf32>
    %584 = arith.truncf %573 : vector<2x16xf32> to vector<2x16xbf16>
    %cst_167 = arith.constant dense<0.000000e+00> : vector<2x64xf32>
    %585 = tpu.matmul %584, %565, %cst_167 {dimension_numbers = #tpu.dot_dimension_numbers<[1], [0], [0], [1], [0, 0, 1, 1], [], []>} : vector<2x16xbf16>, vector<16x64xbf16>, vector<2x64xf32> -> vector<2x64xf32>
    %586 = arith.addf %583, %585 : vector<2x64xf32>
    %587 = vector.extract_strided_slice %580 {offsets = [0, 0], sizes = [2, 16], strides = [1, 1]} : vector<2x64xf32> to vector<2x16xf32>
    %588 = arith.negf %587 : vector<2x16xf32>
    %589 = math.exp %588 : vector<2x16xf32>
    %cst_168 = arith.constant 1.000000e+00 : f32
    %590 = vector.broadcast %cst_168 : f32 to vector<2x16xf32>
    %591 = arith.addf %590, %589 : vector<2x16xf32>
    %592 = arith.divf %590, %591 : vector<2x16xf32>
    %593 = vector.extract_strided_slice %580 {offsets = [0, 16], sizes = [2, 16], strides = [1, 1]} : vector<2x64xf32> to vector<2x16xf32>
    %594 = arith.negf %593 : vector<2x16xf32>
    %595 = math.exp %594 : vector<2x16xf32>
    %cst_169 = arith.constant 1.000000e+00 : f32
    %596 = vector.broadcast %cst_169 : f32 to vector<2x16xf32>
    %597 = arith.addf %596, %595 : vector<2x16xf32>
    %598 = arith.divf %596, %597 : vector<2x16xf32>
    %599 = vector.extract_strided_slice %580 {offsets = [0, 32], sizes = [2, 16], strides = [1, 1]} : vector<2x64xf32> to vector<2x16xf32>
    %600 = math.tanh %599 : vector<2x16xf32>
    %601 = vector.extract_strided_slice %580 {offsets = [0, 48], sizes = [2, 16], strides = [1, 1]} : vector<2x64xf32> to vector<2x16xf32>
    %602 = arith.negf %601 : vector<2x16xf32>
    %603 = math.exp %602 : vector<2x16xf32>
    %cst_170 = arith.constant 1.000000e+00 : f32
    %604 = vector.broadcast %cst_170 : f32 to vector<2x16xf32>
    %605 = arith.addf %604, %603 : vector<2x16xf32>
    %606 = arith.divf %604, %605 : vector<2x16xf32>
    %607 = arith.mulf %598, %573 : vector<2x16xf32>
    %608 = arith.mulf %592, %600 : vector<2x16xf32>
    %609 = arith.addf %607, %608 : vector<2x16xf32>
    %610 = math.tanh %609 : vector<2x16xf32>
    %611 = arith.mulf %606, %610 : vector<2x16xf32>
    %612 = vector.extract_strided_slice %586 {offsets = [0, 0], sizes = [2, 16], strides = [1, 1]} : vector<2x64xf32> to vector<2x16xf32>
    %613 = arith.negf %612 : vector<2x16xf32>
    %614 = math.exp %613 : vector<2x16xf32>
    %cst_171 = arith.constant 1.000000e+00 : f32
    %615 = vector.broadcast %cst_171 : f32 to vector<2x16xf32>
    %616 = arith.addf %615, %614 : vector<2x16xf32>
    %617 = arith.divf %615, %616 : vector<2x16xf32>
    %618 = vector.extract_strided_slice %586 {offsets = [0, 16], sizes = [2, 16], strides = [1, 1]} : vector<2x64xf32> to vector<2x16xf32>
    %619 = arith.negf %618 : vector<2x16xf32>
    %620 = math.exp %619 : vector<2x16xf32>
    %cst_172 = arith.constant 1.000000e+00 : f32
    %621 = vector.broadcast %cst_172 : f32 to vector<2x16xf32>
    %622 = arith.addf %621, %620 : vector<2x16xf32>
    %623 = arith.divf %621, %622 : vector<2x16xf32>
    %624 = vector.extract_strided_slice %586 {offsets = [0, 32], sizes = [2, 16], strides = [1, 1]} : vector<2x64xf32> to vector<2x16xf32>
    %625 = math.tanh %624 : vector<2x16xf32>
    %626 = vector.extract_strided_slice %586 {offsets = [0, 48], sizes = [2, 16], strides = [1, 1]} : vector<2x64xf32> to vector<2x16xf32>
    %627 = arith.negf %626 : vector<2x16xf32>
    %628 = math.exp %627 : vector<2x16xf32>
    %cst_173 = arith.constant 1.000000e+00 : f32
    %629 = vector.broadcast %cst_173 : f32 to vector<2x16xf32>
    %630 = arith.addf %629, %628 : vector<2x16xf32>
    %631 = arith.divf %629, %630 : vector<2x16xf32>
    %632 = arith.mulf %623, %573 : vector<2x16xf32>
    %633 = arith.mulf %617, %625 : vector<2x16xf32>
    %634 = arith.addf %632, %633 : vector<2x16xf32>
    %635 = math.tanh %634 : vector<2x16xf32>
    %636 = arith.mulf %631, %635 : vector<2x16xf32>
    %c2_i32_174 = arith.constant 2 : i32
    %637 = arith.muli %c0_i32_160, %c2_i32_174 : i32
    %638 = arith.index_cast %637 : i32 to index
    %c0_175 = arith.constant 0 : index
    %639 = vector.load %arg15[%638, %c0_175] : memref<16x32xf32, #tpu.memory_space<vmem>>, vector<2x16xf32>
    tpu.vector_store %arg15[%638, %c0_175], %611 {strides = array<i32>} : memref<16x32xf32, #tpu.memory_space<vmem>>, vector<2x16xf32>,
    %c2_i32_176 = arith.constant 2 : i32
    %640 = arith.muli %574, %c2_i32_176 : i32
    %641 = arith.index_cast %640 : i32 to index
    %c16_177 = arith.constant 16 : index
    %642 = vector.load %arg15[%641, %c16_177] : memref<16x32xf32, #tpu.memory_space<vmem>>, vector<2x16xf32>
    tpu.vector_store %arg15[%641, %c16_177], %636 {strides = array<i32>} : memref<16x32xf32, #tpu.memory_space<vmem>>, vector<2x16xf32>,
    %c1_i32_178 = arith.constant 1 : i32
    %c7_i32_179 = arith.constant 7 : i32
    %643 = arith.subi %c7_i32_179, %c1_i32_178 : i32
    %c2_i32_180 = arith.constant 2 : i32
    %644 = arith.muli %c1_i32_178, %c2_i32_180 : i32
    %645 = arith.index_cast %644 : i32 to index
    %c0_181 = arith.constant 0 : index
    %646 = vector.load %arg16[%645, %c0_181] : memref<16x128xf32, #tpu.memory_space<vmem>>, vector<2x64xf32>
    %647 = arith.truncf %611 : vector<2x16xf32> to vector<2x16xbf16>
    %cst_182 = arith.constant dense<0.000000e+00> : vector<2x64xf32>
    %648 = tpu.matmul %647, %564, %cst_182 {dimension_numbers = #tpu.dot_dimension_numbers<[1], [0], [0], [1], [0, 0, 1, 1], [], []>} : vector<2x16xbf16>, vector<16x64xbf16>, vector<2x64xf32> -> vector<2x64xf32>
    %649 = arith.addf %646, %648 : vector<2x64xf32>
    %c2_i32_183 = arith.constant 2 : i32
    %650 = arith.muli %643, %c2_i32_183 : i32
    %651 = arith.index_cast %650 : i32 to index
    %c64_184 = arith.constant 64 : index
    %652 = vector.load %arg16[%651, %c64_184] : memref<16x128xf32, #tpu.memory_space<vmem>>, vector<2x64xf32>
    %653 = arith.truncf %636 : vector<2x16xf32> to vector<2x16xbf16>
    %cst_185 = arith.constant dense<0.000000e+00> : vector<2x64xf32>
    %654 = tpu.matmul %653, %565, %cst_185 {dimension_numbers = #tpu.dot_dimension_numbers<[1], [0], [0], [1], [0, 0, 1, 1], [], []>} : vector<2x16xbf16>, vector<16x64xbf16>, vector<2x64xf32> -> vector<2x64xf32>
    %655 = arith.addf %652, %654 : vector<2x64xf32>
    %656 = vector.extract_strided_slice %649 {offsets = [0, 0], sizes = [2, 16], strides = [1, 1]} : vector<2x64xf32> to vector<2x16xf32>
    %657 = arith.negf %656 : vector<2x16xf32>
    %658 = math.exp %657 : vector<2x16xf32>
    %cst_186 = arith.constant 1.000000e+00 : f32
    %659 = vector.broadcast %cst_186 : f32 to vector<2x16xf32>
    %660 = arith.addf %659, %658 : vector<2x16xf32>
    %661 = arith.divf %659, %660 : vector<2x16xf32>
    %662 = vector.extract_strided_slice %649 {offsets = [0, 16], sizes = [2, 16], strides = [1, 1]} : vector<2x64xf32> to vector<2x16xf32>
    %663 = arith.negf %662 : vector<2x16xf32>
    %664 = math.exp %663 : vector<2x16xf32>
    %cst_187 = arith.constant 1.000000e+00 : f32
    %665 = vector.broadcast %cst_187 : f32 to vector<2x16xf32>
    %666 = arith.addf %665, %664 : vector<2x16xf32>
    %667 = arith.divf %665, %666 : vector<2x16xf32>
    %668 = vector.extract_strided_slice %649 {offsets = [0, 32], sizes = [2, 16], strides = [1, 1]} : vector<2x64xf32> to vector<2x16xf32>
    %669 = math.tanh %668 : vector<2x16xf32>
    %670 = vector.extract_strided_slice %649 {offsets = [0, 48], sizes = [2, 16], strides = [1, 1]} : vector<2x64xf32> to vector<2x16xf32>
    %671 = arith.negf %670 : vector<2x16xf32>
    %672 = math.exp %671 : vector<2x16xf32>
    %cst_188 = arith.constant 1.000000e+00 : f32
    %673 = vector.broadcast %cst_188 : f32 to vector<2x16xf32>
    %674 = arith.addf %673, %672 : vector<2x16xf32>
    %675 = arith.divf %673, %674 : vector<2x16xf32>
    %676 = arith.mulf %667, %609 : vector<2x16xf32>
    %677 = arith.mulf %661, %669 : vector<2x16xf32>
    %678 = arith.addf %676, %677 : vector<2x16xf32>
    %679 = math.tanh %678 : vector<2x16xf32>
    %680 = arith.mulf %675, %679 : vector<2x16xf32>
    %681 = vector.extract_strided_slice %655 {offsets = [0, 0], sizes = [2, 16], strides = [1, 1]} : vector<2x64xf32> to vector<2x16xf32>
    %682 = arith.negf %681 : vector<2x16xf32>
    %683 = math.exp %682 : vector<2x16xf32>
    %cst_189 = arith.constant 1.000000e+00 : f32
    %684 = vector.broadcast %cst_189 : f32 to vector<2x16xf32>
    %685 = arith.addf %684, %683 : vector<2x16xf32>
    %686 = arith.divf %684, %685 : vector<2x16xf32>
    %687 = vector.extract_strided_slice %655 {offsets = [0, 16], sizes = [2, 16], strides = [1, 1]} : vector<2x64xf32> to vector<2x16xf32>
    %688 = arith.negf %687 : vector<2x16xf32>
    %689 = math.exp %688 : vector<2x16xf32>
    %cst_190 = arith.constant 1.000000e+00 : f32
    %690 = vector.broadcast %cst_190 : f32 to vector<2x16xf32>
    %691 = arith.addf %690, %689 : vector<2x16xf32>
    %692 = arith.divf %690, %691 : vector<2x16xf32>
    %693 = vector.extract_strided_slice %655 {offsets = [0, 32], sizes = [2, 16], strides = [1, 1]} : vector<2x64xf32> to vector<2x16xf32>
    %694 = math.tanh %693 : vector<2x16xf32>
    %695 = vector.extract_strided_slice %655 {offsets = [0, 48], sizes = [2, 16], strides = [1, 1]} : vector<2x64xf32> to vector<2x16xf32>
    %696 = arith.negf %695 : vector<2x16xf32>
    %697 = math.exp %696 : vector<2x16xf32>
    %cst_191 = arith.constant 1.000000e+00 : f32
    %698 = vector.broadcast %cst_191 : f32 to vector<2x16xf32>
    %699 = arith.addf %698, %697 : vector<2x16xf32>
    %700 = arith.divf %698, %699 : vector<2x16xf32>
    %701 = arith.mulf %692, %634 : vector<2x16xf32>
    %702 = arith.mulf %686, %694 : vector<2x16xf32>
    %703 = arith.addf %701, %702 : vector<2x16xf32>
    %704 = math.tanh %703 : vector<2x16xf32>
    %705 = arith.mulf %700, %704 : vector<2x16xf32>
    %c2_i32_192 = arith.constant 2 : i32
    %706 = arith.muli %c1_i32_178, %c2_i32_192 : i32
    %707 = arith.index_cast %706 : i32 to index
    %c0_193 = arith.constant 0 : index
    %708 = vector.load %arg15[%707, %c0_193] : memref<16x32xf32, #tpu.memory_space<vmem>>, vector<2x16xf32>
    tpu.vector_store %arg15[%707, %c0_193], %680 {strides = array<i32>} : memref<16x32xf32, #tpu.memory_space<vmem>>, vector<2x16xf32>,
    %c2_i32_194 = arith.constant 2 : i32
    %709 = arith.muli %643, %c2_i32_194 : i32
    %710 = arith.index_cast %709 : i32 to index
    %c16_195 = arith.constant 16 : index
    %711 = vector.load %arg15[%710, %c16_195] : memref<16x32xf32, #tpu.memory_space<vmem>>, vector<2x16xf32>
    tpu.vector_store %arg15[%710, %c16_195], %705 {strides = array<i32>} : memref<16x32xf32, #tpu.memory_space<vmem>>, vector<2x16xf32>,
    %c2_i32_196 = arith.constant 2 : i32
    %c7_i32_197 = arith.constant 7 : i32
    %712 = arith.subi %c7_i32_197, %c2_i32_196 : i32
    %c2_i32_198 = arith.constant 2 : i32
    %713 = arith.muli %c2_i32_196, %c2_i32_198 : i32
    %714 = arith.index_cast %713 : i32 to index
    %c0_199 = arith.constant 0 : index
    %715 = vector.load %arg16[%714, %c0_199] : memref<16x128xf32, #tpu.memory_space<vmem>>, vector<2x64xf32>
    %716 = arith.truncf %680 : vector<2x16xf32> to vector<2x16xbf16>
    %cst_200 = arith.constant dense<0.000000e+00> : vector<2x64xf32>
    %717 = tpu.matmul %716, %564, %cst_200 {dimension_numbers = #tpu.dot_dimension_numbers<[1], [0], [0], [1], [0, 0, 1, 1], [], []>} : vector<2x16xbf16>, vector<16x64xbf16>, vector<2x64xf32> -> vector<2x64xf32>
    %718 = arith.addf %715, %717 : vector<2x64xf32>
    %c2_i32_201 = arith.constant 2 : i32
    %719 = arith.muli %712, %c2_i32_201 : i32
    %720 = arith.index_cast %719 : i32 to index
    %c64_202 = arith.constant 64 : index
    %721 = vector.load %arg16[%720, %c64_202] : memref<16x128xf32, #tpu.memory_space<vmem>>, vector<2x64xf32>
    %722 = arith.truncf %705 : vector<2x16xf32> to vector<2x16xbf16>
    %cst_203 = arith.constant dense<0.000000e+00> : vector<2x64xf32>
    %723 = tpu.matmul %722, %565, %cst_203 {dimension_numbers = #tpu.dot_dimension_numbers<[1], [0], [0], [1], [0, 0, 1, 1], [], []>} : vector<2x16xbf16>, vector<16x64xbf16>, vector<2x64xf32> -> vector<2x64xf32>
    %724 = arith.addf %721, %723 : vector<2x64xf32>
    %725 = vector.extract_strided_slice %718 {offsets = [0, 0], sizes = [2, 16], strides = [1, 1]} : vector<2x64xf32> to vector<2x16xf32>
    %726 = arith.negf %725 : vector<2x16xf32>
    %727 = math.exp %726 : vector<2x16xf32>
    %cst_204 = arith.constant 1.000000e+00 : f32
    %728 = vector.broadcast %cst_204 : f32 to vector<2x16xf32>
    %729 = arith.addf %728, %727 : vector<2x16xf32>
    %730 = arith.divf %728, %729 : vector<2x16xf32>
    %731 = vector.extract_strided_slice %718 {offsets = [0, 16], sizes = [2, 16], strides = [1, 1]} : vector<2x64xf32> to vector<2x16xf32>
    %732 = arith.negf %731 : vector<2x16xf32>
    %733 = math.exp %732 : vector<2x16xf32>
    %cst_205 = arith.constant 1.000000e+00 : f32
    %734 = vector.broadcast %cst_205 : f32 to vector<2x16xf32>
    %735 = arith.addf %734, %733 : vector<2x16xf32>
    %736 = arith.divf %734, %735 : vector<2x16xf32>
    %737 = vector.extract_strided_slice %718 {offsets = [0, 32], sizes = [2, 16], strides = [1, 1]} : vector<2x64xf32> to vector<2x16xf32>
    %738 = math.tanh %737 : vector<2x16xf32>
    %739 = vector.extract_strided_slice %718 {offsets = [0, 48], sizes = [2, 16], strides = [1, 1]} : vector<2x64xf32> to vector<2x16xf32>
    %740 = arith.negf %739 : vector<2x16xf32>
    %741 = math.exp %740 : vector<2x16xf32>
    %cst_206 = arith.constant 1.000000e+00 : f32
    %742 = vector.broadcast %cst_206 : f32 to vector<2x16xf32>
    %743 = arith.addf %742, %741 : vector<2x16xf32>
    %744 = arith.divf %742, %743 : vector<2x16xf32>
    %745 = arith.mulf %736, %678 : vector<2x16xf32>
    %746 = arith.mulf %730, %738 : vector<2x16xf32>
    %747 = arith.addf %745, %746 : vector<2x16xf32>
    %748 = math.tanh %747 : vector<2x16xf32>
    %749 = arith.mulf %744, %748 : vector<2x16xf32>
    %750 = vector.extract_strided_slice %724 {offsets = [0, 0], sizes = [2, 16], strides = [1, 1]} : vector<2x64xf32> to vector<2x16xf32>
    %751 = arith.negf %750 : vector<2x16xf32>
    %752 = math.exp %751 : vector<2x16xf32>
    %cst_207 = arith.constant 1.000000e+00 : f32
    %753 = vector.broadcast %cst_207 : f32 to vector<2x16xf32>
    %754 = arith.addf %753, %752 : vector<2x16xf32>
    %755 = arith.divf %753, %754 : vector<2x16xf32>
    %756 = vector.extract_strided_slice %724 {offsets = [0, 16], sizes = [2, 16], strides = [1, 1]} : vector<2x64xf32> to vector<2x16xf32>
    %757 = arith.negf %756 : vector<2x16xf32>
    %758 = math.exp %757 : vector<2x16xf32>
    %cst_208 = arith.constant 1.000000e+00 : f32
    %759 = vector.broadcast %cst_208 : f32 to vector<2x16xf32>
    %760 = arith.addf %759, %758 : vector<2x16xf32>
    %761 = arith.divf %759, %760 : vector<2x16xf32>
    %762 = vector.extract_strided_slice %724 {offsets = [0, 32], sizes = [2, 16], strides = [1, 1]} : vector<2x64xf32> to vector<2x16xf32>
    %763 = math.tanh %762 : vector<2x16xf32>
    %764 = vector.extract_strided_slice %724 {offsets = [0, 48], sizes = [2, 16], strides = [1, 1]} : vector<2x64xf32> to vector<2x16xf32>
    %765 = arith.negf %764 : vector<2x16xf32>
    %766 = math.exp %765 : vector<2x16xf32>
    %cst_209 = arith.constant 1.000000e+00 : f32
    %767 = vector.broadcast %cst_209 : f32 to vector<2x16xf32>
    %768 = arith.addf %767, %766 : vector<2x16xf32>
    %769 = arith.divf %767, %768 : vector<2x16xf32>
    %770 = arith.mulf %761, %703 : vector<2x16xf32>
    %771 = arith.mulf %755, %763 : vector<2x16xf32>
    %772 = arith.addf %770, %771 : vector<2x16xf32>
    %773 = math.tanh %772 : vector<2x16xf32>
    %774 = arith.mulf %769, %773 : vector<2x16xf32>
    %c2_i32_210 = arith.constant 2 : i32
    %775 = arith.muli %c2_i32_196, %c2_i32_210 : i32
    %776 = arith.index_cast %775 : i32 to index
    %c0_211 = arith.constant 0 : index
    %777 = vector.load %arg15[%776, %c0_211] : memref<16x32xf32, #tpu.memory_space<vmem>>, vector<2x16xf32>
    tpu.vector_store %arg15[%776, %c0_211], %749 {strides = array<i32>} : memref<16x32xf32, #tpu.memory_space<vmem>>, vector<2x16xf32>,
    %c2_i32_212 = arith.constant 2 : i32
    %778 = arith.muli %712, %c2_i32_212 : i32
    %779 = arith.index_cast %778 : i32 to index
    %c16_213 = arith.constant 16 : index
    %780 = vector.load %arg15[%779, %c16_213] : memref<16x32xf32, #tpu.memory_space<vmem>>, vector<2x16xf32>
    tpu.vector_store %arg15[%779, %c16_213], %774 {strides = array<i32>} : memref<16x32xf32, #tpu.memory_space<vmem>>, vector<2x16xf32>,
    %c3_i32_214 = arith.constant 3 : i32
    %c7_i32_215 = arith.constant 7 : i32
    %781 = arith.subi %c7_i32_215, %c3_i32_214 : i32
    %c2_i32_216 = arith.constant 2 : i32
    %782 = arith.muli %c3_i32_214, %c2_i32_216 : i32
    %783 = arith.index_cast %782 : i32 to index
    %c0_217 = arith.constant 0 : index
    %784 = vector.load %arg16[%783, %c0_217] : memref<16x128xf32, #tpu.memory_space<vmem>>, vector<2x64xf32>
    %785 = arith.truncf %749 : vector<2x16xf32> to vector<2x16xbf16>
    %cst_218 = arith.constant dense<0.000000e+00> : vector<2x64xf32>
    %786 = tpu.matmul %785, %564, %cst_218 {dimension_numbers = #tpu.dot_dimension_numbers<[1], [0], [0], [1], [0, 0, 1, 1], [], []>} : vector<2x16xbf16>, vector<16x64xbf16>, vector<2x64xf32> -> vector<2x64xf32>
    %787 = arith.addf %784, %786 : vector<2x64xf32>
    %c2_i32_219 = arith.constant 2 : i32
    %788 = arith.muli %781, %c2_i32_219 : i32
    %789 = arith.index_cast %788 : i32 to index
    %c64_220 = arith.constant 64 : index
    %790 = vector.load %arg16[%789, %c64_220] : memref<16x128xf32, #tpu.memory_space<vmem>>, vector<2x64xf32>
    %791 = arith.truncf %774 : vector<2x16xf32> to vector<2x16xbf16>
    %cst_221 = arith.constant dense<0.000000e+00> : vector<2x64xf32>
    %792 = tpu.matmul %791, %565, %cst_221 {dimension_numbers = #tpu.dot_dimension_numbers<[1], [0], [0], [1], [0, 0, 1, 1], [], []>} : vector<2x16xbf16>, vector<16x64xbf16>, vector<2x64xf32> -> vector<2x64xf32>
    %793 = arith.addf %790, %792 : vector<2x64xf32>
    %794 = vector.extract_strided_slice %787 {offsets = [0, 0], sizes = [2, 16], strides = [1, 1]} : vector<2x64xf32> to vector<2x16xf32>
    %795 = arith.negf %794 : vector<2x16xf32>
    %796 = math.exp %795 : vector<2x16xf32>
    %cst_222 = arith.constant 1.000000e+00 : f32
    %797 = vector.broadcast %cst_222 : f32 to vector<2x16xf32>
    %798 = arith.addf %797, %796 : vector<2x16xf32>
    %799 = arith.divf %797, %798 : vector<2x16xf32>
    %800 = vector.extract_strided_slice %787 {offsets = [0, 16], sizes = [2, 16], strides = [1, 1]} : vector<2x64xf32> to vector<2x16xf32>
    %801 = arith.negf %800 : vector<2x16xf32>
    %802 = math.exp %801 : vector<2x16xf32>
    %cst_223 = arith.constant 1.000000e+00 : f32
    %803 = vector.broadcast %cst_223 : f32 to vector<2x16xf32>
    %804 = arith.addf %803, %802 : vector<2x16xf32>
    %805 = arith.divf %803, %804 : vector<2x16xf32>
    %806 = vector.extract_strided_slice %787 {offsets = [0, 32], sizes = [2, 16], strides = [1, 1]} : vector<2x64xf32> to vector<2x16xf32>
    %807 = math.tanh %806 : vector<2x16xf32>
    %808 = vector.extract_strided_slice %787 {offsets = [0, 48], sizes = [2, 16], strides = [1, 1]} : vector<2x64xf32> to vector<2x16xf32>
    %809 = arith.negf %808 : vector<2x16xf32>
    %810 = math.exp %809 : vector<2x16xf32>
    %cst_224 = arith.constant 1.000000e+00 : f32
    %811 = vector.broadcast %cst_224 : f32 to vector<2x16xf32>
    %812 = arith.addf %811, %810 : vector<2x16xf32>
    %813 = arith.divf %811, %812 : vector<2x16xf32>
    %814 = arith.mulf %805, %747 : vector<2x16xf32>
    %815 = arith.mulf %799, %807 : vector<2x16xf32>
    %816 = arith.addf %814, %815 : vector<2x16xf32>
    %817 = math.tanh %816 : vector<2x16xf32>
    %818 = arith.mulf %813, %817 : vector<2x16xf32>
    %819 = vector.extract_strided_slice %793 {offsets = [0, 0], sizes = [2, 16], strides = [1, 1]} : vector<2x64xf32> to vector<2x16xf32>
    %820 = arith.negf %819 : vector<2x16xf32>
    %821 = math.exp %820 : vector<2x16xf32>
    %cst_225 = arith.constant 1.000000e+00 : f32
    %822 = vector.broadcast %cst_225 : f32 to vector<2x16xf32>
    %823 = arith.addf %822, %821 : vector<2x16xf32>
    %824 = arith.divf %822, %823 : vector<2x16xf32>
    %825 = vector.extract_strided_slice %793 {offsets = [0, 16], sizes = [2, 16], strides = [1, 1]} : vector<2x64xf32> to vector<2x16xf32>
    %826 = arith.negf %825 : vector<2x16xf32>
    %827 = math.exp %826 : vector<2x16xf32>
    %cst_226 = arith.constant 1.000000e+00 : f32
    %828 = vector.broadcast %cst_226 : f32 to vector<2x16xf32>
    %829 = arith.addf %828, %827 : vector<2x16xf32>
    %830 = arith.divf %828, %829 : vector<2x16xf32>
    %831 = vector.extract_strided_slice %793 {offsets = [0, 32], sizes = [2, 16], strides = [1, 1]} : vector<2x64xf32> to vector<2x16xf32>
    %832 = math.tanh %831 : vector<2x16xf32>
    %833 = vector.extract_strided_slice %793 {offsets = [0, 48], sizes = [2, 16], strides = [1, 1]} : vector<2x64xf32> to vector<2x16xf32>
    %834 = arith.negf %833 : vector<2x16xf32>
    %835 = math.exp %834 : vector<2x16xf32>
    %cst_227 = arith.constant 1.000000e+00 : f32
    %836 = vector.broadcast %cst_227 : f32 to vector<2x16xf32>
    %837 = arith.addf %836, %835 : vector<2x16xf32>
    %838 = arith.divf %836, %837 : vector<2x16xf32>
    %839 = arith.mulf %830, %772 : vector<2x16xf32>
    %840 = arith.mulf %824, %832 : vector<2x16xf32>
    %841 = arith.addf %839, %840 : vector<2x16xf32>
    %842 = math.tanh %841 : vector<2x16xf32>
    %843 = arith.mulf %838, %842 : vector<2x16xf32>
    %c2_i32_228 = arith.constant 2 : i32
    %844 = arith.muli %c3_i32_214, %c2_i32_228 : i32
    %845 = arith.index_cast %844 : i32 to index
    %c0_229 = arith.constant 0 : index
    %846 = vector.load %arg15[%845, %c0_229] : memref<16x32xf32, #tpu.memory_space<vmem>>, vector<2x16xf32>
    tpu.vector_store %arg15[%845, %c0_229], %818 {strides = array<i32>} : memref<16x32xf32, #tpu.memory_space<vmem>>, vector<2x16xf32>,
    %c2_i32_230 = arith.constant 2 : i32
    %847 = arith.muli %781, %c2_i32_230 : i32
    %848 = arith.index_cast %847 : i32 to index
    %c16_231 = arith.constant 16 : index
    %849 = vector.load %arg15[%848, %c16_231] : memref<16x32xf32, #tpu.memory_space<vmem>>, vector<2x16xf32>
    tpu.vector_store %arg15[%848, %c16_231], %843 {strides = array<i32>} : memref<16x32xf32, #tpu.memory_space<vmem>>, vector<2x16xf32>,
    %c4_i32_232 = arith.constant 4 : i32
    %c7_i32_233 = arith.constant 7 : i32
    %850 = arith.subi %c7_i32_233, %c4_i32_232 : i32
    %c2_i32_234 = arith.constant 2 : i32
    %851 = arith.muli %c4_i32_232, %c2_i32_234 : i32
    %852 = arith.index_cast %851 : i32 to index
    %c0_235 = arith.constant 0 : index
    %853 = vector.load %arg16[%852, %c0_235] : memref<16x128xf32, #tpu.memory_space<vmem>>, vector<2x64xf32>
    %854 = arith.truncf %818 : vector<2x16xf32> to vector<2x16xbf16>
    %cst_236 = arith.constant dense<0.000000e+00> : vector<2x64xf32>
    %855 = tpu.matmul %854, %564, %cst_236 {dimension_numbers = #tpu.dot_dimension_numbers<[1], [0], [0], [1], [0, 0, 1, 1], [], []>} : vector<2x16xbf16>, vector<16x64xbf16>, vector<2x64xf32> -> vector<2x64xf32>
    %856 = arith.addf %853, %855 : vector<2x64xf32>
    %c2_i32_237 = arith.constant 2 : i32
    %857 = arith.muli %850, %c2_i32_237 : i32
    %858 = arith.index_cast %857 : i32 to index
    %c64_238 = arith.constant 64 : index
    %859 = vector.load %arg16[%858, %c64_238] : memref<16x128xf32, #tpu.memory_space<vmem>>, vector<2x64xf32>
    %860 = arith.truncf %843 : vector<2x16xf32> to vector<2x16xbf16>
    %cst_239 = arith.constant dense<0.000000e+00> : vector<2x64xf32>
    %861 = tpu.matmul %860, %565, %cst_239 {dimension_numbers = #tpu.dot_dimension_numbers<[1], [0], [0], [1], [0, 0, 1, 1], [], []>} : vector<2x16xbf16>, vector<16x64xbf16>, vector<2x64xf32> -> vector<2x64xf32>
    %862 = arith.addf %859, %861 : vector<2x64xf32>
    %863 = vector.extract_strided_slice %856 {offsets = [0, 0], sizes = [2, 16], strides = [1, 1]} : vector<2x64xf32> to vector<2x16xf32>
    %864 = arith.negf %863 : vector<2x16xf32>
    %865 = math.exp %864 : vector<2x16xf32>
    %cst_240 = arith.constant 1.000000e+00 : f32
    %866 = vector.broadcast %cst_240 : f32 to vector<2x16xf32>
    %867 = arith.addf %866, %865 : vector<2x16xf32>
    %868 = arith.divf %866, %867 : vector<2x16xf32>
    %869 = vector.extract_strided_slice %856 {offsets = [0, 16], sizes = [2, 16], strides = [1, 1]} : vector<2x64xf32> to vector<2x16xf32>
    %870 = arith.negf %869 : vector<2x16xf32>
    %871 = math.exp %870 : vector<2x16xf32>
    %cst_241 = arith.constant 1.000000e+00 : f32
    %872 = vector.broadcast %cst_241 : f32 to vector<2x16xf32>
    %873 = arith.addf %872, %871 : vector<2x16xf32>
    %874 = arith.divf %872, %873 : vector<2x16xf32>
    %875 = vector.extract_strided_slice %856 {offsets = [0, 32], sizes = [2, 16], strides = [1, 1]} : vector<2x64xf32> to vector<2x16xf32>
    %876 = math.tanh %875 : vector<2x16xf32>
    %877 = vector.extract_strided_slice %856 {offsets = [0, 48], sizes = [2, 16], strides = [1, 1]} : vector<2x64xf32> to vector<2x16xf32>
    %878 = arith.negf %877 : vector<2x16xf32>
    %879 = math.exp %878 : vector<2x16xf32>
    %cst_242 = arith.constant 1.000000e+00 : f32
    %880 = vector.broadcast %cst_242 : f32 to vector<2x16xf32>
    %881 = arith.addf %880, %879 : vector<2x16xf32>
    %882 = arith.divf %880, %881 : vector<2x16xf32>
    %883 = arith.mulf %874, %816 : vector<2x16xf32>
    %884 = arith.mulf %868, %876 : vector<2x16xf32>
    %885 = arith.addf %883, %884 : vector<2x16xf32>
    %886 = math.tanh %885 : vector<2x16xf32>
    %887 = arith.mulf %882, %886 : vector<2x16xf32>
    %888 = vector.extract_strided_slice %862 {offsets = [0, 0], sizes = [2, 16], strides = [1, 1]} : vector<2x64xf32> to vector<2x16xf32>
    %889 = arith.negf %888 : vector<2x16xf32>
    %890 = math.exp %889 : vector<2x16xf32>
    %cst_243 = arith.constant 1.000000e+00 : f32
    %891 = vector.broadcast %cst_243 : f32 to vector<2x16xf32>
    %892 = arith.addf %891, %890 : vector<2x16xf32>
    %893 = arith.divf %891, %892 : vector<2x16xf32>
    %894 = vector.extract_strided_slice %862 {offsets = [0, 16], sizes = [2, 16], strides = [1, 1]} : vector<2x64xf32> to vector<2x16xf32>
    %895 = arith.negf %894 : vector<2x16xf32>
    %896 = math.exp %895 : vector<2x16xf32>
    %cst_244 = arith.constant 1.000000e+00 : f32
    %897 = vector.broadcast %cst_244 : f32 to vector<2x16xf32>
    %898 = arith.addf %897, %896 : vector<2x16xf32>
    %899 = arith.divf %897, %898 : vector<2x16xf32>
    %900 = vector.extract_strided_slice %862 {offsets = [0, 32], sizes = [2, 16], strides = [1, 1]} : vector<2x64xf32> to vector<2x16xf32>
    %901 = math.tanh %900 : vector<2x16xf32>
    %902 = vector.extract_strided_slice %862 {offsets = [0, 48], sizes = [2, 16], strides = [1, 1]} : vector<2x64xf32> to vector<2x16xf32>
    %903 = arith.negf %902 : vector<2x16xf32>
    %904 = math.exp %903 : vector<2x16xf32>
    %cst_245 = arith.constant 1.000000e+00 : f32
    %905 = vector.broadcast %cst_245 : f32 to vector<2x16xf32>
    %906 = arith.addf %905, %904 : vector<2x16xf32>
    %907 = arith.divf %905, %906 : vector<2x16xf32>
    %908 = arith.mulf %899, %841 : vector<2x16xf32>
    %909 = arith.mulf %893, %901 : vector<2x16xf32>
    %910 = arith.addf %908, %909 : vector<2x16xf32>
    %911 = math.tanh %910 : vector<2x16xf32>
    %912 = arith.mulf %907, %911 : vector<2x16xf32>
    %c2_i32_246 = arith.constant 2 : i32
    %913 = arith.muli %c4_i32_232, %c2_i32_246 : i32
    %914 = arith.index_cast %913 : i32 to index
    %c0_247 = arith.constant 0 : index
    %915 = vector.load %arg15[%914, %c0_247] : memref<16x32xf32, #tpu.memory_space<vmem>>, vector<2x16xf32>
    tpu.vector_store %arg15[%914, %c0_247], %887 {strides = array<i32>} : memref<16x32xf32, #tpu.memory_space<vmem>>, vector<2x16xf32>,
    %c2_i32_248 = arith.constant 2 : i32
    %916 = arith.muli %850, %c2_i32_248 : i32
    %917 = arith.index_cast %916 : i32 to index
    %c16_249 = arith.constant 16 : index
    %918 = vector.load %arg15[%917, %c16_249] : memref<16x32xf32, #tpu.memory_space<vmem>>, vector<2x16xf32>
    tpu.vector_store %arg15[%917, %c16_249], %912 {strides = array<i32>} : memref<16x32xf32, #tpu.memory_space<vmem>>, vector<2x16xf32>,
    %c5_i32_250 = arith.constant 5 : i32
    %c7_i32_251 = arith.constant 7 : i32
    %919 = arith.subi %c7_i32_251, %c5_i32_250 : i32
    %c2_i32_252 = arith.constant 2 : i32
    %920 = arith.muli %c5_i32_250, %c2_i32_252 : i32
    %921 = arith.index_cast %920 : i32 to index
    %c0_253 = arith.constant 0 : index
    %922 = vector.load %arg16[%921, %c0_253] : memref<16x128xf32, #tpu.memory_space<vmem>>, vector<2x64xf32>
    %923 = arith.truncf %887 : vector<2x16xf32> to vector<2x16xbf16>
    %cst_254 = arith.constant dense<0.000000e+00> : vector<2x64xf32>
    %924 = tpu.matmul %923, %564, %cst_254 {dimension_numbers = #tpu.dot_dimension_numbers<[1], [0], [0], [1], [0, 0, 1, 1], [], []>} : vector<2x16xbf16>, vector<16x64xbf16>, vector<2x64xf32> -> vector<2x64xf32>
    %925 = arith.addf %922, %924 : vector<2x64xf32>
    %c2_i32_255 = arith.constant 2 : i32
    %926 = arith.muli %919, %c2_i32_255 : i32
    %927 = arith.index_cast %926 : i32 to index
    %c64_256 = arith.constant 64 : index
    %928 = vector.load %arg16[%927, %c64_256] : memref<16x128xf32, #tpu.memory_space<vmem>>, vector<2x64xf32>
    %929 = arith.truncf %912 : vector<2x16xf32> to vector<2x16xbf16>
    %cst_257 = arith.constant dense<0.000000e+00> : vector<2x64xf32>
    %930 = tpu.matmul %929, %565, %cst_257 {dimension_numbers = #tpu.dot_dimension_numbers<[1], [0], [0], [1], [0, 0, 1, 1], [], []>} : vector<2x16xbf16>, vector<16x64xbf16>, vector<2x64xf32> -> vector<2x64xf32>
    %931 = arith.addf %928, %930 : vector<2x64xf32>
    %932 = vector.extract_strided_slice %925 {offsets = [0, 0], sizes = [2, 16], strides = [1, 1]} : vector<2x64xf32> to vector<2x16xf32>
    %933 = arith.negf %932 : vector<2x16xf32>
    %934 = math.exp %933 : vector<2x16xf32>
    %cst_258 = arith.constant 1.000000e+00 : f32
    %935 = vector.broadcast %cst_258 : f32 to vector<2x16xf32>
    %936 = arith.addf %935, %934 : vector<2x16xf32>
    %937 = arith.divf %935, %936 : vector<2x16xf32>
    %938 = vector.extract_strided_slice %925 {offsets = [0, 16], sizes = [2, 16], strides = [1, 1]} : vector<2x64xf32> to vector<2x16xf32>
    %939 = arith.negf %938 : vector<2x16xf32>
    %940 = math.exp %939 : vector<2x16xf32>
    %cst_259 = arith.constant 1.000000e+00 : f32
    %941 = vector.broadcast %cst_259 : f32 to vector<2x16xf32>
    %942 = arith.addf %941, %940 : vector<2x16xf32>
    %943 = arith.divf %941, %942 : vector<2x16xf32>
    %944 = vector.extract_strided_slice %925 {offsets = [0, 32], sizes = [2, 16], strides = [1, 1]} : vector<2x64xf32> to vector<2x16xf32>
    %945 = math.tanh %944 : vector<2x16xf32>
    %946 = vector.extract_strided_slice %925 {offsets = [0, 48], sizes = [2, 16], strides = [1, 1]} : vector<2x64xf32> to vector<2x16xf32>
    %947 = arith.negf %946 : vector<2x16xf32>
    %948 = math.exp %947 : vector<2x16xf32>
    %cst_260 = arith.constant 1.000000e+00 : f32
    %949 = vector.broadcast %cst_260 : f32 to vector<2x16xf32>
    %950 = arith.addf %949, %948 : vector<2x16xf32>
    %951 = arith.divf %949, %950 : vector<2x16xf32>
    %952 = arith.mulf %943, %885 : vector<2x16xf32>
    %953 = arith.mulf %937, %945 : vector<2x16xf32>
    %954 = arith.addf %952, %953 : vector<2x16xf32>
    %955 = math.tanh %954 : vector<2x16xf32>
    %956 = arith.mulf %951, %955 : vector<2x16xf32>
    %957 = vector.extract_strided_slice %931 {offsets = [0, 0], sizes = [2, 16], strides = [1, 1]} : vector<2x64xf32> to vector<2x16xf32>
    %958 = arith.negf %957 : vector<2x16xf32>
    %959 = math.exp %958 : vector<2x16xf32>
    %cst_261 = arith.constant 1.000000e+00 : f32
    %960 = vector.broadcast %cst_261 : f32 to vector<2x16xf32>
    %961 = arith.addf %960, %959 : vector<2x16xf32>
    %962 = arith.divf %960, %961 : vector<2x16xf32>
    %963 = vector.extract_strided_slice %931 {offsets = [0, 16], sizes = [2, 16], strides = [1, 1]} : vector<2x64xf32> to vector<2x16xf32>
    %964 = arith.negf %963 : vector<2x16xf32>
    %965 = math.exp %964 : vector<2x16xf32>
    %cst_262 = arith.constant 1.000000e+00 : f32
    %966 = vector.broadcast %cst_262 : f32 to vector<2x16xf32>
    %967 = arith.addf %966, %965 : vector<2x16xf32>
    %968 = arith.divf %966, %967 : vector<2x16xf32>
    %969 = vector.extract_strided_slice %931 {offsets = [0, 32], sizes = [2, 16], strides = [1, 1]} : vector<2x64xf32> to vector<2x16xf32>
    %970 = math.tanh %969 : vector<2x16xf32>
    %971 = vector.extract_strided_slice %931 {offsets = [0, 48], sizes = [2, 16], strides = [1, 1]} : vector<2x64xf32> to vector<2x16xf32>
    %972 = arith.negf %971 : vector<2x16xf32>
    %973 = math.exp %972 : vector<2x16xf32>
    %cst_263 = arith.constant 1.000000e+00 : f32
    %974 = vector.broadcast %cst_263 : f32 to vector<2x16xf32>
    %975 = arith.addf %974, %973 : vector<2x16xf32>
    %976 = arith.divf %974, %975 : vector<2x16xf32>
    %977 = arith.mulf %968, %910 : vector<2x16xf32>
    %978 = arith.mulf %962, %970 : vector<2x16xf32>
    %979 = arith.addf %977, %978 : vector<2x16xf32>
    %980 = math.tanh %979 : vector<2x16xf32>
    %981 = arith.mulf %976, %980 : vector<2x16xf32>
    %c2_i32_264 = arith.constant 2 : i32
    %982 = arith.muli %c5_i32_250, %c2_i32_264 : i32
    %983 = arith.index_cast %982 : i32 to index
    %c0_265 = arith.constant 0 : index
    %984 = vector.load %arg15[%983, %c0_265] : memref<16x32xf32, #tpu.memory_space<vmem>>, vector<2x16xf32>
    tpu.vector_store %arg15[%983, %c0_265], %956 {strides = array<i32>} : memref<16x32xf32, #tpu.memory_space<vmem>>, vector<2x16xf32>,
    %c2_i32_266 = arith.constant 2 : i32
    %985 = arith.muli %919, %c2_i32_266 : i32
    %986 = arith.index_cast %985 : i32 to index
    %c16_267 = arith.constant 16 : index
    %987 = vector.load %arg15[%986, %c16_267] : memref<16x32xf32, #tpu.memory_space<vmem>>, vector<2x16xf32>
    tpu.vector_store %arg15[%986, %c16_267], %981 {strides = array<i32>} : memref<16x32xf32, #tpu.memory_space<vmem>>, vector<2x16xf32>,
    %c6_i32_268 = arith.constant 6 : i32
    %c7_i32_269 = arith.constant 7 : i32
    %988 = arith.subi %c7_i32_269, %c6_i32_268 : i32
    %c2_i32_270 = arith.constant 2 : i32
    %989 = arith.muli %c6_i32_268, %c2_i32_270 : i32
    %990 = arith.index_cast %989 : i32 to index
    %c0_271 = arith.constant 0 : index
    %991 = vector.load %arg16[%990, %c0_271] : memref<16x128xf32, #tpu.memory_space<vmem>>, vector<2x64xf32>
    %992 = arith.truncf %956 : vector<2x16xf32> to vector<2x16xbf16>
    %cst_272 = arith.constant dense<0.000000e+00> : vector<2x64xf32>
    %993 = tpu.matmul %992, %564, %cst_272 {dimension_numbers = #tpu.dot_dimension_numbers<[1], [0], [0], [1], [0, 0, 1, 1], [], []>} : vector<2x16xbf16>, vector<16x64xbf16>, vector<2x64xf32> -> vector<2x64xf32>
    %994 = arith.addf %991, %993 : vector<2x64xf32>
    %c2_i32_273 = arith.constant 2 : i32
    %995 = arith.muli %988, %c2_i32_273 : i32
    %996 = arith.index_cast %995 : i32 to index
    %c64_274 = arith.constant 64 : index
    %997 = vector.load %arg16[%996, %c64_274] : memref<16x128xf32, #tpu.memory_space<vmem>>, vector<2x64xf32>
    %998 = arith.truncf %981 : vector<2x16xf32> to vector<2x16xbf16>
    %cst_275 = arith.constant dense<0.000000e+00> : vector<2x64xf32>
    %999 = tpu.matmul %998, %565, %cst_275 {dimension_numbers = #tpu.dot_dimension_numbers<[1], [0], [0], [1], [0, 0, 1, 1], [], []>} : vector<2x16xbf16>, vector<16x64xbf16>, vector<2x64xf32> -> vector<2x64xf32>
    %1000 = arith.addf %997, %999 : vector<2x64xf32>
    %1001 = vector.extract_strided_slice %994 {offsets = [0, 0], sizes = [2, 16], strides = [1, 1]} : vector<2x64xf32> to vector<2x16xf32>
    %1002 = arith.negf %1001 : vector<2x16xf32>
    %1003 = math.exp %1002 : vector<2x16xf32>
    %cst_276 = arith.constant 1.000000e+00 : f32
    %1004 = vector.broadcast %cst_276 : f32 to vector<2x16xf32>
    %1005 = arith.addf %1004, %1003 : vector<2x16xf32>
    %1006 = arith.divf %1004, %1005 : vector<2x16xf32>
    %1007 = vector.extract_strided_slice %994 {offsets = [0, 16], sizes = [2, 16], strides = [1, 1]} : vector<2x64xf32> to vector<2x16xf32>
    %1008 = arith.negf %1007 : vector<2x16xf32>
    %1009 = math.exp %1008 : vector<2x16xf32>
    %cst_277 = arith.constant 1.000000e+00 : f32
    %1010 = vector.broadcast %cst_277 : f32 to vector<2x16xf32>
    %1011 = arith.addf %1010, %1009 : vector<2x16xf32>
    %1012 = arith.divf %1010, %1011 : vector<2x16xf32>
    %1013 = vector.extract_strided_slice %994 {offsets = [0, 32], sizes = [2, 16], strides = [1, 1]} : vector<2x64xf32> to vector<2x16xf32>
    %1014 = math.tanh %1013 : vector<2x16xf32>
    %1015 = vector.extract_strided_slice %994 {offsets = [0, 48], sizes = [2, 16], strides = [1, 1]} : vector<2x64xf32> to vector<2x16xf32>
    %1016 = arith.negf %1015 : vector<2x16xf32>
    %1017 = math.exp %1016 : vector<2x16xf32>
    %cst_278 = arith.constant 1.000000e+00 : f32
    %1018 = vector.broadcast %cst_278 : f32 to vector<2x16xf32>
    %1019 = arith.addf %1018, %1017 : vector<2x16xf32>
    %1020 = arith.divf %1018, %1019 : vector<2x16xf32>
    %1021 = arith.mulf %1012, %954 : vector<2x16xf32>
    %1022 = arith.mulf %1006, %1014 : vector<2x16xf32>
    %1023 = arith.addf %1021, %1022 : vector<2x16xf32>
    %1024 = math.tanh %1023 : vector<2x16xf32>
    %1025 = arith.mulf %1020, %1024 : vector<2x16xf32>
    %1026 = vector.extract_strided_slice %1000 {offsets = [0, 0], sizes = [2, 16], strides = [1, 1]} : vector<2x64xf32> to vector<2x16xf32>
    %1027 = arith.negf %1026 : vector<2x16xf32>
    %1028 = math.exp %1027 : vector<2x16xf32>
    %cst_279 = arith.constant 1.000000e+00 : f32
    %1029 = vector.broadcast %cst_279 : f32 to vector<2x16xf32>
    %1030 = arith.addf %1029, %1028 : vector<2x16xf32>
    %1031 = arith.divf %1029, %1030 : vector<2x16xf32>
    %1032 = vector.extract_strided_slice %1000 {offsets = [0, 16], sizes = [2, 16], strides = [1, 1]} : vector<2x64xf32> to vector<2x16xf32>
    %1033 = arith.negf %1032 : vector<2x16xf32>
    %1034 = math.exp %1033 : vector<2x16xf32>
    %cst_280 = arith.constant 1.000000e+00 : f32
    %1035 = vector.broadcast %cst_280 : f32 to vector<2x16xf32>
    %1036 = arith.addf %1035, %1034 : vector<2x16xf32>
    %1037 = arith.divf %1035, %1036 : vector<2x16xf32>
    %1038 = vector.extract_strided_slice %1000 {offsets = [0, 32], sizes = [2, 16], strides = [1, 1]} : vector<2x64xf32> to vector<2x16xf32>
    %1039 = math.tanh %1038 : vector<2x16xf32>
    %1040 = vector.extract_strided_slice %1000 {offsets = [0, 48], sizes = [2, 16], strides = [1, 1]} : vector<2x64xf32> to vector<2x16xf32>
    %1041 = arith.negf %1040 : vector<2x16xf32>
    %1042 = math.exp %1041 : vector<2x16xf32>
    %cst_281 = arith.constant 1.000000e+00 : f32
    %1043 = vector.broadcast %cst_281 : f32 to vector<2x16xf32>
    %1044 = arith.addf %1043, %1042 : vector<2x16xf32>
    %1045 = arith.divf %1043, %1044 : vector<2x16xf32>
    %1046 = arith.mulf %1037, %979 : vector<2x16xf32>
    %1047 = arith.mulf %1031, %1039 : vector<2x16xf32>
    %1048 = arith.addf %1046, %1047 : vector<2x16xf32>
    %1049 = math.tanh %1048 : vector<2x16xf32>
    %1050 = arith.mulf %1045, %1049 : vector<2x16xf32>
    %c2_i32_282 = arith.constant 2 : i32
    %1051 = arith.muli %c6_i32_268, %c2_i32_282 : i32
    %1052 = arith.index_cast %1051 : i32 to index
    %c0_283 = arith.constant 0 : index
    %1053 = vector.load %arg15[%1052, %c0_283] : memref<16x32xf32, #tpu.memory_space<vmem>>, vector<2x16xf32>
    tpu.vector_store %arg15[%1052, %c0_283], %1025 {strides = array<i32>} : memref<16x32xf32, #tpu.memory_space<vmem>>, vector<2x16xf32>,
    %c2_i32_284 = arith.constant 2 : i32
    %1054 = arith.muli %988, %c2_i32_284 : i32
    %1055 = arith.index_cast %1054 : i32 to index
    %c16_285 = arith.constant 16 : index
    %1056 = vector.load %arg15[%1055, %c16_285] : memref<16x32xf32, #tpu.memory_space<vmem>>, vector<2x16xf32>
    tpu.vector_store %arg15[%1055, %c16_285], %1050 {strides = array<i32>} : memref<16x32xf32, #tpu.memory_space<vmem>>, vector<2x16xf32>,
    %c7_i32_286 = arith.constant 7 : i32
    %c7_i32_287 = arith.constant 7 : i32
    %1057 = arith.subi %c7_i32_287, %c7_i32_286 : i32
    %c2_i32_288 = arith.constant 2 : i32
    %1058 = arith.muli %c7_i32_286, %c2_i32_288 : i32
    %1059 = arith.index_cast %1058 : i32 to index
    %c0_289 = arith.constant 0 : index
    %1060 = vector.load %arg16[%1059, %c0_289] : memref<16x128xf32, #tpu.memory_space<vmem>>, vector<2x64xf32>
    %1061 = arith.truncf %1025 : vector<2x16xf32> to vector<2x16xbf16>
    %cst_290 = arith.constant dense<0.000000e+00> : vector<2x64xf32>
    %1062 = tpu.matmul %1061, %564, %cst_290 {dimension_numbers = #tpu.dot_dimension_numbers<[1], [0], [0], [1], [0, 0, 1, 1], [], []>} : vector<2x16xbf16>, vector<16x64xbf16>, vector<2x64xf32> -> vector<2x64xf32>
    %1063 = arith.addf %1060, %1062 : vector<2x64xf32>
    %c2_i32_291 = arith.constant 2 : i32
    %1064 = arith.muli %1057, %c2_i32_291 : i32
    %1065 = arith.index_cast %1064 : i32 to index
    %c64_292 = arith.constant 64 : index
    %1066 = vector.load %arg16[%1065, %c64_292] : memref<16x128xf32, #tpu.memory_space<vmem>>, vector<2x64xf32>
    %1067 = arith.truncf %1050 : vector<2x16xf32> to vector<2x16xbf16>
    %cst_293 = arith.constant dense<0.000000e+00> : vector<2x64xf32>
    %1068 = tpu.matmul %1067, %565, %cst_293 {dimension_numbers = #tpu.dot_dimension_numbers<[1], [0], [0], [1], [0, 0, 1, 1], [], []>} : vector<2x16xbf16>, vector<16x64xbf16>, vector<2x64xf32> -> vector<2x64xf32>
    %1069 = arith.addf %1066, %1068 : vector<2x64xf32>
    %1070 = vector.extract_strided_slice %1063 {offsets = [0, 0], sizes = [2, 16], strides = [1, 1]} : vector<2x64xf32> to vector<2x16xf32>
    %1071 = arith.negf %1070 : vector<2x16xf32>
    %1072 = math.exp %1071 : vector<2x16xf32>
    %cst_294 = arith.constant 1.000000e+00 : f32
    %1073 = vector.broadcast %cst_294 : f32 to vector<2x16xf32>
    %1074 = arith.addf %1073, %1072 : vector<2x16xf32>
    %1075 = arith.divf %1073, %1074 : vector<2x16xf32>
    %1076 = vector.extract_strided_slice %1063 {offsets = [0, 16], sizes = [2, 16], strides = [1, 1]} : vector<2x64xf32> to vector<2x16xf32>
    %1077 = arith.negf %1076 : vector<2x16xf32>
    %1078 = math.exp %1077 : vector<2x16xf32>
    %cst_295 = arith.constant 1.000000e+00 : f32
    %1079 = vector.broadcast %cst_295 : f32 to vector<2x16xf32>
    %1080 = arith.addf %1079, %1078 : vector<2x16xf32>
    %1081 = arith.divf %1079, %1080 : vector<2x16xf32>
    %1082 = vector.extract_strided_slice %1063 {offsets = [0, 32], sizes = [2, 16], strides = [1, 1]} : vector<2x64xf32> to vector<2x16xf32>
    %1083 = math.tanh %1082 : vector<2x16xf32>
    %1084 = vector.extract_strided_slice %1063 {offsets = [0, 48], sizes = [2, 16], strides = [1, 1]} : vector<2x64xf32> to vector<2x16xf32>
    %1085 = arith.negf %1084 : vector<2x16xf32>
    %1086 = math.exp %1085 : vector<2x16xf32>
    %cst_296 = arith.constant 1.000000e+00 : f32
    %1087 = vector.broadcast %cst_296 : f32 to vector<2x16xf32>
    %1088 = arith.addf %1087, %1086 : vector<2x16xf32>
    %1089 = arith.divf %1087, %1088 : vector<2x16xf32>
    %1090 = arith.mulf %1081, %1023 : vector<2x16xf32>
    %1091 = arith.mulf %1075, %1083 : vector<2x16xf32>
    %1092 = arith.addf %1090, %1091 : vector<2x16xf32>
    %1093 = math.tanh %1092 : vector<2x16xf32>
    %1094 = arith.mulf %1089, %1093 : vector<2x16xf32>
    %1095 = vector.extract_strided_slice %1069 {offsets = [0, 0], sizes = [2, 16], strides = [1, 1]} : vector<2x64xf32> to vector<2x16xf32>
    %1096 = arith.negf %1095 : vector<2x16xf32>
    %1097 = math.exp %1096 : vector<2x16xf32>
    %cst_297 = arith.constant 1.000000e+00 : f32
    %1098 = vector.broadcast %cst_297 : f32 to vector<2x16xf32>
    %1099 = arith.addf %1098, %1097 : vector<2x16xf32>
    %1100 = arith.divf %1098, %1099 : vector<2x16xf32>
    %1101 = vector.extract_strided_slice %1069 {offsets = [0, 16], sizes = [2, 16], strides = [1, 1]} : vector<2x64xf32> to vector<2x16xf32>
    %1102 = arith.negf %1101 : vector<2x16xf32>
    %1103 = math.exp %1102 : vector<2x16xf32>
    %cst_298 = arith.constant 1.000000e+00 : f32
    %1104 = vector.broadcast %cst_298 : f32 to vector<2x16xf32>
    %1105 = arith.addf %1104, %1103 : vector<2x16xf32>
    %1106 = arith.divf %1104, %1105 : vector<2x16xf32>
    %1107 = vector.extract_strided_slice %1069 {offsets = [0, 32], sizes = [2, 16], strides = [1, 1]} : vector<2x64xf32> to vector<2x16xf32>
    %1108 = math.tanh %1107 : vector<2x16xf32>
    %1109 = vector.extract_strided_slice %1069 {offsets = [0, 48], sizes = [2, 16], strides = [1, 1]} : vector<2x64xf32> to vector<2x16xf32>
    %1110 = arith.negf %1109 : vector<2x16xf32>
    %1111 = math.exp %1110 : vector<2x16xf32>
    %cst_299 = arith.constant 1.000000e+00 : f32
    %1112 = vector.broadcast %cst_299 : f32 to vector<2x16xf32>
    %1113 = arith.addf %1112, %1111 : vector<2x16xf32>
    %1114 = arith.divf %1112, %1113 : vector<2x16xf32>
    %1115 = arith.mulf %1106, %1048 : vector<2x16xf32>
    %1116 = arith.mulf %1100, %1108 : vector<2x16xf32>
    %1117 = arith.addf %1115, %1116 : vector<2x16xf32>
    %1118 = math.tanh %1117 : vector<2x16xf32>
    %1119 = arith.mulf %1114, %1118 : vector<2x16xf32>
    %c2_i32_300 = arith.constant 2 : i32
    %1120 = arith.muli %c7_i32_286, %c2_i32_300 : i32
    %1121 = arith.index_cast %1120 : i32 to index
    %c0_301 = arith.constant 0 : index
    %1122 = vector.load %arg15[%1121, %c0_301] : memref<16x32xf32, #tpu.memory_space<vmem>>, vector<2x16xf32>
    tpu.vector_store %arg15[%1121, %c0_301], %1094 {strides = array<i32>} : memref<16x32xf32, #tpu.memory_space<vmem>>, vector<2x16xf32>,
    %c2_i32_302 = arith.constant 2 : i32
    %1123 = arith.muli %1057, %c2_i32_302 : i32
    %1124 = arith.index_cast %1123 : i32 to index
    %c16_303 = arith.constant 16 : index
    %1125 = vector.load %arg15[%1124, %c16_303] : memref<16x32xf32, #tpu.memory_space<vmem>>, vector<2x16xf32>
    tpu.vector_store %arg15[%1124, %c16_303], %1119 {strides = array<i32>} : memref<16x32xf32, #tpu.memory_space<vmem>>, vector<2x16xf32>,
    %c8_i32_304 = arith.constant 8 : i32
    %c0_305 = arith.constant 0 : index
    %c0_306 = arith.constant 0 : index
    %1126 = vector.load %arg9[%c0_305, %c0_306] : memref<32x128xbf16, #tpu.memory_space<vmem>>, vector<32x128xbf16>
    %c0_307 = arith.constant 0 : index
    %c0_308 = arith.constant 0 : index
    %1127 = vector.load %arg10[%c0_307, %c0_308] : memref<16x64xbf16, #tpu.memory_space<vmem>>, vector<16x64xbf16>
    %c0_309 = arith.constant 0 : index
    %c0_310 = arith.constant 0 : index
    %1128 = vector.load %arg11[%c0_309, %c0_310] : memref<16x64xbf16, #tpu.memory_space<vmem>>, vector<16x64xbf16>
    %c0_311 = arith.constant 0 : index
    %c0_312 = arith.constant 0 : index
    %1129 = vector.load %arg12[%c0_311, %c0_312] : memref<1x128xf32, #tpu.memory_space<vmem>>, vector<1x128xf32>
    %c0_313 = arith.constant 0 : index
    %c0_314 = arith.constant 0 : index
    %1130 = vector.load %arg15[%c0_313, %c0_314] : memref<16x32xf32, #tpu.memory_space<vmem>>, vector<16x32xf32>
    %1131 = arith.truncf %1130 : vector<16x32xf32> to vector<16x32xbf16>
    %cst_315 = arith.constant dense<0.000000e+00> : vector<16x128xf32>
    %1132 = tpu.matmul %1131, %1126, %cst_315 {dimension_numbers = #tpu.dot_dimension_numbers<[1], [0], [0], [1], [0, 0, 1, 1], [], []>} : vector<16x32xbf16>, vector<32x128xbf16>, vector<16x128xf32> -> vector<16x128xf32>
    %1133 = vector.broadcast %1129 : vector<1x128xf32> to vector<16x128xf32>
    %1134 = arith.addf %1132, %1133 : vector<16x128xf32>
    %c0_316 = arith.constant 0 : index
    %c0_317 = arith.constant 0 : index
    %1135 = vector.load %arg16[%c0_316, %c0_317] : memref<16x128xf32, #tpu.memory_space<vmem>>, vector<16x128xf32>
    tpu.vector_store %arg16[%c0_316, %c0_317], %1134 {strides = array<i32>} : memref<16x128xf32, #tpu.memory_space<vmem>>, vector<16x128xf32>,
    %cst_318 = arith.constant 0.000000e+00 : f32
    %1136 = vector.broadcast %cst_318 : f32 to vector<2x16xf32>
    %c0_i32_319 = arith.constant 0 : i32
    %c7_i32_320 = arith.constant 7 : i32
    %1137 = arith.subi %c7_i32_320, %c0_i32_319 : i32
    %c2_i32_321 = arith.constant 2 : i32
    %1138 = arith.muli %c0_i32_319, %c2_i32_321 : i32
    %1139 = arith.index_cast %1138 : i32 to index
    %c0_322 = arith.constant 0 : index
    %1140 = vector.load %arg16[%1139, %c0_322] : memref<16x128xf32, #tpu.memory_space<vmem>>, vector<2x64xf32>
    %1141 = arith.truncf %1136 : vector<2x16xf32> to vector<2x16xbf16>
    %cst_323 = arith.constant dense<0.000000e+00> : vector<2x64xf32>
    %1142 = tpu.matmul %1141, %1127, %cst_323 {dimension_numbers = #tpu.dot_dimension_numbers<[1], [0], [0], [1], [0, 0, 1, 1], [], []>} : vector<2x16xbf16>, vector<16x64xbf16>, vector<2x64xf32> -> vector<2x64xf32>
    %1143 = arith.addf %1140, %1142 : vector<2x64xf32>
    %c2_i32_324 = arith.constant 2 : i32
    %1144 = arith.muli %1137, %c2_i32_324 : i32
    %1145 = arith.index_cast %1144 : i32 to index
    %c64_325 = arith.constant 64 : index
    %1146 = vector.load %arg16[%1145, %c64_325] : memref<16x128xf32, #tpu.memory_space<vmem>>, vector<2x64xf32>
    %1147 = arith.truncf %1136 : vector<2x16xf32> to vector<2x16xbf16>
    %cst_326 = arith.constant dense<0.000000e+00> : vector<2x64xf32>
    %1148 = tpu.matmul %1147, %1128, %cst_326 {dimension_numbers = #tpu.dot_dimension_numbers<[1], [0], [0], [1], [0, 0, 1, 1], [], []>} : vector<2x16xbf16>, vector<16x64xbf16>, vector<2x64xf32> -> vector<2x64xf32>
    %1149 = arith.addf %1146, %1148 : vector<2x64xf32>
    %1150 = vector.extract_strided_slice %1143 {offsets = [0, 0], sizes = [2, 16], strides = [1, 1]} : vector<2x64xf32> to vector<2x16xf32>
    %1151 = arith.negf %1150 : vector<2x16xf32>
    %1152 = math.exp %1151 : vector<2x16xf32>
    %cst_327 = arith.constant 1.000000e+00 : f32
    %1153 = vector.broadcast %cst_327 : f32 to vector<2x16xf32>
    %1154 = arith.addf %1153, %1152 : vector<2x16xf32>
    %1155 = arith.divf %1153, %1154 : vector<2x16xf32>
    %1156 = vector.extract_strided_slice %1143 {offsets = [0, 16], sizes = [2, 16], strides = [1, 1]} : vector<2x64xf32> to vector<2x16xf32>
    %1157 = arith.negf %1156 : vector<2x16xf32>
    %1158 = math.exp %1157 : vector<2x16xf32>
    %cst_328 = arith.constant 1.000000e+00 : f32
    %1159 = vector.broadcast %cst_328 : f32 to vector<2x16xf32>
    %1160 = arith.addf %1159, %1158 : vector<2x16xf32>
    %1161 = arith.divf %1159, %1160 : vector<2x16xf32>
    %1162 = vector.extract_strided_slice %1143 {offsets = [0, 32], sizes = [2, 16], strides = [1, 1]} : vector<2x64xf32> to vector<2x16xf32>
    %1163 = math.tanh %1162 : vector<2x16xf32>
    %1164 = vector.extract_strided_slice %1143 {offsets = [0, 48], sizes = [2, 16], strides = [1, 1]} : vector<2x64xf32> to vector<2x16xf32>
    %1165 = arith.negf %1164 : vector<2x16xf32>
    %1166 = math.exp %1165 : vector<2x16xf32>
    %cst_329 = arith.constant 1.000000e+00 : f32
    %1167 = vector.broadcast %cst_329 : f32 to vector<2x16xf32>
    %1168 = arith.addf %1167, %1166 : vector<2x16xf32>
    %1169 = arith.divf %1167, %1168 : vector<2x16xf32>
    %1170 = arith.mulf %1161, %1136 : vector<2x16xf32>
    %1171 = arith.mulf %1155, %1163 : vector<2x16xf32>
    %1172 = arith.addf %1170, %1171 : vector<2x16xf32>
    %1173 = math.tanh %1172 : vector<2x16xf32>
    %1174 = arith.mulf %1169, %1173 : vector<2x16xf32>
    %1175 = vector.extract_strided_slice %1149 {offsets = [0, 0], sizes = [2, 16], strides = [1, 1]} : vector<2x64xf32> to vector<2x16xf32>
    %1176 = arith.negf %1175 : vector<2x16xf32>
    %1177 = math.exp %1176 : vector<2x16xf32>
    %cst_330 = arith.constant 1.000000e+00 : f32
    %1178 = vector.broadcast %cst_330 : f32 to vector<2x16xf32>
    %1179 = arith.addf %1178, %1177 : vector<2x16xf32>
    %1180 = arith.divf %1178, %1179 : vector<2x16xf32>
    %1181 = vector.extract_strided_slice %1149 {offsets = [0, 16], sizes = [2, 16], strides = [1, 1]} : vector<2x64xf32> to vector<2x16xf32>
    %1182 = arith.negf %1181 : vector<2x16xf32>
    %1183 = math.exp %1182 : vector<2x16xf32>
    %cst_331 = arith.constant 1.000000e+00 : f32
    %1184 = vector.broadcast %cst_331 : f32 to vector<2x16xf32>
    %1185 = arith.addf %1184, %1183 : vector<2x16xf32>
    %1186 = arith.divf %1184, %1185 : vector<2x16xf32>
    %1187 = vector.extract_strided_slice %1149 {offsets = [0, 32], sizes = [2, 16], strides = [1, 1]} : vector<2x64xf32> to vector<2x16xf32>
    %1188 = math.tanh %1187 : vector<2x16xf32>
    %1189 = vector.extract_strided_slice %1149 {offsets = [0, 48], sizes = [2, 16], strides = [1, 1]} : vector<2x64xf32> to vector<2x16xf32>
    %1190 = arith.negf %1189 : vector<2x16xf32>
    %1191 = math.exp %1190 : vector<2x16xf32>
    %cst_332 = arith.constant 1.000000e+00 : f32
    %1192 = vector.broadcast %cst_332 : f32 to vector<2x16xf32>
    %1193 = arith.addf %1192, %1191 : vector<2x16xf32>
    %1194 = arith.divf %1192, %1193 : vector<2x16xf32>
    %1195 = arith.mulf %1186, %1136 : vector<2x16xf32>
    %1196 = arith.mulf %1180, %1188 : vector<2x16xf32>
    %1197 = arith.addf %1195, %1196 : vector<2x16xf32>
    %1198 = math.tanh %1197 : vector<2x16xf32>
    %1199 = arith.mulf %1194, %1198 : vector<2x16xf32>
    %1200 = arith.addf %1136, %1174 : vector<2x16xf32>
    %1201 = arith.addf %1136, %1199 : vector<2x16xf32>
    %c1_i32_333 = arith.constant 1 : i32
    %c7_i32_334 = arith.constant 7 : i32
    %1202 = arith.subi %c7_i32_334, %c1_i32_333 : i32
    %c2_i32_335 = arith.constant 2 : i32
    %1203 = arith.muli %c1_i32_333, %c2_i32_335 : i32
    %1204 = arith.index_cast %1203 : i32 to index
    %c0_336 = arith.constant 0 : index
    %1205 = vector.load %arg16[%1204, %c0_336] : memref<16x128xf32, #tpu.memory_space<vmem>>, vector<2x64xf32>
    %1206 = arith.truncf %1174 : vector<2x16xf32> to vector<2x16xbf16>
    %cst_337 = arith.constant dense<0.000000e+00> : vector<2x64xf32>
    %1207 = tpu.matmul %1206, %1127, %cst_337 {dimension_numbers = #tpu.dot_dimension_numbers<[1], [0], [0], [1], [0, 0, 1, 1], [], []>} : vector<2x16xbf16>, vector<16x64xbf16>, vector<2x64xf32> -> vector<2x64xf32>
    %1208 = arith.addf %1205, %1207 : vector<2x64xf32>
    %c2_i32_338 = arith.constant 2 : i32
    %1209 = arith.muli %1202, %c2_i32_338 : i32
    %1210 = arith.index_cast %1209 : i32 to index
    %c64_339 = arith.constant 64 : index
    %1211 = vector.load %arg16[%1210, %c64_339] : memref<16x128xf32, #tpu.memory_space<vmem>>, vector<2x64xf32>
    %1212 = arith.truncf %1199 : vector<2x16xf32> to vector<2x16xbf16>
    %cst_340 = arith.constant dense<0.000000e+00> : vector<2x64xf32>
    %1213 = tpu.matmul %1212, %1128, %cst_340 {dimension_numbers = #tpu.dot_dimension_numbers<[1], [0], [0], [1], [0, 0, 1, 1], [], []>} : vector<2x16xbf16>, vector<16x64xbf16>, vector<2x64xf32> -> vector<2x64xf32>
    %1214 = arith.addf %1211, %1213 : vector<2x64xf32>
    %1215 = vector.extract_strided_slice %1208 {offsets = [0, 0], sizes = [2, 16], strides = [1, 1]} : vector<2x64xf32> to vector<2x16xf32>
    %1216 = arith.negf %1215 : vector<2x16xf32>
    %1217 = math.exp %1216 : vector<2x16xf32>
    %cst_341 = arith.constant 1.000000e+00 : f32
    %1218 = vector.broadcast %cst_341 : f32 to vector<2x16xf32>
    %1219 = arith.addf %1218, %1217 : vector<2x16xf32>
    %1220 = arith.divf %1218, %1219 : vector<2x16xf32>
    %1221 = vector.extract_strided_slice %1208 {offsets = [0, 16], sizes = [2, 16], strides = [1, 1]} : vector<2x64xf32> to vector<2x16xf32>
    %1222 = arith.negf %1221 : vector<2x16xf32>
    %1223 = math.exp %1222 : vector<2x16xf32>
    %cst_342 = arith.constant 1.000000e+00 : f32
    %1224 = vector.broadcast %cst_342 : f32 to vector<2x16xf32>
    %1225 = arith.addf %1224, %1223 : vector<2x16xf32>
    %1226 = arith.divf %1224, %1225 : vector<2x16xf32>
    %1227 = vector.extract_strided_slice %1208 {offsets = [0, 32], sizes = [2, 16], strides = [1, 1]} : vector<2x64xf32> to vector<2x16xf32>
    %1228 = math.tanh %1227 : vector<2x16xf32>
    %1229 = vector.extract_strided_slice %1208 {offsets = [0, 48], sizes = [2, 16], strides = [1, 1]} : vector<2x64xf32> to vector<2x16xf32>
    %1230 = arith.negf %1229 : vector<2x16xf32>
    %1231 = math.exp %1230 : vector<2x16xf32>
    %cst_343 = arith.constant 1.000000e+00 : f32
    %1232 = vector.broadcast %cst_343 : f32 to vector<2x16xf32>
    %1233 = arith.addf %1232, %1231 : vector<2x16xf32>
    %1234 = arith.divf %1232, %1233 : vector<2x16xf32>
    %1235 = arith.mulf %1226, %1172 : vector<2x16xf32>
    %1236 = arith.mulf %1220, %1228 : vector<2x16xf32>
    %1237 = arith.addf %1235, %1236 : vector<2x16xf32>
    %1238 = math.tanh %1237 : vector<2x16xf32>
    %1239 = arith.mulf %1234, %1238 : vector<2x16xf32>
    %1240 = vector.extract_strided_slice %1214 {offsets = [0, 0], sizes = [2, 16], strides = [1, 1]} : vector<2x64xf32> to vector<2x16xf32>
    %1241 = arith.negf %1240 : vector<2x16xf32>
    %1242 = math.exp %1241 : vector<2x16xf32>
    %cst_344 = arith.constant 1.000000e+00 : f32
    %1243 = vector.broadcast %cst_344 : f32 to vector<2x16xf32>
    %1244 = arith.addf %1243, %1242 : vector<2x16xf32>
    %1245 = arith.divf %1243, %1244 : vector<2x16xf32>
    %1246 = vector.extract_strided_slice %1214 {offsets = [0, 16], sizes = [2, 16], strides = [1, 1]} : vector<2x64xf32> to vector<2x16xf32>
    %1247 = arith.negf %1246 : vector<2x16xf32>
    %1248 = math.exp %1247 : vector<2x16xf32>
    %cst_345 = arith.constant 1.000000e+00 : f32
    %1249 = vector.broadcast %cst_345 : f32 to vector<2x16xf32>
    %1250 = arith.addf %1249, %1248 : vector<2x16xf32>
    %1251 = arith.divf %1249, %1250 : vector<2x16xf32>
    %1252 = vector.extract_strided_slice %1214 {offsets = [0, 32], sizes = [2, 16], strides = [1, 1]} : vector<2x64xf32> to vector<2x16xf32>
    %1253 = math.tanh %1252 : vector<2x16xf32>
    %1254 = vector.extract_strided_slice %1214 {offsets = [0, 48], sizes = [2, 16], strides = [1, 1]} : vector<2x64xf32> to vector<2x16xf32>
    %1255 = arith.negf %1254 : vector<2x16xf32>
    %1256 = math.exp %1255 : vector<2x16xf32>
    %cst_346 = arith.constant 1.000000e+00 : f32
    %1257 = vector.broadcast %cst_346 : f32 to vector<2x16xf32>
    %1258 = arith.addf %1257, %1256 : vector<2x16xf32>
    %1259 = arith.divf %1257, %1258 : vector<2x16xf32>
    %1260 = arith.mulf %1251, %1197 : vector<2x16xf32>
    %1261 = arith.mulf %1245, %1253 : vector<2x16xf32>
    %1262 = arith.addf %1260, %1261 : vector<2x16xf32>
    %1263 = math.tanh %1262 : vector<2x16xf32>
    %1264 = arith.mulf %1259, %1263 : vector<2x16xf32>
    %1265 = arith.addf %1200, %1239 : vector<2x16xf32>
    %1266 = arith.addf %1201, %1264 : vector<2x16xf32>
    %c2_i32_347 = arith.constant 2 : i32
    %c7_i32_348 = arith.constant 7 : i32
    %1267 = arith.subi %c7_i32_348, %c2_i32_347 : i32
    %c2_i32_349 = arith.constant 2 : i32
    %1268 = arith.muli %c2_i32_347, %c2_i32_349 : i32
    %1269 = arith.index_cast %1268 : i32 to index
    %c0_350 = arith.constant 0 : index
    %1270 = vector.load %arg16[%1269, %c0_350] : memref<16x128xf32, #tpu.memory_space<vmem>>, vector<2x64xf32>
    %1271 = arith.truncf %1239 : vector<2x16xf32> to vector<2x16xbf16>
    %cst_351 = arith.constant dense<0.000000e+00> : vector<2x64xf32>
    %1272 = tpu.matmul %1271, %1127, %cst_351 {dimension_numbers = #tpu.dot_dimension_numbers<[1], [0], [0], [1], [0, 0, 1, 1], [], []>} : vector<2x16xbf16>, vector<16x64xbf16>, vector<2x64xf32> -> vector<2x64xf32>
    %1273 = arith.addf %1270, %1272 : vector<2x64xf32>
    %c2_i32_352 = arith.constant 2 : i32
    %1274 = arith.muli %1267, %c2_i32_352 : i32
    %1275 = arith.index_cast %1274 : i32 to index
    %c64_353 = arith.constant 64 : index
    %1276 = vector.load %arg16[%1275, %c64_353] : memref<16x128xf32, #tpu.memory_space<vmem>>, vector<2x64xf32>
    %1277 = arith.truncf %1264 : vector<2x16xf32> to vector<2x16xbf16>
    %cst_354 = arith.constant dense<0.000000e+00> : vector<2x64xf32>
    %1278 = tpu.matmul %1277, %1128, %cst_354 {dimension_numbers = #tpu.dot_dimension_numbers<[1], [0], [0], [1], [0, 0, 1, 1], [], []>} : vector<2x16xbf16>, vector<16x64xbf16>, vector<2x64xf32> -> vector<2x64xf32>
    %1279 = arith.addf %1276, %1278 : vector<2x64xf32>
    %1280 = vector.extract_strided_slice %1273 {offsets = [0, 0], sizes = [2, 16], strides = [1, 1]} : vector<2x64xf32> to vector<2x16xf32>
    %1281 = arith.negf %1280 : vector<2x16xf32>
    %1282 = math.exp %1281 : vector<2x16xf32>
    %cst_355 = arith.constant 1.000000e+00 : f32
    %1283 = vector.broadcast %cst_355 : f32 to vector<2x16xf32>
    %1284 = arith.addf %1283, %1282 : vector<2x16xf32>
    %1285 = arith.divf %1283, %1284 : vector<2x16xf32>
    %1286 = vector.extract_strided_slice %1273 {offsets = [0, 16], sizes = [2, 16], strides = [1, 1]} : vector<2x64xf32> to vector<2x16xf32>
    %1287 = arith.negf %1286 : vector<2x16xf32>
    %1288 = math.exp %1287 : vector<2x16xf32>
    %cst_356 = arith.constant 1.000000e+00 : f32
    %1289 = vector.broadcast %cst_356 : f32 to vector<2x16xf32>
    %1290 = arith.addf %1289, %1288 : vector<2x16xf32>
    %1291 = arith.divf %1289, %1290 : vector<2x16xf32>
    %1292 = vector.extract_strided_slice %1273 {offsets = [0, 32], sizes = [2, 16], strides = [1, 1]} : vector<2x64xf32> to vector<2x16xf32>
    %1293 = math.tanh %1292 : vector<2x16xf32>
    %1294 = vector.extract_strided_slice %1273 {offsets = [0, 48], sizes = [2, 16], strides = [1, 1]} : vector<2x64xf32> to vector<2x16xf32>
    %1295 = arith.negf %1294 : vector<2x16xf32>
    %1296 = math.exp %1295 : vector<2x16xf32>
    %cst_357 = arith.constant 1.000000e+00 : f32
    %1297 = vector.broadcast %cst_357 : f32 to vector<2x16xf32>
    %1298 = arith.addf %1297, %1296 : vector<2x16xf32>
    %1299 = arith.divf %1297, %1298 : vector<2x16xf32>
    %1300 = arith.mulf %1291, %1237 : vector<2x16xf32>
    %1301 = arith.mulf %1285, %1293 : vector<2x16xf32>
    %1302 = arith.addf %1300, %1301 : vector<2x16xf32>
    %1303 = math.tanh %1302 : vector<2x16xf32>
    %1304 = arith.mulf %1299, %1303 : vector<2x16xf32>
    %1305 = vector.extract_strided_slice %1279 {offsets = [0, 0], sizes = [2, 16], strides = [1, 1]} : vector<2x64xf32> to vector<2x16xf32>
    %1306 = arith.negf %1305 : vector<2x16xf32>
    %1307 = math.exp %1306 : vector<2x16xf32>
    %cst_358 = arith.constant 1.000000e+00 : f32
    %1308 = vector.broadcast %cst_358 : f32 to vector<2x16xf32>
    %1309 = arith.addf %1308, %1307 : vector<2x16xf32>
    %1310 = arith.divf %1308, %1309 : vector<2x16xf32>
    %1311 = vector.extract_strided_slice %1279 {offsets = [0, 16], sizes = [2, 16], strides = [1, 1]} : vector<2x64xf32> to vector<2x16xf32>
    %1312 = arith.negf %1311 : vector<2x16xf32>
    %1313 = math.exp %1312 : vector<2x16xf32>
    %cst_359 = arith.constant 1.000000e+00 : f32
    %1314 = vector.broadcast %cst_359 : f32 to vector<2x16xf32>
    %1315 = arith.addf %1314, %1313 : vector<2x16xf32>
    %1316 = arith.divf %1314, %1315 : vector<2x16xf32>
    %1317 = vector.extract_strided_slice %1279 {offsets = [0, 32], sizes = [2, 16], strides = [1, 1]} : vector<2x64xf32> to vector<2x16xf32>
    %1318 = math.tanh %1317 : vector<2x16xf32>
    %1319 = vector.extract_strided_slice %1279 {offsets = [0, 48], sizes = [2, 16], strides = [1, 1]} : vector<2x64xf32> to vector<2x16xf32>
    %1320 = arith.negf %1319 : vector<2x16xf32>
    %1321 = math.exp %1320 : vector<2x16xf32>
    %cst_360 = arith.constant 1.000000e+00 : f32
    %1322 = vector.broadcast %cst_360 : f32 to vector<2x16xf32>
    %1323 = arith.addf %1322, %1321 : vector<2x16xf32>
    %1324 = arith.divf %1322, %1323 : vector<2x16xf32>
    %1325 = arith.mulf %1316, %1262 : vector<2x16xf32>
    %1326 = arith.mulf %1310, %1318 : vector<2x16xf32>
    %1327 = arith.addf %1325, %1326 : vector<2x16xf32>
    %1328 = math.tanh %1327 : vector<2x16xf32>
    %1329 = arith.mulf %1324, %1328 : vector<2x16xf32>
    %1330 = arith.addf %1265, %1304 : vector<2x16xf32>
    %1331 = arith.addf %1266, %1329 : vector<2x16xf32>
    %c3_i32_361 = arith.constant 3 : i32
    %c7_i32_362 = arith.constant 7 : i32
    %1332 = arith.subi %c7_i32_362, %c3_i32_361 : i32
    %c2_i32_363 = arith.constant 2 : i32
    %1333 = arith.muli %c3_i32_361, %c2_i32_363 : i32
    %1334 = arith.index_cast %1333 : i32 to index
    %c0_364 = arith.constant 0 : index
    %1335 = vector.load %arg16[%1334, %c0_364] : memref<16x128xf32, #tpu.memory_space<vmem>>, vector<2x64xf32>
    %1336 = arith.truncf %1304 : vector<2x16xf32> to vector<2x16xbf16>
    %cst_365 = arith.constant dense<0.000000e+00> : vector<2x64xf32>
    %1337 = tpu.matmul %1336, %1127, %cst_365 {dimension_numbers = #tpu.dot_dimension_numbers<[1], [0], [0], [1], [0, 0, 1, 1], [], []>} : vector<2x16xbf16>, vector<16x64xbf16>, vector<2x64xf32> -> vector<2x64xf32>
    %1338 = arith.addf %1335, %1337 : vector<2x64xf32>
    %c2_i32_366 = arith.constant 2 : i32
    %1339 = arith.muli %1332, %c2_i32_366 : i32
    %1340 = arith.index_cast %1339 : i32 to index
    %c64_367 = arith.constant 64 : index
    %1341 = vector.load %arg16[%1340, %c64_367] : memref<16x128xf32, #tpu.memory_space<vmem>>, vector<2x64xf32>
    %1342 = arith.truncf %1329 : vector<2x16xf32> to vector<2x16xbf16>
    %cst_368 = arith.constant dense<0.000000e+00> : vector<2x64xf32>
    %1343 = tpu.matmul %1342, %1128, %cst_368 {dimension_numbers = #tpu.dot_dimension_numbers<[1], [0], [0], [1], [0, 0, 1, 1], [], []>} : vector<2x16xbf16>, vector<16x64xbf16>, vector<2x64xf32> -> vector<2x64xf32>
    %1344 = arith.addf %1341, %1343 : vector<2x64xf32>
    %1345 = vector.extract_strided_slice %1338 {offsets = [0, 0], sizes = [2, 16], strides = [1, 1]} : vector<2x64xf32> to vector<2x16xf32>
    %1346 = arith.negf %1345 : vector<2x16xf32>
    %1347 = math.exp %1346 : vector<2x16xf32>
    %cst_369 = arith.constant 1.000000e+00 : f32
    %1348 = vector.broadcast %cst_369 : f32 to vector<2x16xf32>
    %1349 = arith.addf %1348, %1347 : vector<2x16xf32>
    %1350 = arith.divf %1348, %1349 : vector<2x16xf32>
    %1351 = vector.extract_strided_slice %1338 {offsets = [0, 16], sizes = [2, 16], strides = [1, 1]} : vector<2x64xf32> to vector<2x16xf32>
    %1352 = arith.negf %1351 : vector<2x16xf32>
    %1353 = math.exp %1352 : vector<2x16xf32>
    %cst_370 = arith.constant 1.000000e+00 : f32
    %1354 = vector.broadcast %cst_370 : f32 to vector<2x16xf32>
    %1355 = arith.addf %1354, %1353 : vector<2x16xf32>
    %1356 = arith.divf %1354, %1355 : vector<2x16xf32>
    %1357 = vector.extract_strided_slice %1338 {offsets = [0, 32], sizes = [2, 16], strides = [1, 1]} : vector<2x64xf32> to vector<2x16xf32>
    %1358 = math.tanh %1357 : vector<2x16xf32>
    %1359 = vector.extract_strided_slice %1338 {offsets = [0, 48], sizes = [2, 16], strides = [1, 1]} : vector<2x64xf32> to vector<2x16xf32>
    %1360 = arith.negf %1359 : vector<2x16xf32>
    %1361 = math.exp %1360 : vector<2x16xf32>
    %cst_371 = arith.constant 1.000000e+00 : f32
    %1362 = vector.broadcast %cst_371 : f32 to vector<2x16xf32>
    %1363 = arith.addf %1362, %1361 : vector<2x16xf32>
    %1364 = arith.divf %1362, %1363 : vector<2x16xf32>
    %1365 = arith.mulf %1356, %1302 : vector<2x16xf32>
    %1366 = arith.mulf %1350, %1358 : vector<2x16xf32>
    %1367 = arith.addf %1365, %1366 : vector<2x16xf32>
    %1368 = math.tanh %1367 : vector<2x16xf32>
    %1369 = arith.mulf %1364, %1368 : vector<2x16xf32>
    %1370 = vector.extract_strided_slice %1344 {offsets = [0, 0], sizes = [2, 16], strides = [1, 1]} : vector<2x64xf32> to vector<2x16xf32>
    %1371 = arith.negf %1370 : vector<2x16xf32>
    %1372 = math.exp %1371 : vector<2x16xf32>
    %cst_372 = arith.constant 1.000000e+00 : f32
    %1373 = vector.broadcast %cst_372 : f32 to vector<2x16xf32>
    %1374 = arith.addf %1373, %1372 : vector<2x16xf32>
    %1375 = arith.divf %1373, %1374 : vector<2x16xf32>
    %1376 = vector.extract_strided_slice %1344 {offsets = [0, 16], sizes = [2, 16], strides = [1, 1]} : vector<2x64xf32> to vector<2x16xf32>
    %1377 = arith.negf %1376 : vector<2x16xf32>
    %1378 = math.exp %1377 : vector<2x16xf32>
    %cst_373 = arith.constant 1.000000e+00 : f32
    %1379 = vector.broadcast %cst_373 : f32 to vector<2x16xf32>
    %1380 = arith.addf %1379, %1378 : vector<2x16xf32>
    %1381 = arith.divf %1379, %1380 : vector<2x16xf32>
    %1382 = vector.extract_strided_slice %1344 {offsets = [0, 32], sizes = [2, 16], strides = [1, 1]} : vector<2x64xf32> to vector<2x16xf32>
    %1383 = math.tanh %1382 : vector<2x16xf32>
    %1384 = vector.extract_strided_slice %1344 {offsets = [0, 48], sizes = [2, 16], strides = [1, 1]} : vector<2x64xf32> to vector<2x16xf32>
    %1385 = arith.negf %1384 : vector<2x16xf32>
    %1386 = math.exp %1385 : vector<2x16xf32>
    %cst_374 = arith.constant 1.000000e+00 : f32
    %1387 = vector.broadcast %cst_374 : f32 to vector<2x16xf32>
    %1388 = arith.addf %1387, %1386 : vector<2x16xf32>
    %1389 = arith.divf %1387, %1388 : vector<2x16xf32>
    %1390 = arith.mulf %1381, %1327 : vector<2x16xf32>
    %1391 = arith.mulf %1375, %1383 : vector<2x16xf32>
    %1392 = arith.addf %1390, %1391 : vector<2x16xf32>
    %1393 = math.tanh %1392 : vector<2x16xf32>
    %1394 = arith.mulf %1389, %1393 : vector<2x16xf32>
    %1395 = arith.addf %1330, %1369 : vector<2x16xf32>
    %1396 = arith.addf %1331, %1394 : vector<2x16xf32>
    %c4_i32_375 = arith.constant 4 : i32
    %c7_i32_376 = arith.constant 7 : i32
    %1397 = arith.subi %c7_i32_376, %c4_i32_375 : i32
    %c2_i32_377 = arith.constant 2 : i32
    %1398 = arith.muli %c4_i32_375, %c2_i32_377 : i32
    %1399 = arith.index_cast %1398 : i32 to index
    %c0_378 = arith.constant 0 : index
    %1400 = vector.load %arg16[%1399, %c0_378] : memref<16x128xf32, #tpu.memory_space<vmem>>, vector<2x64xf32>
    %1401 = arith.truncf %1369 : vector<2x16xf32> to vector<2x16xbf16>
    %cst_379 = arith.constant dense<0.000000e+00> : vector<2x64xf32>
    %1402 = tpu.matmul %1401, %1127, %cst_379 {dimension_numbers = #tpu.dot_dimension_numbers<[1], [0], [0], [1], [0, 0, 1, 1], [], []>} : vector<2x16xbf16>, vector<16x64xbf16>, vector<2x64xf32> -> vector<2x64xf32>
    %1403 = arith.addf %1400, %1402 : vector<2x64xf32>
    %c2_i32_380 = arith.constant 2 : i32
    %1404 = arith.muli %1397, %c2_i32_380 : i32
    %1405 = arith.index_cast %1404 : i32 to index
    %c64_381 = arith.constant 64 : index
    %1406 = vector.load %arg16[%1405, %c64_381] : memref<16x128xf32, #tpu.memory_space<vmem>>, vector<2x64xf32>
    %1407 = arith.truncf %1394 : vector<2x16xf32> to vector<2x16xbf16>
    %cst_382 = arith.constant dense<0.000000e+00> : vector<2x64xf32>
    %1408 = tpu.matmul %1407, %1128, %cst_382 {dimension_numbers = #tpu.dot_dimension_numbers<[1], [0], [0], [1], [0, 0, 1, 1], [], []>} : vector<2x16xbf16>, vector<16x64xbf16>, vector<2x64xf32> -> vector<2x64xf32>
    %1409 = arith.addf %1406, %1408 : vector<2x64xf32>
    %1410 = vector.extract_strided_slice %1403 {offsets = [0, 0], sizes = [2, 16], strides = [1, 1]} : vector<2x64xf32> to vector<2x16xf32>
    %1411 = arith.negf %1410 : vector<2x16xf32>
    %1412 = math.exp %1411 : vector<2x16xf32>
    %cst_383 = arith.constant 1.000000e+00 : f32
    %1413 = vector.broadcast %cst_383 : f32 to vector<2x16xf32>
    %1414 = arith.addf %1413, %1412 : vector<2x16xf32>
    %1415 = arith.divf %1413, %1414 : vector<2x16xf32>
    %1416 = vector.extract_strided_slice %1403 {offsets = [0, 16], sizes = [2, 16], strides = [1, 1]} : vector<2x64xf32> to vector<2x16xf32>
    %1417 = arith.negf %1416 : vector<2x16xf32>
    %1418 = math.exp %1417 : vector<2x16xf32>
    %cst_384 = arith.constant 1.000000e+00 : f32
    %1419 = vector.broadcast %cst_384 : f32 to vector<2x16xf32>
    %1420 = arith.addf %1419, %1418 : vector<2x16xf32>
    %1421 = arith.divf %1419, %1420 : vector<2x16xf32>
    %1422 = vector.extract_strided_slice %1403 {offsets = [0, 32], sizes = [2, 16], strides = [1, 1]} : vector<2x64xf32> to vector<2x16xf32>
    %1423 = math.tanh %1422 : vector<2x16xf32>
    %1424 = vector.extract_strided_slice %1403 {offsets = [0, 48], sizes = [2, 16], strides = [1, 1]} : vector<2x64xf32> to vector<2x16xf32>
    %1425 = arith.negf %1424 : vector<2x16xf32>
    %1426 = math.exp %1425 : vector<2x16xf32>
    %cst_385 = arith.constant 1.000000e+00 : f32
    %1427 = vector.broadcast %cst_385 : f32 to vector<2x16xf32>
    %1428 = arith.addf %1427, %1426 : vector<2x16xf32>
    %1429 = arith.divf %1427, %1428 : vector<2x16xf32>
    %1430 = arith.mulf %1421, %1367 : vector<2x16xf32>
    %1431 = arith.mulf %1415, %1423 : vector<2x16xf32>
    %1432 = arith.addf %1430, %1431 : vector<2x16xf32>
    %1433 = math.tanh %1432 : vector<2x16xf32>
    %1434 = arith.mulf %1429, %1433 : vector<2x16xf32>
    %1435 = vector.extract_strided_slice %1409 {offsets = [0, 0], sizes = [2, 16], strides = [1, 1]} : vector<2x64xf32> to vector<2x16xf32>
    %1436 = arith.negf %1435 : vector<2x16xf32>
    %1437 = math.exp %1436 : vector<2x16xf32>
    %cst_386 = arith.constant 1.000000e+00 : f32
    %1438 = vector.broadcast %cst_386 : f32 to vector<2x16xf32>
    %1439 = arith.addf %1438, %1437 : vector<2x16xf32>
    %1440 = arith.divf %1438, %1439 : vector<2x16xf32>
    %1441 = vector.extract_strided_slice %1409 {offsets = [0, 16], sizes = [2, 16], strides = [1, 1]} : vector<2x64xf32> to vector<2x16xf32>
    %1442 = arith.negf %1441 : vector<2x16xf32>
    %1443 = math.exp %1442 : vector<2x16xf32>
    %cst_387 = arith.constant 1.000000e+00 : f32
    %1444 = vector.broadcast %cst_387 : f32 to vector<2x16xf32>
    %1445 = arith.addf %1444, %1443 : vector<2x16xf32>
    %1446 = arith.divf %1444, %1445 : vector<2x16xf32>
    %1447 = vector.extract_strided_slice %1409 {offsets = [0, 32], sizes = [2, 16], strides = [1, 1]} : vector<2x64xf32> to vector<2x16xf32>
    %1448 = math.tanh %1447 : vector<2x16xf32>
    %1449 = vector.extract_strided_slice %1409 {offsets = [0, 48], sizes = [2, 16], strides = [1, 1]} : vector<2x64xf32> to vector<2x16xf32>
    %1450 = arith.negf %1449 : vector<2x16xf32>
    %1451 = math.exp %1450 : vector<2x16xf32>
    %cst_388 = arith.constant 1.000000e+00 : f32
    %1452 = vector.broadcast %cst_388 : f32 to vector<2x16xf32>
    %1453 = arith.addf %1452, %1451 : vector<2x16xf32>
    %1454 = arith.divf %1452, %1453 : vector<2x16xf32>
    %1455 = arith.mulf %1446, %1392 : vector<2x16xf32>
    %1456 = arith.mulf %1440, %1448 : vector<2x16xf32>
    %1457 = arith.addf %1455, %1456 : vector<2x16xf32>
    %1458 = math.tanh %1457 : vector<2x16xf32>
    %1459 = arith.mulf %1454, %1458 : vector<2x16xf32>
    %1460 = arith.addf %1395, %1434 : vector<2x16xf32>
    %1461 = arith.addf %1396, %1459 : vector<2x16xf32>
    %c5_i32_389 = arith.constant 5 : i32
    %c7_i32_390 = arith.constant 7 : i32
    %1462 = arith.subi %c7_i32_390, %c5_i32_389 : i32
    %c2_i32_391 = arith.constant 2 : i32
    %1463 = arith.muli %c5_i32_389, %c2_i32_391 : i32
    %1464 = arith.index_cast %1463 : i32 to index
    %c0_392 = arith.constant 0 : index
    %1465 = vector.load %arg16[%1464, %c0_392] : memref<16x128xf32, #tpu.memory_space<vmem>>, vector<2x64xf32>
    %1466 = arith.truncf %1434 : vector<2x16xf32> to vector<2x16xbf16>
    %cst_393 = arith.constant dense<0.000000e+00> : vector<2x64xf32>
    %1467 = tpu.matmul %1466, %1127, %cst_393 {dimension_numbers = #tpu.dot_dimension_numbers<[1], [0], [0], [1], [0, 0, 1, 1], [], []>} : vector<2x16xbf16>, vector<16x64xbf16>, vector<2x64xf32> -> vector<2x64xf32>
    %1468 = arith.addf %1465, %1467 : vector<2x64xf32>
    %c2_i32_394 = arith.constant 2 : i32
    %1469 = arith.muli %1462, %c2_i32_394 : i32
    %1470 = arith.index_cast %1469 : i32 to index
    %c64_395 = arith.constant 64 : index
    %1471 = vector.load %arg16[%1470, %c64_395] : memref<16x128xf32, #tpu.memory_space<vmem>>, vector<2x64xf32>
    %1472 = arith.truncf %1459 : vector<2x16xf32> to vector<2x16xbf16>
    %cst_396 = arith.constant dense<0.000000e+00> : vector<2x64xf32>
    %1473 = tpu.matmul %1472, %1128, %cst_396 {dimension_numbers = #tpu.dot_dimension_numbers<[1], [0], [0], [1], [0, 0, 1, 1], [], []>} : vector<2x16xbf16>, vector<16x64xbf16>, vector<2x64xf32> -> vector<2x64xf32>
    %1474 = arith.addf %1471, %1473 : vector<2x64xf32>
    %1475 = vector.extract_strided_slice %1468 {offsets = [0, 0], sizes = [2, 16], strides = [1, 1]} : vector<2x64xf32> to vector<2x16xf32>
    %1476 = arith.negf %1475 : vector<2x16xf32>
    %1477 = math.exp %1476 : vector<2x16xf32>
    %cst_397 = arith.constant 1.000000e+00 : f32
    %1478 = vector.broadcast %cst_397 : f32 to vector<2x16xf32>
    %1479 = arith.addf %1478, %1477 : vector<2x16xf32>
    %1480 = arith.divf %1478, %1479 : vector<2x16xf32>
    %1481 = vector.extract_strided_slice %1468 {offsets = [0, 16], sizes = [2, 16], strides = [1, 1]} : vector<2x64xf32> to vector<2x16xf32>
    %1482 = arith.negf %1481 : vector<2x16xf32>
    %1483 = math.exp %1482 : vector<2x16xf32>
    %cst_398 = arith.constant 1.000000e+00 : f32
    %1484 = vector.broadcast %cst_398 : f32 to vector<2x16xf32>
    %1485 = arith.addf %1484, %1483 : vector<2x16xf32>
    %1486 = arith.divf %1484, %1485 : vector<2x16xf32>
    %1487 = vector.extract_strided_slice %1468 {offsets = [0, 32], sizes = [2, 16], strides = [1, 1]} : vector<2x64xf32> to vector<2x16xf32>
    %1488 = math.tanh %1487 : vector<2x16xf32>
    %1489 = vector.extract_strided_slice %1468 {offsets = [0, 48], sizes = [2, 16], strides = [1, 1]} : vector<2x64xf32> to vector<2x16xf32>
    %1490 = arith.negf %1489 : vector<2x16xf32>
    %1491 = math.exp %1490 : vector<2x16xf32>
    %cst_399 = arith.constant 1.000000e+00 : f32
    %1492 = vector.broadcast %cst_399 : f32 to vector<2x16xf32>
    %1493 = arith.addf %1492, %1491 : vector<2x16xf32>
    %1494 = arith.divf %1492, %1493 : vector<2x16xf32>
    %1495 = arith.mulf %1486, %1432 : vector<2x16xf32>
    %1496 = arith.mulf %1480, %1488 : vector<2x16xf32>
    %1497 = arith.addf %1495, %1496 : vector<2x16xf32>
    %1498 = math.tanh %1497 : vector<2x16xf32>
    %1499 = arith.mulf %1494, %1498 : vector<2x16xf32>
    %1500 = vector.extract_strided_slice %1474 {offsets = [0, 0], sizes = [2, 16], strides = [1, 1]} : vector<2x64xf32> to vector<2x16xf32>
    %1501 = arith.negf %1500 : vector<2x16xf32>
    %1502 = math.exp %1501 : vector<2x16xf32>
    %cst_400 = arith.constant 1.000000e+00 : f32
    %1503 = vector.broadcast %cst_400 : f32 to vector<2x16xf32>
    %1504 = arith.addf %1503, %1502 : vector<2x16xf32>
    %1505 = arith.divf %1503, %1504 : vector<2x16xf32>
    %1506 = vector.extract_strided_slice %1474 {offsets = [0, 16], sizes = [2, 16], strides = [1, 1]} : vector<2x64xf32> to vector<2x16xf32>
    %1507 = arith.negf %1506 : vector<2x16xf32>
    %1508 = math.exp %1507 : vector<2x16xf32>
    %cst_401 = arith.constant 1.000000e+00 : f32
    %1509 = vector.broadcast %cst_401 : f32 to vector<2x16xf32>
    %1510 = arith.addf %1509, %1508 : vector<2x16xf32>
    %1511 = arith.divf %1509, %1510 : vector<2x16xf32>
    %1512 = vector.extract_strided_slice %1474 {offsets = [0, 32], sizes = [2, 16], strides = [1, 1]} : vector<2x64xf32> to vector<2x16xf32>
    %1513 = math.tanh %1512 : vector<2x16xf32>
    %1514 = vector.extract_strided_slice %1474 {offsets = [0, 48], sizes = [2, 16], strides = [1, 1]} : vector<2x64xf32> to vector<2x16xf32>
    %1515 = arith.negf %1514 : vector<2x16xf32>
    %1516 = math.exp %1515 : vector<2x16xf32>
    %cst_402 = arith.constant 1.000000e+00 : f32
    %1517 = vector.broadcast %cst_402 : f32 to vector<2x16xf32>
    %1518 = arith.addf %1517, %1516 : vector<2x16xf32>
    %1519 = arith.divf %1517, %1518 : vector<2x16xf32>
    %1520 = arith.mulf %1511, %1457 : vector<2x16xf32>
    %1521 = arith.mulf %1505, %1513 : vector<2x16xf32>
    %1522 = arith.addf %1520, %1521 : vector<2x16xf32>
    %1523 = math.tanh %1522 : vector<2x16xf32>
    %1524 = arith.mulf %1519, %1523 : vector<2x16xf32>
    %1525 = arith.addf %1460, %1499 : vector<2x16xf32>
    %1526 = arith.addf %1461, %1524 : vector<2x16xf32>
    %c6_i32_403 = arith.constant 6 : i32
    %c7_i32_404 = arith.constant 7 : i32
    %1527 = arith.subi %c7_i32_404, %c6_i32_403 : i32
    %c2_i32_405 = arith.constant 2 : i32
    %1528 = arith.muli %c6_i32_403, %c2_i32_405 : i32
    %1529 = arith.index_cast %1528 : i32 to index
    %c0_406 = arith.constant 0 : index
    %1530 = vector.load %arg16[%1529, %c0_406] : memref<16x128xf32, #tpu.memory_space<vmem>>, vector<2x64xf32>
    %1531 = arith.truncf %1499 : vector<2x16xf32> to vector<2x16xbf16>
    %cst_407 = arith.constant dense<0.000000e+00> : vector<2x64xf32>
    %1532 = tpu.matmul %1531, %1127, %cst_407 {dimension_numbers = #tpu.dot_dimension_numbers<[1], [0], [0], [1], [0, 0, 1, 1], [], []>} : vector<2x16xbf16>, vector<16x64xbf16>, vector<2x64xf32> -> vector<2x64xf32>
    %1533 = arith.addf %1530, %1532 : vector<2x64xf32>
    %c2_i32_408 = arith.constant 2 : i32
    %1534 = arith.muli %1527, %c2_i32_408 : i32
    %1535 = arith.index_cast %1534 : i32 to index
    %c64_409 = arith.constant 64 : index
    %1536 = vector.load %arg16[%1535, %c64_409] : memref<16x128xf32, #tpu.memory_space<vmem>>, vector<2x64xf32>
    %1537 = arith.truncf %1524 : vector<2x16xf32> to vector<2x16xbf16>
    %cst_410 = arith.constant dense<0.000000e+00> : vector<2x64xf32>
    %1538 = tpu.matmul %1537, %1128, %cst_410 {dimension_numbers = #tpu.dot_dimension_numbers<[1], [0], [0], [1], [0, 0, 1, 1], [], []>} : vector<2x16xbf16>, vector<16x64xbf16>, vector<2x64xf32> -> vector<2x64xf32>
    %1539 = arith.addf %1536, %1538 : vector<2x64xf32>
    %1540 = vector.extract_strided_slice %1533 {offsets = [0, 0], sizes = [2, 16], strides = [1, 1]} : vector<2x64xf32> to vector<2x16xf32>
    %1541 = arith.negf %1540 : vector<2x16xf32>
    %1542 = math.exp %1541 : vector<2x16xf32>
    %cst_411 = arith.constant 1.000000e+00 : f32
    %1543 = vector.broadcast %cst_411 : f32 to vector<2x16xf32>
    %1544 = arith.addf %1543, %1542 : vector<2x16xf32>
    %1545 = arith.divf %1543, %1544 : vector<2x16xf32>
    %1546 = vector.extract_strided_slice %1533 {offsets = [0, 16], sizes = [2, 16], strides = [1, 1]} : vector<2x64xf32> to vector<2x16xf32>
    %1547 = arith.negf %1546 : vector<2x16xf32>
    %1548 = math.exp %1547 : vector<2x16xf32>
    %cst_412 = arith.constant 1.000000e+00 : f32
    %1549 = vector.broadcast %cst_412 : f32 to vector<2x16xf32>
    %1550 = arith.addf %1549, %1548 : vector<2x16xf32>
    %1551 = arith.divf %1549, %1550 : vector<2x16xf32>
    %1552 = vector.extract_strided_slice %1533 {offsets = [0, 32], sizes = [2, 16], strides = [1, 1]} : vector<2x64xf32> to vector<2x16xf32>
    %1553 = math.tanh %1552 : vector<2x16xf32>
    %1554 = vector.extract_strided_slice %1533 {offsets = [0, 48], sizes = [2, 16], strides = [1, 1]} : vector<2x64xf32> to vector<2x16xf32>
    %1555 = arith.negf %1554 : vector<2x16xf32>
    %1556 = math.exp %1555 : vector<2x16xf32>
    %cst_413 = arith.constant 1.000000e+00 : f32
    %1557 = vector.broadcast %cst_413 : f32 to vector<2x16xf32>
    %1558 = arith.addf %1557, %1556 : vector<2x16xf32>
    %1559 = arith.divf %1557, %1558 : vector<2x16xf32>
    %1560 = arith.mulf %1551, %1497 : vector<2x16xf32>
    %1561 = arith.mulf %1545, %1553 : vector<2x16xf32>
    %1562 = arith.addf %1560, %1561 : vector<2x16xf32>
    %1563 = math.tanh %1562 : vector<2x16xf32>
    %1564 = arith.mulf %1559, %1563 : vector<2x16xf32>
    %1565 = vector.extract_strided_slice %1539 {offsets = [0, 0], sizes = [2, 16], strides = [1, 1]} : vector<2x64xf32> to vector<2x16xf32>
    %1566 = arith.negf %1565 : vector<2x16xf32>
    %1567 = math.exp %1566 : vector<2x16xf32>
    %cst_414 = arith.constant 1.000000e+00 : f32
    %1568 = vector.broadcast %cst_414 : f32 to vector<2x16xf32>
    %1569 = arith.addf %1568, %1567 : vector<2x16xf32>
    %1570 = arith.divf %1568, %1569 : vector<2x16xf32>
    %1571 = vector.extract_strided_slice %1539 {offsets = [0, 16], sizes = [2, 16], strides = [1, 1]} : vector<2x64xf32> to vector<2x16xf32>
    %1572 = arith.negf %1571 : vector<2x16xf32>
    %1573 = math.exp %1572 : vector<2x16xf32>
    %cst_415 = arith.constant 1.000000e+00 : f32
    %1574 = vector.broadcast %cst_415 : f32 to vector<2x16xf32>
    %1575 = arith.addf %1574, %1573 : vector<2x16xf32>
    %1576 = arith.divf %1574, %1575 : vector<2x16xf32>
    %1577 = vector.extract_strided_slice %1539 {offsets = [0, 32], sizes = [2, 16], strides = [1, 1]} : vector<2x64xf32> to vector<2x16xf32>
    %1578 = math.tanh %1577 : vector<2x16xf32>
    %1579 = vector.extract_strided_slice %1539 {offsets = [0, 48], sizes = [2, 16], strides = [1, 1]} : vector<2x64xf32> to vector<2x16xf32>
    %1580 = arith.negf %1579 : vector<2x16xf32>
    %1581 = math.exp %1580 : vector<2x16xf32>
    %cst_416 = arith.constant 1.000000e+00 : f32
    %1582 = vector.broadcast %cst_416 : f32 to vector<2x16xf32>
    %1583 = arith.addf %1582, %1581 : vector<2x16xf32>
    %1584 = arith.divf %1582, %1583 : vector<2x16xf32>
    %1585 = arith.mulf %1576, %1522 : vector<2x16xf32>
    %1586 = arith.mulf %1570, %1578 : vector<2x16xf32>
    %1587 = arith.addf %1585, %1586 : vector<2x16xf32>
    %1588 = math.tanh %1587 : vector<2x16xf32>
    %1589 = arith.mulf %1584, %1588 : vector<2x16xf32>
    %1590 = arith.addf %1525, %1564 : vector<2x16xf32>
    %1591 = arith.addf %1526, %1589 : vector<2x16xf32>
    %c7_i32_417 = arith.constant 7 : i32
    %c7_i32_418 = arith.constant 7 : i32
    %1592 = arith.subi %c7_i32_418, %c7_i32_417 : i32
    %c2_i32_419 = arith.constant 2 : i32
    %1593 = arith.muli %c7_i32_417, %c2_i32_419 : i32
    %1594 = arith.index_cast %1593 : i32 to index
    %c0_420 = arith.constant 0 : index
    %1595 = vector.load %arg16[%1594, %c0_420] : memref<16x128xf32, #tpu.memory_space<vmem>>, vector<2x64xf32>
    %1596 = arith.truncf %1564 : vector<2x16xf32> to vector<2x16xbf16>
    %cst_421 = arith.constant dense<0.000000e+00> : vector<2x64xf32>
    %1597 = tpu.matmul %1596, %1127, %cst_421 {dimension_numbers = #tpu.dot_dimension_numbers<[1], [0], [0], [1], [0, 0, 1, 1], [], []>} : vector<2x16xbf16>, vector<16x64xbf16>, vector<2x64xf32> -> vector<2x64xf32>
    %1598 = arith.addf %1595, %1597 : vector<2x64xf32>
    %c2_i32_422 = arith.constant 2 : i32
    %1599 = arith.muli %1592, %c2_i32_422 : i32
    %1600 = arith.index_cast %1599 : i32 to index
    %c64_423 = arith.constant 64 : index
    %1601 = vector.load %arg16[%1600, %c64_423] : memref<16x128xf32, #tpu.memory_space<vmem>>, vector<2x64xf32>
    %1602 = arith.truncf %1589 : vector<2x16xf32> to vector<2x16xbf16>
    %cst_424 = arith.constant dense<0.000000e+00> : vector<2x64xf32>
    %1603 = tpu.matmul %1602, %1128, %cst_424 {dimension_numbers = #tpu.dot_dimension_numbers<[1], [0], [0], [1], [0, 0, 1, 1], [], []>} : vector<2x16xbf16>, vector<16x64xbf16>, vector<2x64xf32> -> vector<2x64xf32>
    %1604 = arith.addf %1601, %1603 : vector<2x64xf32>
    %1605 = vector.extract_strided_slice %1598 {offsets = [0, 0], sizes = [2, 16], strides = [1, 1]} : vector<2x64xf32> to vector<2x16xf32>
    %1606 = arith.negf %1605 : vector<2x16xf32>
    %1607 = math.exp %1606 : vector<2x16xf32>
    %cst_425 = arith.constant 1.000000e+00 : f32
    %1608 = vector.broadcast %cst_425 : f32 to vector<2x16xf32>
    %1609 = arith.addf %1608, %1607 : vector<2x16xf32>
    %1610 = arith.divf %1608, %1609 : vector<2x16xf32>
    %1611 = vector.extract_strided_slice %1598 {offsets = [0, 16], sizes = [2, 16], strides = [1, 1]} : vector<2x64xf32> to vector<2x16xf32>
    %1612 = arith.negf %1611 : vector<2x16xf32>
    %1613 = math.exp %1612 : vector<2x16xf32>
    %cst_426 = arith.constant 1.000000e+00 : f32
    %1614 = vector.broadcast %cst_426 : f32 to vector<2x16xf32>
    %1615 = arith.addf %1614, %1613 : vector<2x16xf32>
    %1616 = arith.divf %1614, %1615 : vector<2x16xf32>
    %1617 = vector.extract_strided_slice %1598 {offsets = [0, 32], sizes = [2, 16], strides = [1, 1]} : vector<2x64xf32> to vector<2x16xf32>
    %1618 = math.tanh %1617 : vector<2x16xf32>
    %1619 = vector.extract_strided_slice %1598 {offsets = [0, 48], sizes = [2, 16], strides = [1, 1]} : vector<2x64xf32> to vector<2x16xf32>
    %1620 = arith.negf %1619 : vector<2x16xf32>
    %1621 = math.exp %1620 : vector<2x16xf32>
    %cst_427 = arith.constant 1.000000e+00 : f32
    %1622 = vector.broadcast %cst_427 : f32 to vector<2x16xf32>
    %1623 = arith.addf %1622, %1621 : vector<2x16xf32>
    %1624 = arith.divf %1622, %1623 : vector<2x16xf32>
    %1625 = arith.mulf %1616, %1562 : vector<2x16xf32>
    %1626 = arith.mulf %1610, %1618 : vector<2x16xf32>
    %1627 = arith.addf %1625, %1626 : vector<2x16xf32>
    %1628 = math.tanh %1627 : vector<2x16xf32>
    %1629 = arith.mulf %1624, %1628 : vector<2x16xf32>
    %1630 = vector.extract_strided_slice %1604 {offsets = [0, 0], sizes = [2, 16], strides = [1, 1]} : vector<2x64xf32> to vector<2x16xf32>
    %1631 = arith.negf %1630 : vector<2x16xf32>
    %1632 = math.exp %1631 : vector<2x16xf32>
    %cst_428 = arith.constant 1.000000e+00 : f32
    %1633 = vector.broadcast %cst_428 : f32 to vector<2x16xf32>
    %1634 = arith.addf %1633, %1632 : vector<2x16xf32>
    %1635 = arith.divf %1633, %1634 : vector<2x16xf32>
    %1636 = vector.extract_strided_slice %1604 {offsets = [0, 16], sizes = [2, 16], strides = [1, 1]} : vector<2x64xf32> to vector<2x16xf32>
    %1637 = arith.negf %1636 : vector<2x16xf32>
    %1638 = math.exp %1637 : vector<2x16xf32>
    %cst_429 = arith.constant 1.000000e+00 : f32
    %1639 = vector.broadcast %cst_429 : f32 to vector<2x16xf32>
    %1640 = arith.addf %1639, %1638 : vector<2x16xf32>
    %1641 = arith.divf %1639, %1640 : vector<2x16xf32>
    %1642 = vector.extract_strided_slice %1604 {offsets = [0, 32], sizes = [2, 16], strides = [1, 1]} : vector<2x64xf32> to vector<2x16xf32>
    %1643 = math.tanh %1642 : vector<2x16xf32>
    %1644 = vector.extract_strided_slice %1604 {offsets = [0, 48], sizes = [2, 16], strides = [1, 1]} : vector<2x64xf32> to vector<2x16xf32>
    %1645 = arith.negf %1644 : vector<2x16xf32>
    %1646 = math.exp %1645 : vector<2x16xf32>
    %cst_430 = arith.constant 1.000000e+00 : f32
    %1647 = vector.broadcast %cst_430 : f32 to vector<2x16xf32>
    %1648 = arith.addf %1647, %1646 : vector<2x16xf32>
    %1649 = arith.divf %1647, %1648 : vector<2x16xf32>
    %1650 = arith.mulf %1641, %1587 : vector<2x16xf32>
    %1651 = arith.mulf %1635, %1643 : vector<2x16xf32>
    %1652 = arith.addf %1650, %1651 : vector<2x16xf32>
    %1653 = math.tanh %1652 : vector<2x16xf32>
    %1654 = arith.mulf %1649, %1653 : vector<2x16xf32>
    %1655 = arith.addf %1590, %1629 : vector<2x16xf32>
    %1656 = arith.addf %1591, %1654 : vector<2x16xf32>
    %c8_i32_431 = arith.constant 8 : i32
    %1657 = tpu.concatenate %1655, %1656 in 1 : vector<2x16xf32>, vector<2x16xf32> -> vector<2x32xf32>
    %cst_432 = arith.constant 1.250000e-01 : f32
    %1658 = vector.broadcast %cst_432 : f32 to vector<2x32xf32>
    %1659 = arith.mulf %1657, %1658 : vector<2x32xf32>
    %c0_433 = arith.constant 0 : index
    %c0_434 = arith.constant 0 : index
    %1660 = vector.load %arg13[%c0_433, %c0_434] : memref<2x32xf32, #tpu.memory_space<vmem>>, vector<2x32xf32>
    tpu.vector_store %arg13[%c0_433, %c0_434], %1659 {strides = array<i32>} : memref<2x32xf32, #tpu.memory_space<vmem>>, vector<2x32xf32>,
    return
  }
}

</mosaic_0001>

<bundles_post_ra>
// kernel: tpu_custom_call.1
= control target key start
LH: loop header
LB: loop body
LE: loop exit
PB: predicated region body
PF: predicated region fallthrough
CT: control target
= control target key end

     0   :  { %18 = vsyncpa [#allocation6], 0  ;;  %s6429_s0 = inlined_call_operand.hbm [shape: f32[16,16], index: 0, kind: input, shape index: {}]   ;;  %s6430_s1 = inlined_call_operand.hbm [shape: bf16[16,128], index: 1, kind: input, shape index: {}]   ;;  %s6431_s2 = inlined_call_operand.hbm [shape: bf16[16,64], index: 2, kind: input, shape index: {}]   ;;  %s6432_s3 = inlined_call_operand.hbm [shape: bf16[16,64], index: 3, kind: input, shape index: {}]   ;;  %s6433_s4 = inlined_call_operand.hbm [shape: f32[1,128], index: 4, kind: input, shape index: {}]   ;;  %s6434_s5 = inlined_call_operand.hbm [shape: bf16[32,128], index: 5, kind: input, shape index: {}]   ;;  %s6435_s6 = inlined_call_operand.hbm [shape: bf16[16,64], index: 6, kind: input, shape index: {}]   ;;  %s6436_s7 = inlined_call_operand.hbm [shape: bf16[16,64], index: 7, kind: input, shape index: {}]   ;;  %s6437_s8 = inlined_call_operand.hbm [shape: f32[1,128], index: 8, kind: input, shape index: {}]   ;;  %s6438_s9 = inlined_call_operand.vmem [shape: bf16[32,128], index: 9, kind: input, shape index: {}]   ;;  %s6439_s10 = inlined_call_operand.hbm [shape: bf16[16,64], index: 10, kind: input, shape index: {}]   ;;  %s6440_s11 = inlined_call_operand.hbm [shape: bf16[16,64], index: 11, kind: input, shape index: {}]   ;;  %s6441_s12 = inlined_call_operand.vmem [shape: f32[1,128], index: 12, kind: input, shape index: {}]   ;;  %s6442_s13 = inlined_call_operand.hbm [shape: f32[2,32], index: 13, kind: output, shape index: {}]  }
   0x1   :  { %19 = vsyncpa [#allocation9], 0 }
   0x2   :  { %20 = vsyncpa [#allocation12], 0 }
   0x3   :  { %21 = vsyncpa [#allocation15], 0 }
   0x4   :  { %22 = vsyncpa [#allocation18], 0 }
   0x5   :  { %23 = vsyncpa [#allocation21], 0 }
   0x6   :  { %24 = vsyncpa [#allocation7], 0  ;;  %s5405_s25 = smov [#allocation8]  }
   0x7   :  { %s42_s26 = sshll.u32 %s5405_s25, 4  ;;  %s43_s26 = int_to_ptr.vmem [resolvable:$true] %s42_s26 }
   0x8   :  { %s5159_s27 = scalar_lea.vmem %s43_s26, 128  ;;  %p5164_p1 = scmp.lt.s32.totalorder %s43_s26, %s43_s26 }
   0x9   :  { %p5160_p0 = scmp.ne.s32.totalorder %s43_s26, %s5159_s27  ;;  %p5165_p2 = scmp.lt.s32.totalorder %s5159_s27, %s5159_s27 }
   0xb   :  { %p5166_p3 = por %p5165_p2, %p5164_p1 }
   0xd   :  { %p5167_p4 = pnand %p5166_p3, %p5160_p0 }
   0xf   :  { %5170 = shalt.err (!%p5167_p4)
}
  0x10   :  { %s5406_s28 = smov 64   ;;  %s5407_s29 = smov 4  }
  0x11   :  { %48 = dma.hbm_to_vmem [thread:$0]  %s6430_s1, 128, %s43_s26, [#allocation9], %s5406_s28, %s5406_s28, %s5407_s29  }
  0x12   :  { %s5408_s15 = smov [#allocation11]   ;;  %s5409_s17 = smov [#allocation14]  }
  0x13   :  { %s66_s16 = sshll.u32 %s5408_s15, 4  ;;  %s88_s18 = sshll.u32 %s5409_s17, 4  ;;  %s67_s16 = int_to_ptr.vmem [resolvable:$true] %s66_s16  ;;  %s89_s18 = int_to_ptr.vmem [resolvable:$true] %s88_s18 }
  0x14   :  { %s5179_s19 = scalar_lea.vmem %s67_s16, 128  ;;  %p5184_p6 = scmp.lt.s32.totalorder %s67_s16, %s67_s16 }
  0x15   :  { %p5180_p5 = scmp.ne.s32.totalorder %s67_s16, %s5179_s19  ;;  %p5185_p7 = scmp.lt.s32.totalorder %s5179_s19, %s5179_s19 }
  0x17   :  { %p5186_p8 = por %p5185_p7, %p5184_p6 }
  0x19   :  { %p5187_p9 = pnand %p5186_p8, %p5180_p5 }
  0x1b   :  { %5190 = shalt.err (!%p5187_p9)
}
  0x1c   :  { %72 = dma.hbm_to_vmem [thread:$0]  %s6432_s3, 128, %s67_s16, [#allocation12], %s5406_s28, %s5406_s28, %s5407_s29  }
  0x1d   :  { %s5199_s1 = scalar_lea.vmem %s89_s18, 256  ;;  %p5204_p11 = scmp.lt.s32.totalorder %s89_s18, %s89_s18 }
  0x1e   :  { %p5200_p10 = scmp.ne.s32.totalorder %s89_s18, %s5199_s1  ;;  %p5205_p12 = scmp.lt.s32.totalorder %s5199_s1, %s5199_s1 }
  0x20   :  { %p5206_p13 = por %p5205_p12, %p5204_p11 }
  0x22   :  { %p5207_p0 = pnand %p5206_p13, %p5200_p10 }
  0x24   :  { %5210 = shalt.err (!%p5207_p0)
}
  0x25   :  { %94 = dma.hbm_to_vmem [thread:$0]  %s6434_s5, 256, %s89_s18, [#allocation15], %s5406_s28, %s5406_s28, %s5407_s29  }
  0x26   :  { %s5410_s24 = smov [#allocation17]   ;;  %s5411_s26 = smov [#allocation20]  }
  0x27   :  { %s112_s25 = sshll.u32 %s5410_s24, 4  ;;  %s136_s3 = sshll.u32 %s5411_s26, 4  ;;  %s113_s25 = int_to_ptr.vmem [resolvable:$true] %s112_s25  ;;  %s137_s3 = int_to_ptr.vmem [resolvable:$true] %s136_s3 }
  0x28   :  { %s5219_s27 = scalar_lea.vmem %s113_s25, 128  ;;  %p5224_p2 = scmp.lt.s32.totalorder %s113_s25, %s113_s25 }
  0x29   :  { %p5220_p1 = scmp.ne.s32.totalorder %s113_s25, %s5219_s27  ;;  %p5225_p3 = scmp.lt.s32.totalorder %s5219_s27, %s5219_s27 }
  0x2b   :  { %p5226_p4 = por %p5225_p3, %p5224_p2 }
  0x2d   :  { %p5227_p5 = pnand %p5226_p4, %p5220_p1 }
  0x2f   :  { %5230 = shalt.err (!%p5227_p5)
}
  0x30   :  { %118 = dma.hbm_to_vmem [thread:$0]  %s6436_s7, 128, %s113_s25, [#allocation18], %s5406_s28, %s5406_s28, %s5407_s29  }
  0x31   :  { %s5239_s5 = scalar_lea.vmem %s137_s3, 128  ;;  %p5244_p7 = scmp.lt.s32.totalorder %s137_s3, %s137_s3 }
  0x32   :  { %p5240_p6 = scmp.ne.s32.totalorder %s137_s3, %s5239_s5  ;;  %p5245_p8 = scmp.lt.s32.totalorder %s5239_s5, %s5239_s5 }
  0x34   :  { %p5246_p9 = por %p5245_p8, %p5244_p7 }
  0x36   :  { %p5247_p10 = pnand %p5246_p9, %p5240_p6 }
  0x38   :  { %5250 = shalt.err (!%p5247_p10)
}
  0x39   :  { %142 = dma.hbm_to_vmem [thread:$0]  %s6439_s10, 128, %s137_s3, [#allocation21], %s5406_s28, %s5406_s28, %s5407_s29  }
  0x3a   :  { %s5412_s17 = smov [#allocation5]  }
  0x3b   :  { %s30_s18 = sshll.u32 %s5412_s17, 4  ;;  %s31_s18 = int_to_ptr.vmem [resolvable:$true] %s30_s18 }
  0x3c   :  { %s5259_s19 = scalar_lea.vmem %s31_s18, 256  ;;  %p5264_p12 = scmp.lt.s32.totalorder %s31_s18, %s31_s18 }
  0x3d   :  { %p5260_p11 = scmp.ne.s32.totalorder %s31_s18, %s5259_s19  ;;  %p5265_p13 = scmp.lt.s32.totalorder %s5259_s19, %s5259_s19 }
  0x3f   :  { %p5266_p0 = por %p5265_p13, %p5264_p12 }
  0x41   :  { %p5267_p1 = pnand %p5266_p0, %p5260_p11 }
  0x43   :  { %5270 = shalt.err (!%p5267_p1)
}
  0x44   :  { %s5413_s7 = smov 128   ;;  %s5414_s20 = smov 8  }
  0x45   :  { %36 = dma.hbm_to_vmem [thread:$0]  %s6429_s0, 256, %s31_s18, [#allocation6], %s5413_s7, %s5413_s7, %s5414_s20  }
  0x46   :  { %s5415_s22 = smov [#allocation10]   ;;  %s5416_s24 = smov [#allocation13]  }
  0x47   :  { %s54_s23 = sshll.u32 %s5415_s22, 4  ;;  %s79_s10 = sshll.u32 %s5416_s24, 4  ;;  %s55_s23 = int_to_ptr.vmem [resolvable:$true] %s54_s23  ;;  %s80_s10 = int_to_ptr.vmem [resolvable:$true] %s79_s10 }
  0x48   :  { %s5279_s25 = scalar_lea.vmem %s55_s23, 128  ;;  %p5284_p3 = scmp.lt.s32.totalorder %s55_s23, %s55_s23 }
  0x49   :  { %p5280_p2 = scmp.ne.s32.totalorder %s55_s23, %s5279_s25  ;;  %p5285_p4 = scmp.lt.s32.totalorder %s5279_s25, %s5279_s25 }
  0x4b   :  { %p5286_p5 = por %p5285_p4, %p5284_p3 }
  0x4d   :  { %p5287_p6 = pnand %p5286_p5, %p5280_p2 }
  0x4f   :  { %5290 = shalt.err (!%p5287_p6)
}
  0x50   :  { %60 = dma.hbm_to_vmem [thread:$0]  %s6431_s2, 128, %s55_s23, [#allocation9], %s5406_s28, %s5406_s28, %s5407_s29  }
  0x51   :  { %s5299_s0 = scalar_lea.vmem %s80_s10, 16  ;;  %s5303_s27 = scalar_lea.vmem %s80_s10, 32 }
  0x52   :  { %p5300_p7 = scmp.ne.s32.totalorder %s80_s10, %s5299_s0  ;;  %p5304_p8 = scmp.lt.s32.totalorder %s80_s10, %s80_s10 }
  0x53   :  { %p5305_p9 = scmp.lt.s32.totalorder %s5303_s27, %s5299_s0 }
  0x55   :  { %p5306_p10 = por %p5305_p9, %p5304_p8 }
  0x57   :  { %p5307_p11 = pnand %p5306_p10, %p5300_p7 }
  0x59   :  { %5310 = shalt.err (!%p5307_p11)
}
  0x5a   :  { %82 = dma.hbm_to_vmem [thread:$0]  %s6433_s4, 16, %s80_s10, [#allocation12]  }
  0x5b   :  { %s5417_s5 = smov [#allocation16]   ;;  %s5418_s16 = smov [#allocation19]  }
  0x5c   :  { %s100_s15 = sshll.u32 %s5417_s5, 4  ;;  %s125_s17 = sshll.u32 %s5418_s16, 4  ;;  %s101_s15 = int_to_ptr.vmem [resolvable:$true] %s100_s15  ;;  %s126_s17 = int_to_ptr.vmem [resolvable:$true] %s125_s17 }
  0x5d   :  { %s5319_s18 = scalar_lea.vmem %s101_s15, 128  ;;  %p5324_p13 = scmp.lt.s32.totalorder %s101_s15, %s101_s15 }
  0x5e   :  { %p5320_p12 = scmp.ne.s32.totalorder %s101_s15, %s5319_s18  ;;  %p5325_p0 = scmp.lt.s32.totalorder %s5319_s18, %s5319_s18 }
  0x60   :  { %p5326_p1 = por %p5325_p0, %p5324_p13 }
  0x62   :  { %p5327_p2 = pnand %p5326_p1, %p5320_p12 }
  0x64   :  { %5330 = shalt.err (!%p5327_p2)
}
  0x65   :  { %106 = dma.hbm_to_vmem [thread:$0]  %s6435_s6, 128, %s101_s15, [#allocation15], %s5406_s28, %s5406_s28, %s5407_s29  }
  0x66   :  { %s5339_s4 = scalar_lea.vmem %s126_s17, 16  ;;  %s5343_s7 = scalar_lea.vmem %s126_s17, 32 }
  0x67   :  { %p5340_p3 = scmp.ne.s32.totalorder %s126_s17, %s5339_s4  ;;  %p5344_p4 = scmp.lt.s32.totalorder %s126_s17, %s126_s17 }
  0x68   :  { %p5345_p5 = scmp.lt.s32.totalorder %s5343_s7, %s5339_s4 }
  0x6a   :  { %p5346_p6 = por %p5345_p5, %p5344_p4 }
  0x6c   :  { %p5347_p7 = pnand %p5346_p6, %p5340_p3 }
  0x6e   :  { %5350 = shalt.err (!%p5347_p7)
}
  0x6f   :  { %128 = dma.hbm_to_vmem [thread:$0]  %s6437_s8, 16, %s126_s17, [#allocation18]  }
  0x70   :  { %s5419_s1 = smov [#allocation22]  }
  0x71   :  { %s148_s22 = sshll.u32 %s5419_s1, 4  ;;  %s149_s22 = int_to_ptr.vmem [resolvable:$true] %s148_s22 }
  0x72   :  { %s5359_s23 = scalar_lea.vmem %s149_s22, 128  ;;  %p5364_p9 = scmp.lt.s32.totalorder %s149_s22, %s149_s22 }
  0x73   :  { %p5360_p8 = scmp.ne.s32.totalorder %s149_s22, %s5359_s23  ;;  %p5365_p10 = scmp.lt.s32.totalorder %s5359_s23, %s5359_s23 }
  0x75   :  { %p5366_p11 = por %p5365_p10, %p5364_p9 }
  0x77   :  { %p5367_p12 = pnand %p5366_p11, %p5360_p8 }
  0x79   :  { %5370 = shalt.err (!%p5367_p12)
}
  0x7a   :  { %154 = dma.hbm_to_vmem [thread:$0]  %s6440_s11, 128, %s149_s22, [#allocation21], %s5406_s28, %s5406_s28, %s5407_s29  }
  0x7b   :  { %5391 = dma.done.wait [#allocation6], 256  }
  0x7c   :  { %5392 = vsyncadd [#allocation6], 4294967040 }
  0x7d   :  { %5393 = dma.done.wait [#allocation9], 256  }
  0x7e   :  { %5394 = vsyncadd [#allocation9], 4294967040 }
  0x7f   :  { %5395 = dma.done.wait [#allocation12], 144  }
  0x80   :  { %5396 = vsyncadd [#allocation12], 4294967152 }
  0x81   :  { %5397 = dma.done.wait [#allocation15], 384  }
  0x82   :  { %5398 = vsyncadd [#allocation15], 4294966912 }
  0x83   :  { %5399 = dma.done.wait [#allocation18], 144  }
  0x84   :  { %5400 = vsyncadd [#allocation18], 4294967152 }
  0x85   :  { %5401 = dma.done.wait [#allocation21], 256  }
  0x86   :  { %5402 = vsyncadd [#allocation21], 4294967040  ;;  %v5420_v0 = vmov 0.0   ;;  %vm5421_vm0 = vmmov 0   ;;  %v4756_v1 = vld [vmem:[#allocation8] sm:$0xff]   ;;  %v198_v2 = vld [vmem:[#allocation5] sm:$0xff] }
  0x87   :  { %4423 = vmatprep.subr.bf16.mxu0 %v5420_v0  ;;  %4425 = vmatprep.mubr.msk.bf16.mxu0 %vm5421_vm0, %v5420_v0  ;;  %v199_v3 = vld [vmem:[#allocation5 + $0x8] sm:$0xff]  ;;  %vm213_vm1 = vcmask 130048   ;;  %v5561_v5 = vld [vmem:[#allocation11] sm:$0xff]   ;;  %v5564_v6 = vld [vmem:[#allocation10] sm:$0xff]   ;;  %v5422_v7 = vmov 0   ;;  %s5423_s8 = smov 96  }
  0x88   :  { %4429 = vmatprep.subr.bf16.mxu1 %v5420_v0  ;;  %4431 = vmatprep.mubr.msk.bf16.mxu1 %vm5421_vm0, %v5420_v0  ;;  %v200_v4 = vpack.c.bf16 %v199_v3, %v198_v2  ;;  %v4212_v8 = vld [vmem:[#allocation13] ss:$0 sm:$0xff]  ;;  %s5424_s11 = smov 16   ;;  %s5425_s29 = smov 32   ;;  %vm415_vm2 = vcmask 123904   ;;  %vm421_vm3 = vcmask 255104  }
  0x89   :  { %4424 = vmatpush3.bf16.msra.mxu0 %v4756_v1  ;;  %4430 = vmatpush3.bf16.msra.mxu1 %v5564_v6  ;;  %s5426_s10 = smov 80   ;;  %vm1573_vm4 = vcmask 261120   ;;  %vm4190_vm5 = vcmask 254976  }
  0x8a   :  { %4435 = vmatprep.subr.bf16.mxu0 %v5420_v0  ;;  %4441 = vmatprep.subr.bf16.mxu1 %v5420_v0 }
  0x8c   :  { %4426 = vmatmul.mubr.msk.bf16.vlgmr.msra.gmra.mxu0 %vm213_vm1, %v200_v4  ;;  %4432 = vmatmul.mubr.bf16.vlgmr.msra.gmra.mxu1 %v5422_v7 }
  0x8d   :  { %4436 = vmatpush3.bf16.msra.mxu0 %v5561_v5  ;;  %4437 = vmatprep.mubr.msk.bf16.mxu0 %vm5421_vm0, %v5420_v0 }
  0x8e   :  { %4447 = vmatprep.subr.bf16.mxu0 %v5420_v0  ;;  %4442 = vmatpush3.bf16.msra.mxu1 %v5564_v6 }
  0x8f   :  { %4443 = vmatprep.mubr.msk.bf16.mxu1 %vm5421_vm0, %v5420_v0  ;;  %4453 = vmatprep.subr.bf16.mxu1 %v5420_v0 }
  0x94   :  { %4438 = vmatmul.mubr.bf16.vlgmr.msra.gmra.mxu0 %v5422_v7 }
  0x95   :  { %4448 = vmatpush3.bf16.msra.mxu0 %v5561_v5  ;;  %4449 = vmatprep.mubr.msk.bf16.mxu0 %vm5421_vm0, %v5420_v0 }
  0x96   :  { %4459 = vmatprep.subr.bf16.mxu0 %v5420_v0 }
 0x14c   :  { %v251_v9 = vpop.f32.mrf.mxu0  ;;  %v304_v12 = vpop.f32.mrf.mxu1 }
 0x14d   :  { %v252_v10 = vadd.f32 %v4212_v8, %v251_v9 }
 0x14e   :  { %v4427_v11 = vpop.f32.mrf.mxu0  ;;  %v4433_v15 = vpop.f32.mrf.mxu1 }
 0x14f   :  { %258 = vst [vmem:[#allocation4] sm:$0xff] %v252_v10 }
 0x150   :  { %v254_v13 = vpop.f32.mrf.mxu0  ;;  %v307_v17 = vpop.f32.mrf.mxu1 }
 0x151   :  { %v255_v14 = vadd.f32 %v4212_v8, %v254_v13 }
 0x152   :  { %v4428_v16 = vpop.f32.mrf.mxu0  ;;  %v4434_v19 = vpop.f32.mrf.mxu1 }
 0x153   :  { %259 = vst [vmem:[#allocation4 + $0x8] sm:$0xff] %v255_v14 }
 0x154   :  { %v352_v18 = vpop.f32.mrf.mxu0 }
 0x155   :  { %359 = vrot.lane.b32.xlu0 %v352_v18, %s5406_s28 }
 0x156   :  { %v4439_v20 = vpop.f32.mrf.mxu0  ;;  %v260_v34 = vld [vmem:[#allocation4] sm:$0x3]  ;;  %v423_v19 = vld [vmem:[#allocation4 + $0x2] sm:$0x3] }
 0x157   :  { %v310_v37 = vadd.f32 %v304_v12, %v260_v34 }
 0x158   :  { %v355_v21 = vpop.f32.mrf.mxu0 }
 0x159   :  { %v4217_v40 = vmul.f32 -1.442695, %v310_v37 }
 0x15a   :  { %v4440_v22 = vpop.f32.mrf.mxu0  ;;  %v311_v23 = vld [vmem:[#allocation4 + $0xe] sm:$0x3]  ;;  %v472_v62 = vld [vmem:[#allocation4 + $0xc] sm:$0x3] }
 0x1c7   :  { %v360_v24 = vpop.permute.xlu0 %359 }
 0x1c8   :  { %v362_v25 = vadd.f32 %v360_v24, %v311_v23 }
 0x1ca   :  { %4767 = vtanh.f32 %v362_v25  ;;  %v4218_v27 = vmul.f32 -1.442695, %v362_v25 }
 0x1cc   :  { %4769 = vpow2.f32 %v4218_v27 }
 0x1d7   :  { %v4768_v26 = vpop.eup %4767 }
 0x1d8   :  { %396 = vrot.lane.b32.xlu0 %v4768_v26, %s5423_s8 }
 0x1d9   :  { %v4770_v28 = vpop.eup %4769 }
 0x1da   :  { %v390_v29 = vadd.f32 1.0, %v4770_v28 }
 0x1dc   :  { %4771 = vrcp.f32 %v390_v29 }
 0x1e9   :  { %v4772_v30 = vpop.eup %4771 }
 0x1ea   :  { %v394_v33 = vmul.f32 0.0, %v4772_v30 }
 0x24a   :  { %v397_v31 = vpop.permute.xlu0 %396 }
 0x24b   :  { %v399_v32 = vmul.f32 %v4772_v30, %v397_v31 }
 0x24d   :  { %401 = vrot.lane.b32.xlu1 %v399_v32, %s5424_s11 }
 0x2bf   :  { %v402_v35 = vpop.permute.xlu1 %401 }
 0x2c0   :  { %v5586_v36 = vadd.f32 %v402_v35, %v394_v33 }
 0x2c2   :  { %4773 = vtanh.f32 %v5586_v36 }
 0x2c3   :  { %4775 = vtanh.f32 %v310_v37 }
 0x2c4   :  { %4777 = vpow2.f32 %v4217_v40 }
 0x2cf   :  { %v4774_v38 = vpop.eup %4773 }
 0x2d0   :  { %407 = vrot.lane.b32.xlu1 %v4774_v38, %s5425_s29  ;;  %v4776_v39 = vpop.eup %4775 }
 0x2d1   :  { %v4778_v41 = vpop.eup %4777 }
 0x2d2   :  { %v366_v42 = vadd.f32 1.0, %v4778_v41 }
 0x2d4   :  { %372 = vrot.lane.b32.xlu1 %v4776_v39, %s5423_s8  ;;  %4779 = vrcp.f32 %v366_v42 }
 0x2e1   :  { %v4780_v46 = vpop.eup %4779 }
 0x2e2   :  { %v370_v50 = vmul.f32 0.0, %v4780_v46 }
 0x342   :  { %v408_v43 = vpop.permute.xlu1 %407 }
 0x343   :  { %v5591_v44 = vmul.f32 %v4772_v30, %v408_v43 }
 0x345   :  { %v473_v45 = vpack.c.bf16 %v5591_v44, %v5591_v44 }
 0x346   :  { %v373_v47 = vpop.permute.xlu1 %372 }
 0x347   :  { %v375_v48 = vmul.f32 %v4780_v46, %v373_v47  ;;  %475 = vrot.lane.b32.xlu0 %v473_v45, %s5424_s11 }
 0x349   :  { %377 = vrot.lane.b32.xlu1 %v375_v48, %s5424_s11 }
 0x3b9   :  { %v476_v49 = vpop.permute.xlu0 %475 }
 0x3ba   :  { %4450 = vmatmul.mubr.msk.bf16.vlgmr.msra.gmra.mxu0 %vm213_vm1, %v476_v49 }
 0x3bb   :  { %v378_v51 = vpop.permute.xlu1 %377  ;;  %4460 = vmatpush3.bf16.msra.mxu0 %v5561_v5  ;;  %4461 = vmatprep.mubr.msk.bf16.mxu0 %vm5421_vm0, %v5420_v0 }
 0x3bc   :  { %v5601_v52 = vadd.f32 %v378_v51, %v370_v50  ;;  %4471 = vmatprep.subr.bf16.mxu0 %v5420_v0 }
 0x3be   :  { %4781 = vtanh.f32 %v5601_v52 }
 0x3cb   :  { %v4782_v53 = vpop.eup %4781 }
 0x3cc   :  { %383 = vrot.lane.b32.xlu1 %v4782_v53, %s5425_s29 }
 0x43e   :  { %v384_v54 = vpop.permute.xlu1 %383 }
 0x43f   :  { %v5606_v55 = vmul.f32 %v4780_v46, %v384_v54  ;;  %v632_v46 = vld [vmem:[#allocation4 + $0xa] sm:$0x3] }
 0x441   :  { %v424_v56 = vpack.c.bf16 %v5606_v55, %v5606_v55 }
 0x443   :  { %426 = vrot.lane.b32.xlu1 %v424_v56, %s5426_s10 }
 0x47a   :  { %v514_v57 = vpop.f32.mrf.mxu0 }
 0x47b   :  { %521 = vrot.lane.b32.xlu0 %v514_v57, %s5406_s28 }
 0x47c   :  { %v4451_v58 = vpop.f32.mrf.mxu0 }
 0x47e   :  { %v517_v59 = vpop.f32.mrf.mxu0 }
 0x480   :  { %v4452_v60 = vpop.f32.mrf.mxu0 }
 0x4b5   :  { %v427_v61 = vpop.permute.xlu1 %426 }
 0x4b6   :  { %4444 = vmatmul.mubr.msk.bf16.vlgmr.msra.gmra.mxu1 %vm213_vm1, %v427_v61 }
 0x4b7   :  { %4454 = vmatpush3.bf16.msra.mxu1 %v5564_v6  ;;  %4455 = vmatprep.mubr.msk.bf16.mxu1 %vm5421_vm0, %v5420_v0 }
 0x4b8   :  { %4465 = vmatprep.subr.bf16.mxu1 %v5420_v0 }
 0x4ed   :  { %v522_v63 = vpop.permute.xlu0 %521 }
 0x4ee   :  { %v524_v1 = vadd.f32 %v522_v63, %v472_v62 }
 0x4f0   :  { %4783 = vtanh.f32 %v524_v1  ;;  %v4222_v3 = vmul.f32 -1.442695, %v524_v1  ;;  %v583_v1 = vld [vmem:[#allocation4 + $0x4] sm:$0x3] }
 0x4f2   :  { %4785 = vpow2.f32 %v4222_v3 }
 0x4fd   :  { %v4784_v2 = vpop.eup %4783 }
 0x4fe   :  { %558 = vrot.lane.b32.xlu0 %v4784_v2, %s5423_s8 }
 0x4ff   :  { %v4786_v4 = vpop.eup %4785 }
 0x500   :  { %v552_v8 = vadd.f32 1.0, %v4786_v4 }
 0x502   :  { %4787 = vrcp.f32 %v552_v8 }
 0x50f   :  { %v4788_v9 = vpop.eup %4787 }
 0x510   :  { %v556_v16 = vmul.f32 %v4788_v9, %v5586_v36 }
 0x570   :  { %v559_v10 = vpop.permute.xlu0 %558 }
 0x571   :  { %v561_v11 = vmul.f32 %v4788_v9, %v559_v10 }
 0x573   :  { %563 = vrot.lane.b32.xlu0 %v561_v11, %s5424_s11 }
 0x576   :  { %v465_v12 = vpop.f32.mrf.mxu1 }
 0x577   :  { %v471_v20 = vadd.f32 %v465_v12, %v423_v19 }
 0x578   :  { %v4445_v13 = vpop.f32.mrf.mxu1 }
 0x579   :  { %v4221_v23 = vmul.f32 -1.442695, %v471_v20 }
 0x57a   :  { %v468_v14 = vpop.f32.mrf.mxu1 }
 0x57c   :  { %v4446_v15 = vpop.f32.mrf.mxu1 }
 0x5e5   :  { %v564_v17 = vpop.permute.xlu0 %563 }
 0x5e6   :  { %v5620_v18 = vadd.f32 %v564_v17, %v556_v16 }
 0x5e8   :  { %4789 = vtanh.f32 %v5620_v18 }
 0x5e9   :  { %4791 = vtanh.f32 %v471_v20 }
 0x5ea   :  { %4793 = vpow2.f32 %v4221_v23 }
 0x5f5   :  { %v4790_v21 = vpop.eup %4789 }
 0x5f6   :  { %569 = vrot.lane.b32.xlu0 %v4790_v21, %s5425_s29  ;;  %v4792_v22 = vpop.eup %4791 }
 0x5f7   :  { %v4794_v24 = vpop.eup %4793 }
 0x5f8   :  { %v528_v25 = vadd.f32 1.0, %v4794_v24 }
 0x5fa   :  { %534 = vrot.lane.b32.xlu0 %v4792_v22, %s5423_s8  ;;  %4795 = vrcp.f32 %v528_v25 }
 0x607   :  { %v4796_v30 = vpop.eup %4795 }
 0x608   :  { %v532_v33 = vmul.f32 %v4796_v30, %v5601_v52 }
 0x668   :  { %v570_v26 = vpop.permute.xlu0 %569 }
 0x669   :  { %v5625_v27 = vmul.f32 %v4788_v9, %v570_v26 }
 0x66b   :  { %v633_v28 = vpack.c.bf16 %v5625_v27, %v5625_v27 }
 0x66c   :  { %v535_v29 = vpop.permute.xlu0 %534 }
 0x66d   :  { %635 = vrot.lane.b32.xlu1 %v633_v28, %s5424_s11  ;;  %v537_v31 = vmul.f32 %v4796_v30, %v535_v29 }
 0x671   :  { %539 = vrot.lane.b32.xlu1 %v537_v31, %s5424_s11  ;;  %v792_v31 = vld [vmem:[#allocation4 + $0x8] sm:$0x3] }
 0x6df   :  { %v636_v32 = vpop.permute.xlu1 %635 }
 0x6e0   :  { %4462 = vmatmul.mubr.msk.bf16.vlgmr.msra.gmra.mxu0 %vm213_vm1, %v636_v32 }
 0x6e1   :  { %4472 = vmatpush3.bf16.msra.mxu0 %v5561_v5  ;;  %4473 = vmatprep.mubr.msk.bf16.mxu0 %vm5421_vm0, %v5420_v0 }
 0x6e2   :  { %4483 = vmatprep.subr.bf16.mxu0 %v5420_v0 }
 0x6e3   :  { %v540_v34 = vpop.permute.xlu1 %539 }
 0x6e4   :  { %v5637_v35 = vadd.f32 %v540_v34, %v532_v33 }
 0x6e6   :  { %4797 = vtanh.f32 %v5637_v35 }
 0x6f3   :  { %v4798_v36 = vpop.eup %4797 }
 0x6f4   :  { %545 = vrot.lane.b32.xlu1 %v4798_v36, %s5425_s29 }
 0x766   :  { %v546_v37 = vpop.permute.xlu1 %545 }
 0x767   :  { %v5641_v38 = vmul.f32 %v4796_v30, %v546_v37 }
 0x769   :  { %v584_v39 = vpack.c.bf16 %v5641_v38, %v5641_v38 }
 0x76b   :  { %586 = vrot.lane.b32.xlu1 %v584_v39, %s5426_s10 }
 0x7a0   :  { %v674_v40 = vpop.f32.mrf.mxu0 }
 0x7a1   :  { %681 = vrot.lane.b32.xlu0 %v674_v40, %s5406_s28 }
 0x7a2   :  { %v4463_v41 = vpop.f32.mrf.mxu0 }
 0x7a4   :  { %v677_v42 = vpop.f32.mrf.mxu0 }
 0x7a6   :  { %v4464_v43 = vpop.f32.mrf.mxu0 }
 0x7dd   :  { %v587_v45 = vpop.permute.xlu1 %586 }
 0x7de   :  { %4456 = vmatmul.mubr.msk.bf16.vlgmr.msra.gmra.mxu1 %vm213_vm1, %v587_v45 }
 0x7df   :  { %4466 = vmatpush3.bf16.msra.mxu1 %v5564_v6  ;;  %4467 = vmatprep.mubr.msk.bf16.mxu1 %vm5421_vm0, %v5420_v0 }
 0x7e0   :  { %4477 = vmatprep.subr.bf16.mxu1 %v5420_v0 }
 0x813   :  { %v682_v47 = vpop.permute.xlu0 %681 }
 0x814   :  { %v684_v48 = vadd.f32 %v682_v47, %v632_v46 }
 0x816   :  { %4799 = vtanh.f32 %v684_v48  ;;  %v4226_v50 = vmul.f32 -1.442695, %v684_v48 }
 0x818   :  { %4801 = vpow2.f32 %v4226_v50  ;;  %v743_v50 = vld [vmem:[#allocation4 + $0x6] sm:$0x3] }
 0x823   :  { %v4800_v49 = vpop.eup %4799 }
 0x824   :  { %718 = vrot.lane.b32.xlu0 %v4800_v49, %s5423_s8 }
 0x825   :  { %v4802_v51 = vpop.eup %4801 }
 0x826   :  { %v712_v52 = vadd.f32 1.0, %v4802_v51 }
 0x828   :  { %4803 = vrcp.f32 %v712_v52 }
 0x835   :  { %v4804_v53 = vpop.eup %4803 }
 0x836   :  { %v716_v61 = vmul.f32 %v4804_v53, %v5620_v18 }
 0x896   :  { %v719_v54 = vpop.permute.xlu0 %718 }
 0x897   :  { %v721_v56 = vmul.f32 %v4804_v53, %v719_v54 }
 0x899   :  { %723 = vrot.lane.b32.xlu0 %v721_v56, %s5424_s11 }
 0x89e   :  { %v625_v57 = vpop.f32.mrf.mxu1 }
 0x89f   :  { %v631_v2 = vadd.f32 %v625_v57, %v583_v1 }
 0x8a0   :  { %v4457_v58 = vpop.f32.mrf.mxu1 }
 0x8a1   :  { %v4225_v8 = vmul.f32 -1.442695, %v631_v2 }
 0x8a2   :  { %v628_v59 = vpop.f32.mrf.mxu1 }
 0x8a4   :  { %v4458_v60 = vpop.f32.mrf.mxu1 }
 0x90b   :  { %v724_v62 = vpop.permute.xlu0 %723 }
 0x90c   :  { %v5655_v63 = vadd.f32 %v724_v62, %v716_v61 }
 0x90e   :  { %4805 = vtanh.f32 %v5655_v63 }
 0x90f   :  { %4807 = vtanh.f32 %v631_v2 }
 0x910   :  { %4809 = vpow2.f32 %v4225_v8 }
 0x91b   :  { %v4806_v3 = vpop.eup %4805 }
 0x91c   :  { %729 = vrot.lane.b32.xlu1 %v4806_v3, %s5425_s29  ;;  %v4808_v4 = vpop.eup %4807 }
 0x91d   :  { %v4810_v9 = vpop.eup %4809 }
 0x91e   :  { %v688_v10 = vadd.f32 1.0, %v4810_v9 }
 0x920   :  { %694 = vrot.lane.b32.xlu1 %v4808_v4, %s5423_s8  ;;  %4811 = vrcp.f32 %v688_v10 }
 0x92d   :  { %v4812_v15 = vpop.eup %4811 }
 0x92e   :  { %v692_v18 = vmul.f32 %v4812_v15, %v5637_v35 }
 0x98e   :  { %v730_v11 = vpop.permute.xlu1 %729 }
 0x98f   :  { %v5660_v12 = vmul.f32 %v4804_v53, %v730_v11 }
 0x991   :  { %v793_v13 = vpack.c.bf16 %v5660_v12, %v5660_v12 }
 0x992   :  { %v695_v14 = vpop.permute.xlu1 %694 }
 0x993   :  { %795 = vrot.lane.b32.xlu0 %v793_v13, %s5424_s11  ;;  %v697_v16 = vmul.f32 %v4812_v15, %v695_v14 }
 0x997   :  { %699 = vrot.lane.b32.xlu0 %v697_v16, %s5424_s11 }
 0xa05   :  { %v796_v17 = vpop.permute.xlu0 %795 }
 0xa06   :  { %4474 = vmatmul.mubr.msk.bf16.vlgmr.msra.gmra.mxu0 %vm213_vm1, %v796_v17 }
 0xa07   :  { %4484 = vmatpush3.bf16.msra.mxu0 %v5561_v5  ;;  %4485 = vmatprep.mubr.msk.bf16.mxu0 %vm5421_vm0, %v5420_v0 }
 0xa08   :  { %4495 = vmatprep.subr.bf16.mxu0 %v5420_v0 }
 0xa09   :  { %v700_v19 = vpop.permute.xlu0 %699 }
 0xa0a   :  { %v5672_v20 = vadd.f32 %v700_v19, %v692_v18  ;;  %v952_v18 = vld [vmem:[#allocation4 + $0x6] sm:$0x3] }
 0xa0c   :  { %4813 = vtanh.f32 %v5672_v20 }
 0xa19   :  { %v4814_v21 = vpop.eup %4813 }
 0xa1a   :  { %705 = vrot.lane.b32.xlu1 %v4814_v21, %s5425_s29 }
 0xa8c   :  { %v706_v22 = vpop.permute.xlu1 %705 }
 0xa8d   :  { %v5676_v23 = vmul.f32 %v4812_v15, %v706_v22 }
 0xa8f   :  { %v744_v24 = vpack.c.bf16 %v5676_v23, %v5676_v23 }
 0xa91   :  { %746 = vrot.lane.b32.xlu1 %v744_v24, %s5426_s10 }
 0xac6   :  { %v834_v25 = vpop.f32.mrf.mxu0 }
 0xac7   :  { %841 = vrot.lane.b32.xlu0 %v834_v25, %s5406_s28 }
 0xac8   :  { %v4475_v26 = vpop.f32.mrf.mxu0 }
 0xaca   :  { %v837_v28 = vpop.f32.mrf.mxu0 }
 0xacc   :  { %v4476_v29 = vpop.f32.mrf.mxu0 }
 0xb03   :  { %v747_v30 = vpop.permute.xlu1 %746 }
 0xb04   :  { %4468 = vmatmul.mubr.msk.bf16.vlgmr.msra.gmra.mxu1 %vm213_vm1, %v747_v30  ;;  %v903_v30 = vld [vmem:[#allocation4 + $0x8] sm:$0x3] }
 0xb05   :  { %4478 = vmatpush3.bf16.msra.mxu1 %v5564_v6  ;;  %4479 = vmatprep.mubr.msk.bf16.mxu1 %vm5421_vm0, %v5420_v0 }
 0xb06   :  { %4489 = vmatprep.subr.bf16.mxu1 %v5420_v0 }
 0xb39   :  { %v842_v32 = vpop.permute.xlu0 %841 }
 0xb3a   :  { %v844_v33 = vadd.f32 %v842_v32, %v792_v31 }
 0xb3c   :  { %4815 = vtanh.f32 %v844_v33  ;;  %v4230_v35 = vmul.f32 -1.442695, %v844_v33 }
 0xb3e   :  { %4817 = vpow2.f32 %v4230_v35 }
 0xb49   :  { %v4816_v34 = vpop.eup %4815 }
 0xb4a   :  { %878 = vrot.lane.b32.xlu0 %v4816_v34, %s5423_s8 }
 0xb4b   :  { %v4818_v36 = vpop.eup %4817 }
 0xb4c   :  { %v872_v37 = vadd.f32 1.0, %v4818_v36 }
 0xb4e   :  { %4819 = vrcp.f32 %v872_v37 }
 0xb5b   :  { %v4820_v39 = vpop.eup %4819 }
 0xb5c   :  { %v876_v47 = vmul.f32 %v4820_v39, %v5655_v63 }
 0xbbc   :  { %v879_v40 = vpop.permute.xlu0 %878 }
 0xbbd   :  { %v881_v41 = vmul.f32 %v4820_v39, %v879_v40 }
 0xbbf   :  { %883 = vrot.lane.b32.xlu1 %v881_v41, %s5424_s11 }
 0xbc4   :  { %v785_v42 = vpop.f32.mrf.mxu1 }
 0xbc5   :  { %v791_v51 = vadd.f32 %v785_v42, %v743_v50 }
 0xbc6   :  { %v4469_v43 = vpop.f32.mrf.mxu1 }
 0xbc7   :  { %v4229_v54 = vmul.f32 -1.442695, %v791_v51 }
 0xbc8   :  { %v788_v45 = vpop.f32.mrf.mxu1 }
 0xbca   :  { %v4470_v46 = vpop.f32.mrf.mxu1 }
 0xc31   :  { %v884_v48 = vpop.permute.xlu1 %883 }
 0xc32   :  { %v5690_v49 = vadd.f32 %v884_v48, %v876_v47 }
 0xc34   :  { %4821 = vtanh.f32 %v5690_v49 }
 0xc35   :  { %4823 = vtanh.f32 %v791_v51 }
 0xc36   :  { %4825 = vpow2.f32 %v4229_v54 }
 0xc41   :  { %v4822_v52 = vpop.eup %4821 }
 0xc42   :  { %889 = vrot.lane.b32.xlu0 %v4822_v52, %s5425_s29  ;;  %v4824_v53 = vpop.eup %4823 }
 0xc43   :  { %v4826_v56 = vpop.eup %4825 }
 0xc44   :  { %v848_v57 = vadd.f32 1.0, %v4826_v56 }
 0xc46   :  { %854 = vrot.lane.b32.xlu0 %v4824_v53, %s5423_s8  ;;  %4827 = vrcp.f32 %v848_v57 }
 0xc53   :  { %v4828_v62 = vpop.eup %4827 }
 0xc54   :  { %v852_v2 = vmul.f32 %v4828_v62, %v5672_v20 }
 0xcb4   :  { %v890_v58 = vpop.permute.xlu0 %889 }
 0xcb5   :  { %v5695_v59 = vmul.f32 %v4820_v39, %v890_v58 }
 0xcb7   :  { %v953_v60 = vpack.c.bf16 %v5695_v59, %v5695_v59 }
 0xcb8   :  { %v855_v61 = vpop.permute.xlu0 %854 }
 0xcb9   :  { %955 = vrot.lane.b32.xlu1 %v953_v60, %s5424_s11  ;;  %v857_v63 = vmul.f32 %v4828_v62, %v855_v61 }
 0xcbd   :  { %859 = vrot.lane.b32.xlu1 %v857_v63, %s5424_s11 }
 0xd2b   :  { %v956_v1 = vpop.permute.xlu1 %955 }
 0xd2c   :  { %4486 = vmatmul.mubr.msk.bf16.vlgmr.msra.gmra.mxu0 %vm213_vm1, %v956_v1 }
 0xd2d   :  { %4496 = vmatpush3.bf16.msra.mxu0 %v5561_v5  ;;  %4497 = vmatprep.mubr.msk.bf16.mxu0 %vm5421_vm0, %v5420_v0 }
 0xd2e   :  { %4507 = vmatprep.subr.bf16.mxu0 %v5420_v0 }
 0xd2f   :  { %v860_v3 = vpop.permute.xlu1 %859 }
 0xd30   :  { %v862_v4 = vadd.f32 %v860_v3, %v852_v2 }
 0xd32   :  { %4829 = vtanh.f32 %v862_v4 }
 0xd3f   :  { %v4830_v8 = vpop.eup %4829 }
 0xd40   :  { %865 = vrot.lane.b32.xlu0 %v4830_v8, %s5425_s29 }
 0xdb2   :  { %v866_v9 = vpop.permute.xlu0 %865 }
 0xdb3   :  { %v5708_v10 = vmul.f32 %v4828_v62, %v866_v9 }
 0xdb5   :  { %v904_v11 = vpack.c.bf16 %v5708_v10, %v5708_v10 }
 0xdb7   :  { %906 = vrot.lane.b32.xlu1 %v904_v11, %s5426_s10 }
 0xdec   :  { %v994_v13 = vpop.f32.mrf.mxu0 }
 0xded   :  { %1001 = vrot.lane.b32.xlu0 %v994_v13, %s5406_s28  ;;  %v1063_v13 = vld [vmem:[#allocation4 + $0xa] sm:$0x3] }
 0xdee   :  { %v4487_v14 = vpop.f32.mrf.mxu0 }
 0xdf0   :  { %v997_v15 = vpop.f32.mrf.mxu0 }
 0xdf2   :  { %v4488_v16 = vpop.f32.mrf.mxu0 }
 0xe29   :  { %v907_v17 = vpop.permute.xlu1 %906 }
 0xe2a   :  { %4480 = vmatmul.mubr.msk.bf16.vlgmr.msra.gmra.mxu1 %vm213_vm1, %v907_v17 }
 0xe2b   :  { %4490 = vmatpush3.bf16.msra.mxu1 %v5564_v6  ;;  %4491 = vmatprep.mubr.msk.bf16.mxu1 %vm5421_vm0, %v5420_v0 }
 0xe2c   :  { %4501 = vmatprep.subr.bf16.mxu1 %v5420_v0 }
 0xe5f   :  { %v1002_v19 = vpop.permute.xlu0 %1001 }
 0xe60   :  { %v1004_v20 = vadd.f32 %v1002_v19, %v952_v18 }
 0xe62   :  { %4831 = vtanh.f32 %v1004_v20  ;;  %v4234_v22 = vmul.f32 -1.442695, %v1004_v20 }
 0xe64   :  { %4833 = vpow2.f32 %v4234_v22 }
 0xe6f   :  { %v4832_v21 = vpop.eup %4831 }
 0xe70   :  { %1038 = vrot.lane.b32.xlu1 %v4832_v21, %s5423_s8 }
 0xe71   :  { %v4834_v24 = vpop.eup %4833 }
 0xe72   :  { %v1032_v25 = vadd.f32 1.0, %v4834_v24 }
 0xe74   :  { %4835 = vrcp.f32 %v1032_v25 }
 0xe81   :  { %v4836_v26 = vpop.eup %4835 }
 0xe82   :  { %v1036_v39 = vmul.f32 %v4836_v26, %v5690_v49 }
 0xee2   :  { %v1039_v28 = vpop.permute.xlu1 %1038 }
 0xee3   :  { %v1041_v29 = vmul.f32 %v4836_v26, %v1039_v28 }
 0xee5   :  { %1043 = vrot.lane.b32.xlu0 %v1041_v29, %s5424_s11 }
 0xeea   :  { %v945_v31 = vpop.f32.mrf.mxu1 }
 0xeeb   :  { %v951_v32 = vadd.f32 %v945_v31, %v903_v30 }
 0xeec   :  { %v4481_v33 = vpop.f32.mrf.mxu1 }
 0xeed   :  { %4837 = vtanh.f32 %v951_v32  ;;  %v4233_v37 = vmul.f32 -1.442695, %v951_v32 }
 0xeee   :  { %v948_v34 = vpop.f32.mrf.mxu1 }
 0xeef   :  { %4839 = vpow2.f32 %v4233_v37 }
 0xef0   :  { %v4482_v35 = vpop.f32.mrf.mxu1 }
 0xefa   :  { %v4838_v36 = vpop.eup %4837 }
 0xefb   :  { %1014 = vrot.lane.b32.xlu0 %v4838_v36, %s5423_s8 }
 0xefc   :  { %v4840_v42 = vpop.eup %4839 }
 0xefd   :  { %v1008_v43 = vadd.f32 1.0, %v4840_v42 }
 0xf57   :  { %v1044_v40 = vpop.permute.xlu0 %1043 }
 0xf58   :  { %v5723_v41 = vadd.f32 %v1044_v40, %v1036_v39 }
 0xf5a   :  { %4841 = vtanh.f32 %v5723_v41 }
 0xf5b   :  { %4843 = vrcp.f32 %v1008_v43 }
 0xf67   :  { %v4842_v45 = vpop.eup %4841 }
 0xf68   :  { %1049 = vrot.lane.b32.xlu1 %v4842_v45, %s5425_s29  ;;  %v4844_v46 = vpop.eup %4843 }
 0xf69   :  { %v1012_v52 = vmul.f32 %v4844_v46, %v862_v4  ;;  %v1112_v4 = vld [vmem:[#allocation4 + $0x4] sm:$0x3] }
 0xf6d   :  { %v1015_v47 = vpop.permute.xlu0 %1014 }
 0xf6e   :  { %v1017_v48 = vmul.f32 %v4844_v46, %v1015_v47 }
 0xf70   :  { %1019 = vrot.lane.b32.xlu0 %v1017_v48, %s5424_s11 }
 0xfda   :  { %v1050_v50 = vpop.permute.xlu1 %1049 }
 0xfdb   :  { %v5728_v51 = vmul.f32 %v4836_v26, %v1050_v50 }
 0xfdd   :  { %v1113_v49 = vpack.c.bf16 %v5728_v51, %v5728_v51 }
 0xfdf   :  { %1115 = vrot.lane.b32.xlu1 %v1113_v49, %s5424_s11 }
 0xfe2   :  { %v1020_v53 = vpop.permute.xlu0 %1019 }
 0xfe3   :  { %v1022_v54 = vadd.f32 %v1020_v53, %v1012_v52 }
 0xfe5   :  { %4845 = vtanh.f32 %v1022_v54 }
 0xff2   :  { %v4846_v56 = vpop.eup %4845 }
 0xff3   :  { %1025 = vrot.lane.b32.xlu1 %v4846_v56, %s5425_s29 }
0x1051   :  { %v1116_v57 = vpop.permute.xlu1 %1115 }
0x1052   :  { %4498 = vmatmul.mubr.msk.bf16.vlgmr.msra.gmra.mxu0 %vm213_vm1, %v1116_v57  ;;  %v1223_v57 = vld [vmem:[#allocation4 + $0xc] sm:$0x3] }
0x1053   :  { %4508 = vmatpush3.bf16.msra.mxu0 %v5561_v5  ;;  %4509 = vmatprep.mubr.msk.bf16.mxu0 %vm5421_vm0, %v5420_v0 }
0x1054   :  { %4519 = vmatprep.subr.bf16.mxu0 %v5420_v0 }
0x1065   :  { %v1026_v58 = vpop.permute.xlu1 %1025 }
0x1066   :  { %v5739_v60 = vmul.f32 %v4844_v46, %v1026_v58 }
0x1068   :  { %v1064_v61 = vpack.c.bf16 %v5739_v60, %v5739_v60 }
0x106a   :  { %1066 = vrot.lane.b32.xlu0 %v1064_v61, %s5426_s10 }
0x10dc   :  { %v1067_v62 = vpop.permute.xlu0 %1066 }
0x10dd   :  { %4492 = vmatmul.mubr.msk.bf16.vlgmr.msra.gmra.mxu1 %vm213_vm1, %v1067_v62 }
0x10de   :  { %4502 = vmatpush3.bf16.msra.mxu1 %v5564_v6  ;;  %4503 = vmatprep.mubr.msk.bf16.mxu1 %vm5421_vm0, %v5420_v0 }
0x10df   :  { %4513 = vmatprep.subr.bf16.mxu1 %v5420_v0 }
0x1112   :  { %v1154_v63 = vpop.f32.mrf.mxu0 }
0x1113   :  { %1161 = vrot.lane.b32.xlu1 %v1154_v63, %s5406_s28 }
0x1114   :  { %v4499_v1 = vpop.f32.mrf.mxu0 }
0x1116   :  { %v1157_v2 = vpop.f32.mrf.mxu0 }
0x1118   :  { %v4500_v3 = vpop.f32.mrf.mxu0 }
0x1185   :  { %v1162_v8 = vpop.permute.xlu1 %1161 }
0x1186   :  { %v1164_v9 = vadd.f32 %v1162_v8, %v1112_v4 }
0x1188   :  { %4847 = vtanh.f32 %v1164_v9  ;;  %v4238_v20 = vmul.f32 -1.442695, %v1164_v9 }
0x1195   :  { %v4848_v11 = vpop.eup %4847 }
0x1196   :  { %1198 = vrot.lane.b32.xlu0 %v4848_v11, %s5423_s8 }
0x119d   :  { %v1105_v14 = vpop.f32.mrf.mxu1 }
0x119e   :  { %v1111_v15 = vadd.f32 %v1105_v14, %v1063_v13 }
0x119f   :  { %v4493_v16 = vpop.f32.mrf.mxu1 }
0x11a0   :  { %4849 = vtanh.f32 %v1111_v15  ;;  %v4237_v24 = vmul.f32 -1.442695, %v1111_v15 }
0x11a1   :  { %v1108_v17 = vpop.f32.mrf.mxu1  ;;  %4851 = vpow2.f32 %v4238_v20 }
0x11a3   :  { %v4494_v18 = vpop.f32.mrf.mxu1 }
0x11ad   :  { %v4850_v19 = vpop.eup %4849 }
0x11ae   :  { %1174 = vrot.lane.b32.xlu0 %v4850_v19, %s5423_s8  ;;  %v4852_v21 = vpop.eup %4851 }
0x11af   :  { %v1192_v22 = vadd.f32 1.0, %v4852_v21 }
0x11b1   :  { %4853 = vrcp.f32 %v1192_v22 }
0x11b2   :  { %4855 = vpow2.f32 %v4237_v24 }
0x11be   :  { %v4854_v25 = vpop.eup %4853 }
0x11bf   :  { %v4856_v29 = vpop.eup %4855  ;;  %v1196_v34 = vmul.f32 %v4854_v25, %v5723_v41 }
0x11c0   :  { %v1168_v30 = vadd.f32 1.0, %v4856_v29 }
0x11c2   :  { %4857 = vrcp.f32 %v1168_v30 }
0x11cf   :  { %v4858_v31 = vpop.eup %4857 }
0x11d0   :  { %v1172_v39 = vmul.f32 %v4858_v31, %v1022_v54 }
0x1208   :  { %v1199_v26 = vpop.permute.xlu0 %1198 }
0x1209   :  { %v1201_v28 = vmul.f32 %v4854_v25, %v1199_v26 }
0x120b   :  { %1203 = vrot.lane.b32.xlu1 %v1201_v28, %s5424_s11 }
0x1220   :  { %v1175_v32 = vpop.permute.xlu0 %1174 }
0x1221   :  { %v1177_v33 = vmul.f32 %v4858_v31, %v1175_v32 }
0x1223   :  { %1179 = vrot.lane.b32.xlu0 %v1177_v33, %s5424_s11 }
0x127d   :  { %v1204_v35 = vpop.permute.xlu1 %1203 }
0x127e   :  { %v5755_v36 = vadd.f32 %v1204_v35, %v1196_v34 }
0x1280   :  { %4859 = vtanh.f32 %v5755_v36 }
0x128d   :  { %v4860_v37 = vpop.eup %4859 }
0x128e   :  { %1209 = vrot.lane.b32.xlu1 %v4860_v37, %s5425_s29 }
0x1295   :  { %v1180_v40 = vpop.permute.xlu0 %1179 }
0x1296   :  { %v1182_v42 = vadd.f32 %v1180_v40, %v1172_v39 }
0x1298   :  { %4861 = vtanh.f32 %v1182_v42 }
0x12a5   :  { %v4862_v43 = vpop.eup %4861 }
0x12a6   :  { %1185 = vrot.lane.b32.xlu0 %v4862_v43, %s5425_s29  ;;  %v1383_v43 = vld [vmem:[#allocation4 + $0xe] sm:$0x3] }
0x1300   :  { %v1210_v45 = vpop.permute.xlu1 %1209 }
0x1301   :  { %v5760_v46 = vmul.f32 %v4854_v25, %v1210_v45 }
0x1303   :  { %v1273_v41 = vpack.c.bf16 %v5760_v46, %v5760_v46 }
0x1305   :  { %1275 = vrot.lane.b32.xlu1 %v1273_v41, %s5424_s11 }
0x1318   :  { %v1186_v47 = vpop.permute.xlu0 %1185 }
0x1319   :  { %v5765_v48 = vmul.f32 %v4858_v31, %v1186_v47 }
0x131b   :  { %v1224_v50 = vpack.c.bf16 %v5765_v48, %v5765_v48 }
0x131d   :  { %1226 = vrot.lane.b32.xlu1 %v1224_v50, %s5426_s10 }
0x1377   :  { %v1276_v49 = vpop.permute.xlu1 %1275 }
0x1378   :  { %4510 = vmatmul.mubr.msk.bf16.vlgmr.msra.gmra.mxu0 %vm213_vm1, %v1276_v49 }
0x1379   :  { %4520 = vmatpush3.bf16.msra.mxu0 %v5561_v5  ;;  %4521 = vmatprep.mubr.msk.bf16.mxu0 %vm5421_vm0, %v5420_v0 }
0x137a   :  { %4533 = vmatprep.subr.bf16.mxu0 %v5420_v0 }
0x138f   :  { %v1227_v52 = vpop.permute.xlu1 %1226 }
0x1390   :  { %4504 = vmatmul.mubr.msk.bf16.vlgmr.msra.gmra.mxu1 %vm213_vm1, %v1227_v52 }
0x1391   :  { %4514 = vmatpush3.bf16.msra.mxu1 %v5564_v6  ;;  %4515 = vmatprep.mubr.msk.bf16.mxu1 %vm5421_vm0, %v5420_v0  ;;  %v1272_v6 = vld [vmem:[#allocation4 + $0x2] sm:$0x3] }
0x1392   :  { %4525 = vmatprep.subr.bf16.mxu1 %v5420_v0 }
0x1438   :  { %v1314_v53 = vpop.f32.mrf.mxu0 }
0x1439   :  { %1321 = vrot.lane.b32.xlu0 %v1314_v53, %s5406_s28 }
0x143a   :  { %v4511_v54 = vpop.f32.mrf.mxu0 }
0x143c   :  { %v1317_v5 = vpop.f32.mrf.mxu0 }
0x143e   :  { %v4512_v56 = vpop.f32.mrf.mxu0 }
0x1450   :  { %v1265_v58 = vpop.f32.mrf.mxu1 }
0x1451   :  { %v1271_v61 = vadd.f32 %v1265_v58, %v1223_v57 }
0x1452   :  { %v4505_v62 = vpop.f32.mrf.mxu1 }
0x1453   :  { %4863 = vtanh.f32 %v1271_v61  ;;  %v4241_v8 = vmul.f32 -1.442695, %v1271_v61 }
0x1454   :  { %v1268_v63 = vpop.f32.mrf.mxu1 }
0x1456   :  { %v4506_v1 = vpop.f32.mrf.mxu1 }
0x1460   :  { %v4864_v2 = vpop.eup %4863 }
0x1461   :  { %1334 = vrot.lane.b32.xlu0 %v4864_v2, %s5423_s8  ;;  %v1432_v2 = vld [vmem:[#allocation4] sm:$0x3] }
0x14ab   :  { %v1322_v3 = vpop.permute.xlu0 %1321 }
0x14ac   :  { %v1324_v4 = vadd.f32 %v1322_v3, %v1272_v6 }
0x14ae   :  { %4865 = vtanh.f32 %v1324_v4  ;;  %v4242_v17 = vmul.f32 -1.442695, %v1324_v4 }
0x14af   :  { %4867 = vpow2.f32 %v4241_v8 }
0x14bb   :  { %v4866_v9 = vpop.eup %4865 }
0x14bc   :  { %1358 = vrot.lane.b32.xlu1 %v4866_v9, %s5423_s8  ;;  %v4868_v11 = vpop.eup %4867 }
0x14bd   :  { %v1328_v13 = vadd.f32 1.0, %v4868_v11 }
0x14bf   :  { %4869 = vrcp.f32 %v1328_v13 }
0x14c0   :  { %4871 = vpow2.f32 %v4242_v17 }
0x14cc   :  { %v4870_v14 = vpop.eup %4869 }
0x14cd   :  { %v4872_v18 = vpop.eup %4871  ;;  %v1332_v24 = vmul.f32 %v4870_v14, %v1182_v42 }
0x14ce   :  { %v1352_v19 = vadd.f32 1.0, %v4872_v18 }
0x14d0   :  { %4873 = vrcp.f32 %v1352_v19 }
0x14d3   :  { %v1335_v15 = vpop.permute.xlu0 %1334 }
0x14d4   :  { %v1337_v16 = vmul.f32 %v4870_v14, %v1335_v15 }
0x14d6   :  { %1339 = vrot.lane.b32.xlu0 %v1337_v16, %s5424_s11 }
0x14dd   :  { %v4874_v20 = vpop.eup %4873 }
0x14de   :  { %v1356_v29 = vmul.f32 %v4874_v20, %v5755_v36 }
0x152e   :  { %v1359_v21 = vpop.permute.xlu1 %1358 }
0x152f   :  { %v1361_v22 = vmul.f32 %v4874_v20, %v1359_v21 }
0x1531   :  { %1363 = vrot.lane.b32.xlu1 %v1361_v22, %s5424_s11 }
0x1548   :  { %v1340_v25 = vpop.permute.xlu0 %1339 }
0x1549   :  { %v1342_v26 = vadd.f32 %v1340_v25, %v1332_v24 }
0x154b   :  { %4875 = vtanh.f32 %v1342_v26 }
0x1558   :  { %v4876_v28 = vpop.eup %4875 }
0x1559   :  { %1345 = vrot.lane.b32.xlu0 %v4876_v28, %s5425_s29 }
0x15a3   :  { %v1364_v30 = vpop.permute.xlu1 %1363 }
0x15a4   :  { %v5787_v31 = vadd.f32 %v1364_v30, %v1356_v29 }
0x15a6   :  { %4877 = vtanh.f32 %v5787_v31 }
0x15b3   :  { %v4878_v32 = vpop.eup %4877 }
0x15b4   :  { %1369 = vrot.lane.b32.xlu1 %v4878_v32, %s5425_s29 }
0x15cb   :  { %v1346_v33 = vpop.permute.xlu0 %1345 }
0x15cc   :  { %v1348_v34 = vmul.f32 %v4870_v14, %v1346_v33 }
0x15ce   :  { %v1384_v35 = vpack.c.bf16 %v1348_v34, %v1348_v34 }
0x15d0   :  { %1386 = vrot.lane.b32.xlu0 %v1384_v35, %s5426_s10 }
0x1626   :  { %v1370_v37 = vpop.permute.xlu1 %1369 }
0x1627   :  { %v5792_v39 = vmul.f32 %v4874_v20, %v1370_v37 }
0x1629   :  { %v1433_v40 = vpack.c.bf16 %v5792_v39, %v5792_v39 }
0x162b   :  { %1435 = vrot.lane.b32.xlu1 %v1433_v40, %s5424_s11 }
0x1642   :  { %v1387_v36 = vpop.permute.xlu0 %1386 }
0x1643   :  { %4516 = vmatmul.mubr.msk.bf16.vlgmr.msra.gmra.mxu1 %vm213_vm1, %v1387_v36  ;;  %v5867_v36 = vld [vmem:[#allocation17] sm:$0xff]  }
0x1644   :  { %4529 = vmatprep.mubr.msk.bf16.mxu1 %vm5421_vm0, %v5420_v0 }
0x169d   :  { %v1436_v42 = vpop.permute.xlu1 %1435 }
0x169e   :  { %4522 = vmatmul.mubr.msk.bf16.vlgmr.msra.gmra.mxu0 %vm213_vm1, %v1436_v42 }
0x169f   :  { %4535 = vmatprep.mubr.msk.bf16.mxu0 %vm5421_vm0, %v5420_v0 }
0x1703   :  { %v1425_v45 = vpop.f32.mrf.mxu1 }
0x1704   :  { %v1431_v41 = vadd.f32 %v1425_v45, %v1383_v43 }
0x1705   :  { %v4517_v47 = vpop.f32.mrf.mxu1 }
0x1706   :  { %4879 = vtanh.f32 %v1431_v41  ;;  %v4245_v5 = vmul.f32 -1.442695, %v1431_v41 }
0x1707   :  { %v1428_v50 = vpop.f32.mrf.mxu1 }
0x1708   :  { %4881 = vpow2.f32 %v4245_v5  ;;  %v4247_v50 = vld [vmem:[#allocation19] ss:$0 sm:$0xff] }
0x1709   :  { %v4518_v49 = vpop.f32.mrf.mxu1 }
0x1713   :  { %v4880_v52 = vpop.eup %4879 }
0x1714   :  { %1494 = vrot.lane.b32.xlu0 %v4880_v52, %s5423_s8 }
0x1715   :  { %v4882_v58 = vpop.eup %4881 }
0x1716   :  { %v1488_v61 = vadd.f32 1.0, %v4882_v58 }
0x1718   :  { %4883 = vrcp.f32 %v1488_v61 }
0x1725   :  { %v4884_v62 = vpop.eup %4883 }
0x1726   :  { %v1492_v8 = vmul.f32 %v4884_v62, %v1342_v26  ;;  %v4760_v26 = vld [vmem:[#allocation14] sm:$0xff]  }
0x175e   :  { %v1474_v53 = vpop.f32.mrf.mxu0 }
0x175f   :  { %1481 = vrot.lane.b32.xlu1 %v1474_v53, %s5406_s28 }
0x1760   :  { %v4523_v54 = vpop.f32.mrf.mxu0 }
0x1762   :  { %v1477_v56 = vpop.f32.mrf.mxu0 }
0x1764   :  { %v4524_v57 = vpop.f32.mrf.mxu0 }
0x1786   :  { %v1495_v63 = vpop.permute.xlu0 %1494 }
0x1787   :  { %v1497_v1 = vmul.f32 %v4884_v62, %v1495_v63 }
0x1789   :  { %1499 = vrot.lane.b32.xlu0 %v1497_v1, %s5424_s11 }
0x17d1   :  { %v1482_v6 = vpop.permute.xlu1 %1481 }
0x17d2   :  { %v1484_v3 = vadd.f32 %v1482_v6, %v1432_v2 }
0x17d4   :  { %4885 = vtanh.f32 %v1484_v3  ;;  %v4246_v14 = vmul.f32 -1.442695, %v1484_v3 }
0x17e1   :  { %v4886_v4 = vpop.eup %4885 }
0x17e2   :  { %1518 = vrot.lane.b32.xlu1 %v4886_v4, %s5423_s8 }
0x17fb   :  { %v1500_v9 = vpop.permute.xlu0 %1499 }
0x17fc   :  { %v1502_v11 = vadd.f32 %v1500_v9, %v1492_v8 }
0x17fe   :  { %4887 = vtanh.f32 %v1502_v11 }
0x17ff   :  { %4889 = vpow2.f32 %v4246_v14 }
0x180b   :  { %v4888_v13 = vpop.eup %4887 }
0x180c   :  { %1505 = vrot.lane.b32.xlu0 %v4888_v13, %s5425_s29 }
0x1810   :  { %412 = vrot.lane.b32.xlu0 %v5606_v55, %s5426_s10  ;;  %v4890_v55 = vpop.eup %4889 }
0x1811   :  { %v1512_v15 = vadd.f32 1.0, %v4890_v55 }
0x1813   :  { %4891 = vrcp.f32 %v1512_v15 }
0x1814   :  { %574 = vrot.lane.b32.xlu0 %v5641_v38, %s5426_s10 }
0x1818   :  { %734 = vrot.lane.b32.xlu0 %v5676_v23, %s5426_s10 }
0x181c   :  { %894 = vrot.lane.b32.xlu0 %v5708_v10, %s5426_s10 }
0x1820   :  { %1054 = vrot.lane.b32.xlu0 %v5739_v60, %s5426_s10  ;;  %v4892_v38 = vpop.eup %4891 }
0x1821   :  { %v1516_v20 = vmul.f32 %v4892_v38, %v5787_v31 }
0x1824   :  { %1214 = vrot.lane.b32.xlu0 %v5765_v48, %s5426_s10 }
0x1828   :  { %1374 = vrot.lane.b32.xlu0 %v1348_v34, %s5426_s10 }
0x1854   :  { %v1519_v16 = vpop.permute.xlu1 %1518 }
0x1855   :  { %v1521_v17 = vmul.f32 %v4892_v38, %v1519_v16 }
0x1857   :  { %1523 = vrot.lane.b32.xlu1 %v1521_v17, %s5424_s11 }
0x187e   :  { %v1506_v23 = vpop.permute.xlu0 %1505 }
0x187f   :  { %v1508_v10 = vmul.f32 %v4884_v62, %v1506_v23 }
0x1881   :  { %1534 = vrot.lane.b32.xlu0 %v1508_v10, %s5426_s10 }
0x1882   :  { %v413_v60 = vpop.permute.xlu0 %412 }
0x1883   :  { %416 = vst.msk [vmem:[#allocation2] sm:$0x3] %vm415_vm2, %v413_v60 }
0x1886   :  { %v575_v48 = vpop.permute.xlu0 %574 }
0x1887   :  { %577 = vst.msk [vmem:[#allocation2 + $0x2] sm:$0x3] %vm415_vm2, %v575_v48 }
0x188a   :  { %v735_v18 = vpop.permute.xlu0 %734 }
0x188b   :  { %737 = vst.msk [vmem:[#allocation2 + $0x4] sm:$0x3] %vm415_vm2, %v735_v18 }
0x188e   :  { %v895_v19 = vpop.permute.xlu0 %894 }
0x188f   :  { %897 = vst.msk [vmem:[#allocation2 + $0x6] sm:$0x3] %vm415_vm2, %v895_v19 }
0x1892   :  { %v1055_v25 = vpop.permute.xlu0 %1054 }
0x18c9   :  { %v1524_v21 = vpop.permute.xlu1 %1523 }
0x18ca   :  { %v1526_v22 = vadd.f32 %v1524_v21, %v1516_v20 }
0x18cc   :  { %4893 = vtanh.f32 %v1526_v22 }
0x18d9   :  { %v4894_v24 = vpop.eup %4893 }
0x18da   :  { %1529 = vrot.lane.b32.xlu1 %v4894_v24, %s5425_s29 }
0x18de   :  { %418 = vrot.lane.b32.xlu1 %v5591_v44, %s5425_s29  ;;  %v4759_v44 = vld [vmem:[#allocation14 + $0x8] sm:$0xff]  }
0x18df   :  { %4526 = vmatpush3.bf16.msra.mxu1 %v4759_v44 }
0x18e0   :  { %4527 = vmatprep.subr.bf16.mxu1 %v5420_v0 }
0x18e2   :  { %579 = vrot.lane.b32.xlu1 %v5625_v27, %s5425_s29  ;;  %v1215_v27 = vpop.permute.xlu0 %1214 }
0x18e3   :  { %4528 = vmatpush3.bf16.msra.mxu1 %v4760_v26 }
0x18e4   :  { %4539 = vmatprep.subr.bf16.mxu1 %v5420_v0 }
0x18e6   :  { %739 = vrot.lane.b32.xlu1 %v5660_v12, %s5425_s29 }
0x18ea   :  { %899 = vrot.lane.b32.xlu1 %v5695_v59, %s5425_s29  ;;  %v1375_v59 = vpop.permute.xlu0 %1374 }
0x18ee   :  { %1059 = vrot.lane.b32.xlu1 %v5728_v51, %s5425_s29  ;;  %v5845_v51 = vld [vmem:[#allocation16] sm:$0xff]  }
0x18ef   :  { %4534 = vmatpush3.bf16.msra.mxu0 %v5845_v51 }
0x18f0   :  { %4545 = vmatprep.subr.bf16.mxu0 %v5420_v0 }
0x18f2   :  { %1219 = vrot.lane.b32.xlu1 %v5760_v46, %s5425_s29  ;;  %4536 = vmatmul.mubr.bf16.vlgmr.msra.gmra.mxu0 %v5422_v7 }
0x18f3   :  { %v1535_v29 = vpop.permute.xlu0 %1534  ;;  %4546 = vmatpush3.bf16.msra.mxu0 %v5845_v51  ;;  %4547 = vmatprep.mubr.msk.bf16.mxu0 %vm5421_vm0, %v5420_v0 }
0x18f4   :  { %4557 = vmatprep.subr.bf16.mxu0 %v5420_v0 }
0x18f6   :  { %1379 = vrot.lane.b32.xlu1 %v5792_v39, %s5425_s29 }
0x194c   :  { %v1530_v12 = vpop.permute.xlu1 %1529 }
0x194d   :  { %v1532_v28 = vmul.f32 %v4892_v38, %v1530_v12 }
0x194f   :  { %1539 = vrot.lane.b32.xlu1 %v1532_v28, %s5425_s29 }
0x1950   :  { %v419_v46 = vpop.permute.xlu1 %418 }
0x1951   :  { %422 = vst.msk [vmem:[#allocation2 + $0xe] sm:$0x3] %vm421_vm3, %v419_v46 }
0x1952   :  { %1537 = vst.msk [vmem:[#allocation2 + $0xe] sm:$0x3] %vm415_vm2, %v1535_v29 }
0x1954   :  { %v580_v30 = vpop.permute.xlu1 %579 }
0x1955   :  { %582 = vst.msk [vmem:[#allocation2 + $0xc] sm:$0x3] %vm421_vm3, %v580_v30 }
0x1956   :  { %1377 = vst.msk [vmem:[#allocation2 + $0xc] sm:$0x3] %vm415_vm2, %v1375_v59 }
0x1958   :  { %v740_v31 = vpop.permute.xlu1 %739 }
0x1959   :  { %742 = vst.msk [vmem:[#allocation2 + $0xa] sm:$0x3] %vm421_vm3, %v740_v31 }
0x195a   :  { %1217 = vst.msk [vmem:[#allocation2 + $0xa] sm:$0x3] %vm415_vm2, %v1215_v27 }
0x195c   :  { %v900_v32 = vpop.permute.xlu1 %899 }
0x195d   :  { %902 = vst.msk [vmem:[#allocation2 + $0x8] sm:$0x3] %vm421_vm3, %v900_v32 }
0x195e   :  { %1057 = vst.msk [vmem:[#allocation2 + $0x8] sm:$0x3] %vm415_vm2, %v1055_v25 }
0x1960   :  { %v1060_v33 = vpop.permute.xlu1 %1059 }
0x1961   :  { %1062 = vst.msk [vmem:[#allocation2 + $0x6] sm:$0x3] %vm421_vm3, %v1060_v33 }
0x1964   :  { %v1220_v34 = vpop.permute.xlu1 %1219 }
0x1965   :  { %1222 = vst.msk [vmem:[#allocation2 + $0x4] sm:$0x3] %vm421_vm3, %v1220_v34  ;;  %v1553_v40 = vld [vmem:[#allocation2 + $0x8] sm:$0xff] }
0x1968   :  { %v1380_v35 = vpop.permute.xlu1 %1379 }
0x1969   :  { %1382 = vst.msk [vmem:[#allocation2 + $0x2] sm:$0x3] %vm421_vm3, %v1380_v35 }
0x19b2   :  { %v1661_v43 = vpop.f32.mrf.mxu0 }
0x19b4   :  { %v4537_v45 = vpop.f32.mrf.mxu0 }
0x19b6   :  { %v1664_v41 = vpop.f32.mrf.mxu0 }
0x19b8   :  { %v4538_v47 = vpop.f32.mrf.mxu0 }
0x19c1   :  { %v1540_v37 = vpop.permute.xlu1 %1539 }
0x19c2   :  { %1542 = vst.msk [vmem:[#allocation2] sm:$0x3] %vm421_vm3, %v1540_v37 }
0x19c9   :  { %v1552_v39 = vld [vmem:[#allocation2] sm:$0xff] }
0x19ca   :  { %v1554_v42 = vpack.c.bf16 %v1553_v40, %v1552_v39 }
0x19cc   :  { %4530 = vmatmul.mubr.msk.bf16.vlgmr.msra.gmra.mxu1 %vm1573_vm4, %v1554_v42 }
0x19cd   :  { %4540 = vmatpush3.bf16.msra.mxu1 %v5867_v36  ;;  %4541 = vmatprep.mubr.msk.bf16.mxu1 %vm5421_vm0, %v5420_v0 }
0x19ce   :  { %4551 = vmatprep.subr.bf16.mxu1 %v5420_v0 }
0x19d4   :  { %4542 = vmatmul.mubr.bf16.vlgmr.msra.gmra.mxu1 %v5422_v7 }
0x19d5   :  { %4552 = vmatpush3.bf16.msra.mxu1 %v5867_v36  ;;  %4553 = vmatprep.mubr.msk.bf16.mxu1 %vm5421_vm0, %v5420_v0 }
0x19d6   :  { %4563 = vmatprep.subr.bf16.mxu1 %v5420_v0 }
0x1a8c   :  { %v1611_v49 = vpop.f32.mrf.mxu1 }
0x1a8d   :  { %v1612_v52 = vadd.f32 %v4247_v50, %v1611_v49 }
0x1a8e   :  { %v4531_v53 = vpop.f32.mrf.mxu1 }
0x1a8f   :  { %1618 = vst [vmem:[#allocation4] sm:$0xff] %v1612_v52 }
0x1a90   :  { %v1614_v54 = vpop.f32.mrf.mxu1 }
0x1a91   :  { %v1615_v5 = vadd.f32 %v4247_v50, %v1614_v54 }
0x1a92   :  { %v4532_v56 = vpop.f32.mrf.mxu1 }
0x1a93   :  { %1619 = vst [vmem:[#allocation4 + $0x8] sm:$0xff] %v1615_v5 }
0x1a94   :  { %v1709_v57 = vpop.f32.mrf.mxu1 }
0x1a95   :  { %1716 = vrot.lane.b32.xlu0 %v1709_v57, %s5406_s28 }
0x1a96   :  { %v4543_v58 = vpop.f32.mrf.mxu1  ;;  %v1620_v55 = vld [vmem:[#allocation4] sm:$0x3]  ;;  %v1778_v57 = vld [vmem:[#allocation4 + $0x2] sm:$0x3] }
0x1a97   :  { %v1667_v16 = vadd.f32 %v1661_v43, %v1620_v55 }
0x1a98   :  { %v1712_v61 = vpop.f32.mrf.mxu1 }
0x1a99   :  { %v4253_v10 = vmul.f32 -1.442695, %v1667_v16 }
0x1a9a   :  { %v4544_v62 = vpop.f32.mrf.mxu1  ;;  %v1668_v63 = vld [vmem:[#allocation4 + $0xe] sm:$0x3]  ;;  %v1827_v34 = vld [vmem:[#allocation4 + $0xc] sm:$0x3] }
0x1b07   :  { %v1717_v1 = vpop.permute.xlu0 %1716 }
0x1b08   :  { %v1719_v2 = vadd.f32 %v1717_v1, %v1668_v63 }
0x1b0a   :  { %4895 = vtanh.f32 %v1719_v2  ;;  %v4254_v3 = vmul.f32 -1.442695, %v1719_v2 }
0x1b0c   :  { %4897 = vpow2.f32 %v4254_v3 }
0x1b17   :  { %v4896_v6 = vpop.eup %4895 }
0x1b18   :  { %1753 = vrot.lane.b32.xlu1 %v4896_v6, %s5423_s8 }
0x1b19   :  { %v4898_v4 = vpop.eup %4897 }
0x1b1a   :  { %v1747_v8 = vadd.f32 1.0, %v4898_v4 }
0x1b1c   :  { %4899 = vrcp.f32 %v1747_v8 }
0x1b29   :  { %v4900_v9 = vpop.eup %4899 }
0x1b2a   :  { %v1751_v14 = vmul.f32 0.0, %v4900_v9 }
0x1b8a   :  { %v1754_v11 = vpop.permute.xlu1 %1753 }
0x1b8b   :  { %v1756_v13 = vmul.f32 %v4900_v9, %v1754_v11 }
0x1b8d   :  { %1758 = vrot.lane.b32.xlu0 %v1756_v13, %s5424_s11 }
0x1bff   :  { %v1759_v15 = vpop.permute.xlu0 %1758 }
0x1c00   :  { %v5882_v38 = vadd.f32 %v1759_v15, %v1751_v14 }
0x1c02   :  { %4901 = vtanh.f32 %v5882_v38 }
0x1c03   :  { %4903 = vtanh.f32 %v1667_v16 }
0x1c04   :  { %4905 = vpow2.f32 %v4253_v10 }
0x1c0f   :  { %v4902_v17 = vpop.eup %4901 }
0x1c10   :  { %1764 = vrot.lane.b32.xlu1 %v4902_v17, %s5425_s29  ;;  %v4904_v23 = vpop.eup %4903 }
0x1c11   :  { %v4906_v60 = vpop.eup %4905 }
0x1c12   :  { %v1723_v48 = vadd.f32 1.0, %v4906_v60 }
0x1c14   :  { %1729 = vrot.lane.b32.xlu1 %v4904_v23, %s5423_s8  ;;  %4907 = vrcp.f32 %v1723_v48 }
0x1c21   :  { %v4908_v21 = vpop.eup %4907 }
0x1c22   :  { %v1727_v44 = vmul.f32 0.0, %v4908_v21 }
0x1c82   :  { %v1765_v18 = vpop.permute.xlu1 %1764 }
0x1c83   :  { %v5887_v19 = vmul.f32 %v4900_v9, %v1765_v18 }
0x1c85   :  { %v1828_v20 = vpack.c.bf16 %v5887_v19, %v5887_v19 }
0x1c86   :  { %v1730_v22 = vpop.permute.xlu1 %1729 }
0x1c87   :  { %v1732_v24 = vmul.f32 %v4908_v21, %v1730_v22  ;;  %1830 = vrot.lane.b32.xlu0 %v1828_v20, %s5424_s11 }
0x1c89   :  { %1734 = vrot.lane.b32.xlu1 %v1732_v24, %s5424_s11 }
0x1cf9   :  { %v1831_v25 = vpop.permute.xlu0 %1830 }
0x1cfa   :  { %4554 = vmatmul.mubr.msk.bf16.vlgmr.msra.gmra.mxu1 %vm213_vm1, %v1831_v25 }
0x1cfb   :  { %v1735_v26 = vpop.permute.xlu1 %1734  ;;  %4564 = vmatpush3.bf16.msra.mxu1 %v5867_v36  ;;  %4565 = vmatprep.mubr.msk.bf16.mxu1 %vm5421_vm0, %v5420_v0 }
0x1cfc   :  { %v5897_v27 = vadd.f32 %v1735_v26, %v1727_v44  ;;  %4575 = vmatprep.subr.bf16.mxu1 %v5420_v0 }
0x1cfe   :  { %4909 = vtanh.f32 %v5897_v27 }
0x1d0b   :  { %v4910_v12 = vpop.eup %4909 }
0x1d0c   :  { %1740 = vrot.lane.b32.xlu1 %v4910_v12, %s5425_s29 }
0x1d7e   :  { %v1741_v59 = vpop.permute.xlu1 %1740 }
0x1d7f   :  { %v5902_v28 = vmul.f32 %v4908_v21, %v1741_v59  ;;  %v1987_v21 = vld [vmem:[#allocation4 + $0xa] sm:$0x3] }
0x1d81   :  { %v1779_v46 = vpack.c.bf16 %v5902_v28, %v5902_v28 }
0x1d83   :  { %1781 = vrot.lane.b32.xlu1 %v1779_v46, %s5426_s10 }
0x1dba   :  { %v1869_v29 = vpop.f32.mrf.mxu1 }
0x1dbb   :  { %1876 = vrot.lane.b32.xlu0 %v1869_v29, %s5406_s28 }
0x1dbc   :  { %v4555_v30 = vpop.f32.mrf.mxu1 }
0x1dbe   :  { %v1872_v31 = vpop.f32.mrf.mxu1 }
0x1dc0   :  { %v4556_v32 = vpop.f32.mrf.mxu1 }
0x1df5   :  { %v1782_v33 = vpop.permute.xlu1 %1781 }
0x1df6   :  { %4548 = vmatmul.mubr.msk.bf16.vlgmr.msra.gmra.mxu0 %vm213_vm1, %v1782_v33 }
0x1df7   :  { %4558 = vmatpush3.bf16.msra.mxu0 %v5845_v51  ;;  %4559 = vmatprep.mubr.msk.bf16.mxu0 %vm5421_vm0, %v5420_v0 }
0x1df8   :  { %4569 = vmatprep.subr.bf16.mxu0 %v5420_v0 }
0x1e2d   :  { %v1877_v35 = vpop.permute.xlu0 %1876 }
0x1e2e   :  { %v1879_v37 = vadd.f32 %v1877_v35, %v1827_v34 }
0x1e30   :  { %4911 = vtanh.f32 %v1879_v37  ;;  %v4258_v40 = vmul.f32 -1.442695, %v1879_v37  ;;  %v1938_v37 = vld [vmem:[#allocation4 + $0x4] sm:$0x3] }
0x1e32   :  { %4913 = vpow2.f32 %v4258_v40 }
0x1e3d   :  { %v4912_v39 = vpop.eup %4911 }
0x1e3e   :  { %1913 = vrot.lane.b32.xlu0 %v4912_v39, %s5423_s8 }
0x1e3f   :  { %v4914_v42 = vpop.eup %4913 }
0x1e40   :  { %v1907_v43 = vadd.f32 1.0, %v4914_v42 }
0x1e42   :  { %4915 = vrcp.f32 %v1907_v43 }
0x1e4f   :  { %v4916_v45 = vpop.eup %4915 }
0x1e50   :  { %v1911_v54 = vmul.f32 %v4916_v45, %v5882_v38 }
0x1eb0   :  { %v1914_v41 = vpop.permute.xlu0 %1913 }
0x1eb1   :  { %v1916_v47 = vmul.f32 %v4916_v45, %v1914_v41 }
0x1eb3   :  { %1918 = vrot.lane.b32.xlu0 %v1916_v47, %s5424_s11 }
0x1eb6   :  { %v1820_v50 = vpop.f32.mrf.mxu0 }
0x1eb7   :  { %v1826_v58 = vadd.f32 %v1820_v50, %v1778_v57 }
0x1eb8   :  { %v4549_v49 = vpop.f32.mrf.mxu0 }
0x1eb9   :  { %v4257_v63 = vmul.f32 -1.442695, %v1826_v58 }
0x1eba   :  { %v1823_v52 = vpop.f32.mrf.mxu0 }
0x1ebc   :  { %v4550_v53 = vpop.f32.mrf.mxu0 }
0x1f25   :  { %v1919_v5 = vpop.permute.xlu0 %1918 }
0x1f26   :  { %v5916_v56 = vadd.f32 %v1919_v5, %v1911_v54 }
0x1f28   :  { %4917 = vtanh.f32 %v5916_v56 }
0x1f29   :  { %4919 = vtanh.f32 %v1826_v58 }
0x1f2a   :  { %4921 = vpow2.f32 %v4257_v63 }
0x1f35   :  { %v4918_v61 = vpop.eup %4917 }
0x1f36   :  { %1924 = vrot.lane.b32.xlu0 %v4918_v61, %s5425_s29  ;;  %v4920_v62 = vpop.eup %4919 }
0x1f37   :  { %v4922_v1 = vpop.eup %4921 }
0x1f38   :  { %v1883_v2 = vadd.f32 1.0, %v4922_v1 }
0x1f3a   :  { %1889 = vrot.lane.b32.xlu0 %v4920_v62, %s5423_s8  ;;  %4923 = vrcp.f32 %v1883_v2 }
0x1f47   :  { %v4924_v9 = vpop.eup %4923 }
0x1f48   :  { %v1887_v14 = vmul.f32 %v4924_v9, %v5897_v27 }
0x1fa8   :  { %v1925_v6 = vpop.permute.xlu0 %1924 }
0x1fa9   :  { %v5921_v3 = vmul.f32 %v4916_v45, %v1925_v6 }
0x1fab   :  { %v1988_v4 = vpack.c.bf16 %v5921_v3, %v5921_v3 }
0x1fac   :  { %v1890_v8 = vpop.permute.xlu0 %1889 }
0x1fad   :  { %1990 = vrot.lane.b32.xlu1 %v1988_v4, %s5424_s11  ;;  %v1892_v11 = vmul.f32 %v4924_v9, %v1890_v8 }
0x1fb1   :  { %1894 = vrot.lane.b32.xlu1 %v1892_v11, %s5424_s11  ;;  %v2147_v11 = vld [vmem:[#allocation4 + $0x8] sm:$0x3] }
0x201f   :  { %v1991_v13 = vpop.permute.xlu1 %1990 }
0x2020   :  { %4566 = vmatmul.mubr.msk.bf16.vlgmr.msra.gmra.mxu1 %vm213_vm1, %v1991_v13 }
0x2021   :  { %4576 = vmatpush3.bf16.msra.mxu1 %v5867_v36  ;;  %4577 = vmatprep.mubr.msk.bf16.mxu1 %vm5421_vm0, %v5420_v0 }
0x2022   :  { %4587 = vmatprep.subr.bf16.mxu1 %v5420_v0 }
0x2023   :  { %v1895_v55 = vpop.permute.xlu1 %1894 }
0x2024   :  { %v5933_v15 = vadd.f32 %v1895_v55, %v1887_v14 }
0x2026   :  { %4925 = vtanh.f32 %v5933_v15 }
0x2033   :  { %v4926_v38 = vpop.eup %4925 }
0x2034   :  { %1900 = vrot.lane.b32.xlu1 %v4926_v38, %s5425_s29 }
0x20a6   :  { %v1901_v16 = vpop.permute.xlu1 %1900 }
0x20a7   :  { %v5937_v17 = vmul.f32 %v4924_v9, %v1901_v16 }
0x20a9   :  { %v1939_v23 = vpack.c.bf16 %v5937_v17, %v5937_v17 }
0x20ab   :  { %1941 = vrot.lane.b32.xlu1 %v1939_v23, %s5426_s10 }
0x20e0   :  { %v2029_v10 = vpop.f32.mrf.mxu1 }
0x20e1   :  { %2036 = vrot.lane.b32.xlu0 %v2029_v10, %s5406_s28 }
0x20e2   :  { %v4567_v60 = vpop.f32.mrf.mxu1 }
0x20e4   :  { %v2032_v48 = vpop.f32.mrf.mxu1 }
0x20e6   :  { %v4568_v18 = vpop.f32.mrf.mxu1 }
0x211d   :  { %v1942_v20 = vpop.permute.xlu1 %1941 }
0x211e   :  { %4560 = vmatmul.mubr.msk.bf16.vlgmr.msra.gmra.mxu0 %vm213_vm1, %v1942_v20 }
0x211f   :  { %4570 = vmatpush3.bf16.msra.mxu0 %v5845_v51  ;;  %4571 = vmatprep.mubr.msk.bf16.mxu0 %vm5421_vm0, %v5420_v0 }
0x2120   :  { %4581 = vmatprep.subr.bf16.mxu0 %v5420_v0 }
0x2153   :  { %v2037_v22 = vpop.permute.xlu0 %2036 }
0x2154   :  { %v2039_v24 = vadd.f32 %v2037_v22, %v1987_v21 }
0x2156   :  { %4927 = vtanh.f32 %v2039_v24  ;;  %v4262_v44 = vmul.f32 -1.442695, %v2039_v24 }
0x2158   :  { %4929 = vpow2.f32 %v4262_v44  ;;  %v2098_v44 = vld [vmem:[#allocation4 + $0x6] sm:$0x3] }
0x2163   :  { %v4928_v25 = vpop.eup %4927 }
0x2164   :  { %2073 = vrot.lane.b32.xlu0 %v4928_v25, %s5423_s8 }
0x2165   :  { %v4930_v26 = vpop.eup %4929 }
0x2166   :  { %v2067_v27 = vadd.f32 1.0, %v4930_v26 }
0x2168   :  { %4931 = vrcp.f32 %v2067_v27 }
0x2175   :  { %v4932_v12 = vpop.eup %4931 }
0x2176   :  { %v2071_v33 = vmul.f32 %v4932_v12, %v5916_v56 }
0x21d6   :  { %v2074_v59 = vpop.permute.xlu0 %2073 }
0x21d7   :  { %v2076_v46 = vmul.f32 %v4932_v12, %v2074_v59 }
0x21d9   :  { %2078 = vrot.lane.b32.xlu0 %v2076_v46, %s5424_s11 }
0x21de   :  { %v1980_v29 = vpop.f32.mrf.mxu0 }
0x21df   :  { %v1986_v39 = vadd.f32 %v1980_v29, %v1938_v37 }
0x21e0   :  { %v4561_v30 = vpop.f32.mrf.mxu0 }
0x21e1   :  { %v4261_v43 = vmul.f32 -1.442695, %v1986_v39 }
0x21e2   :  { %v1983_v31 = vpop.f32.mrf.mxu0 }
0x21e4   :  { %v4562_v32 = vpop.f32.mrf.mxu0 }
0x224b   :  { %v2079_v34 = vpop.permute.xlu0 %2078 }
0x224c   :  { %v5951_v35 = vadd.f32 %v2079_v34, %v2071_v33 }
0x224e   :  { %4933 = vtanh.f32 %v5951_v35 }
0x224f   :  { %4935 = vtanh.f32 %v1986_v39 }
0x2250   :  { %4937 = vpow2.f32 %v4261_v43 }
0x225b   :  { %v4934_v40 = vpop.eup %4933 }
0x225c   :  { %2084 = vrot.lane.b32.xlu1 %v4934_v40, %s5425_s29  ;;  %v4936_v42 = vpop.eup %4935 }
0x225d   :  { %v4938_v45 = vpop.eup %4937 }
0x225e   :  { %v2043_v41 = vadd.f32 1.0, %v4938_v45 }
0x2260   :  { %2049 = vrot.lane.b32.xlu1 %v4936_v42, %s5423_s8  ;;  %4939 = vrcp.f32 %v2043_v41 }
0x226d   :  { %v4940_v53 = vpop.eup %4939 }
0x226e   :  { %v2047_v56 = vmul.f32 %v4940_v53, %v5933_v15 }
0x22ce   :  { %v2085_v47 = vpop.permute.xlu1 %2084 }
0x22cf   :  { %v5956_v50 = vmul.f32 %v4932_v12, %v2085_v47 }
0x22d1   :  { %v2148_v49 = vpack.c.bf16 %v5956_v50, %v5956_v50 }
0x22d2   :  { %v2050_v52 = vpop.permute.xlu1 %2049 }
0x22d3   :  { %2150 = vrot.lane.b32.xlu0 %v2148_v49, %s5424_s11  ;;  %v2052_v54 = vmul.f32 %v4940_v53, %v2050_v52 }
0x22d7   :  { %2054 = vrot.lane.b32.xlu0 %v2052_v54, %s5424_s11 }
0x2345   :  { %v2151_v5 = vpop.permute.xlu0 %2150 }
0x2346   :  { %4578 = vmatmul.mubr.msk.bf16.vlgmr.msra.gmra.mxu1 %vm213_vm1, %v2151_v5 }
0x2347   :  { %4588 = vmatpush3.bf16.msra.mxu1 %v5867_v36  ;;  %4589 = vmatprep.mubr.msk.bf16.mxu1 %vm5421_vm0, %v5420_v0 }
0x2348   :  { %4599 = vmatprep.subr.bf16.mxu1 %v5420_v0 }
0x2349   :  { %v2055_v57 = vpop.permute.xlu0 %2054 }
0x234a   :  { %v5968_v58 = vadd.f32 %v2055_v57, %v2047_v56  ;;  %v2307_v56 = vld [vmem:[#allocation4 + $0x6] sm:$0x3] }
0x234c   :  { %4941 = vtanh.f32 %v5968_v58 }
0x2359   :  { %v4942_v61 = vpop.eup %4941 }
0x235a   :  { %2060 = vrot.lane.b32.xlu1 %v4942_v61, %s5425_s29 }
0x23cc   :  { %v2061_v62 = vpop.permute.xlu1 %2060 }
0x23cd   :  { %v5972_v63 = vmul.f32 %v4940_v53, %v2061_v62 }
0x23cf   :  { %v2099_v1 = vpack.c.bf16 %v5972_v63, %v5972_v63 }
0x23d1   :  { %2101 = vrot.lane.b32.xlu1 %v2099_v1, %s5426_s10 }
0x2406   :  { %v2189_v2 = vpop.f32.mrf.mxu1 }
0x2407   :  { %2196 = vrot.lane.b32.xlu0 %v2189_v2, %s5406_s28 }
0x2408   :  { %v4579_v6 = vpop.f32.mrf.mxu1 }
0x240a   :  { %v2192_v4 = vpop.f32.mrf.mxu1 }
0x240c   :  { %v4580_v8 = vpop.f32.mrf.mxu1 }
0x2443   :  { %v2102_v9 = vpop.permute.xlu1 %2101 }
0x2444   :  { %4572 = vmatmul.mubr.msk.bf16.vlgmr.msra.gmra.mxu0 %vm213_vm1, %v2102_v9  ;;  %v2258_v9 = vld [vmem:[#allocation4 + $0x8] sm:$0x3] }
0x2445   :  { %4582 = vmatpush3.bf16.msra.mxu0 %v5845_v51  ;;  %4583 = vmatprep.mubr.msk.bf16.mxu0 %vm5421_vm0, %v5420_v0 }
0x2446   :  { %4593 = vmatprep.subr.bf16.mxu0 %v5420_v0 }
0x2479   :  { %v2197_v13 = vpop.permute.xlu0 %2196 }
0x247a   :  { %v2199_v14 = vadd.f32 %v2197_v13, %v2147_v11 }
0x247c   :  { %4943 = vtanh.f32 %v2199_v14  ;;  %v4266_v15 = vmul.f32 -1.442695, %v2199_v14 }
0x247e   :  { %4945 = vpow2.f32 %v4266_v15 }
0x2489   :  { %v4944_v55 = vpop.eup %4943 }
0x248a   :  { %2233 = vrot.lane.b32.xlu0 %v4944_v55, %s5423_s8 }
0x248b   :  { %v4946_v38 = vpop.eup %4945 }
0x248c   :  { %v2227_v16 = vadd.f32 1.0, %v4946_v38 }
0x248e   :  { %4947 = vrcp.f32 %v2227_v16 }
0x249b   :  { %v4948_v23 = vpop.eup %4947 }
0x249c   :  { %v2231_v22 = vmul.f32 %v4948_v23, %v5951_v35 }
0x24fc   :  { %v2234_v10 = vpop.permute.xlu0 %2233 }
0x24fd   :  { %v2236_v60 = vmul.f32 %v4948_v23, %v2234_v10 }
0x24ff   :  { %2238 = vrot.lane.b32.xlu1 %v2236_v60, %s5424_s11 }
0x2504   :  { %v2140_v48 = vpop.f32.mrf.mxu0 }
0x2505   :  { %v2146_v26 = vadd.f32 %v2140_v48, %v2098_v44 }
0x2506   :  { %v4573_v18 = vpop.f32.mrf.mxu0 }
0x2507   :  { %v4265_v59 = vmul.f32 -1.442695, %v2146_v26 }
0x2508   :  { %v2143_v20 = vpop.f32.mrf.mxu0 }
0x250a   :  { %v4574_v21 = vpop.f32.mrf.mxu0 }
0x2571   :  { %v2239_v24 = vpop.permute.xlu1 %2238 }
0x2572   :  { %v5986_v25 = vadd.f32 %v2239_v24, %v2231_v22 }
0x2574   :  { %4949 = vtanh.f32 %v5986_v25 }
0x2575   :  { %4951 = vtanh.f32 %v2146_v26 }
0x2576   :  { %4953 = vpow2.f32 %v4265_v59 }
0x2581   :  { %v4950_v27 = vpop.eup %4949 }
0x2582   :  { %2244 = vrot.lane.b32.xlu0 %v4950_v27, %s5425_s29  ;;  %v4952_v12 = vpop.eup %4951 }
0x2583   :  { %v4954_v46 = vpop.eup %4953 }
0x2584   :  { %v2203_v29 = vadd.f32 1.0, %v4954_v46 }
0x2586   :  { %2209 = vrot.lane.b32.xlu0 %v4952_v12, %s5423_s8  ;;  %4955 = vrcp.f32 %v2203_v29 }
0x2593   :  { %v4956_v34 = vpop.eup %4955 }
0x2594   :  { %v2207_v39 = vmul.f32 %v4956_v34, %v5968_v58 }
0x25f4   :  { %v2245_v30 = vpop.permute.xlu0 %2244 }
0x25f5   :  { %v5991_v31 = vmul.f32 %v4948_v23, %v2245_v30 }
0x25f7   :  { %v2308_v32 = vpack.c.bf16 %v5991_v31, %v5991_v31 }
0x25f8   :  { %v2210_v33 = vpop.permute.xlu0 %2209 }
0x25f9   :  { %2310 = vrot.lane.b32.xlu1 %v2308_v32, %s5424_s11  ;;  %v2212_v35 = vmul.f32 %v4956_v34, %v2210_v33 }
0x25fd   :  { %2214 = vrot.lane.b32.xlu1 %v2212_v35, %s5424_s11 }
0x266b   :  { %v2311_v37 = vpop.permute.xlu1 %2310 }
0x266c   :  { %4590 = vmatmul.mubr.msk.bf16.vlgmr.msra.gmra.mxu1 %vm213_vm1, %v2311_v37 }
0x266d   :  { %4600 = vmatpush3.bf16.msra.mxu1 %v5867_v36  ;;  %4601 = vmatprep.mubr.msk.bf16.mxu1 %vm5421_vm0, %v5420_v0 }
0x266e   :  { %4611 = vmatprep.subr.bf16.mxu1 %v5420_v0 }
0x266f   :  { %v2215_v40 = vpop.permute.xlu1 %2214 }
0x2670   :  { %v2217_v42 = vadd.f32 %v2215_v40, %v2207_v39 }
0x2672   :  { %4957 = vtanh.f32 %v2217_v42 }
0x267f   :  { %v4958_v43 = vpop.eup %4957 }
0x2680   :  { %2220 = vrot.lane.b32.xlu0 %v4958_v43, %s5425_s29 }
0x26f2   :  { %v2221_v45 = vpop.permute.xlu0 %2220 }
0x26f3   :  { %v6004_v41 = vmul.f32 %v4956_v34, %v2221_v45 }
0x26f5   :  { %v2259_v47 = vpack.c.bf16 %v6004_v41, %v6004_v41 }
0x26f7   :  { %2261 = vrot.lane.b32.xlu1 %v2259_v47, %s5426_s10 }
0x272c   :  { %v2349_v49 = vpop.f32.mrf.mxu1 }
0x272d   :  { %2356 = vrot.lane.b32.xlu0 %v2349_v49, %s5406_s28  ;;  %v2418_v49 = vld [vmem:[#allocation4 + $0xa] sm:$0x3] }
0x272e   :  { %v4591_v52 = vpop.f32.mrf.mxu1 }
0x2730   :  { %v2352_v53 = vpop.f32.mrf.mxu1 }
0x2732   :  { %v4592_v54 = vpop.f32.mrf.mxu1 }
0x2769   :  { %v2262_v5 = vpop.permute.xlu1 %2261 }
0x276a   :  { %4584 = vmatmul.mubr.msk.bf16.vlgmr.msra.gmra.mxu0 %vm213_vm1, %v2262_v5 }
0x276b   :  { %4594 = vmatpush3.bf16.msra.mxu0 %v5845_v51  ;;  %4595 = vmatprep.mubr.msk.bf16.mxu0 %vm5421_vm0, %v5420_v0 }
0x276c   :  { %4605 = vmatprep.subr.bf16.mxu0 %v5420_v0 }
0x279f   :  { %v2357_v57 = vpop.permute.xlu0 %2356 }
0x27a0   :  { %v2359_v58 = vadd.f32 %v2357_v57, %v2307_v56 }
0x27a2   :  { %4959 = vtanh.f32 %v2359_v58  ;;  %v4270_v62 = vmul.f32 -1.442695, %v2359_v58 }
0x27a4   :  { %4961 = vpow2.f32 %v4270_v62 }
0x27af   :  { %v4960_v61 = vpop.eup %4959 }
0x27b0   :  { %2393 = vrot.lane.b32.xlu1 %v4960_v61, %s5423_s8 }
0x27b1   :  { %v4962_v1 = vpop.eup %4961 }
0x27b2   :  { %v2387_v2 = vadd.f32 1.0, %v4962_v1 }
0x27b4   :  { %4963 = vrcp.f32 %v2387_v2 }
0x27c1   :  { %v4964_v6 = vpop.eup %4963 }
0x27c2   :  { %v2391_v23 = vmul.f32 %v4964_v6, %v5986_v25 }
0x2822   :  { %v2394_v4 = vpop.permute.xlu1 %2393 }
0x2823   :  { %v2396_v8 = vmul.f32 %v4964_v6, %v2394_v4 }
0x2825   :  { %2398 = vrot.lane.b32.xlu0 %v2396_v8, %s5424_s11 }
0x282a   :  { %v2300_v11 = vpop.f32.mrf.mxu0 }
0x282b   :  { %v2306_v13 = vadd.f32 %v2300_v11, %v2258_v9 }
0x282c   :  { %v4585_v14 = vpop.f32.mrf.mxu0 }
0x282d   :  { %4965 = vtanh.f32 %v2306_v13  ;;  %v4269_v16 = vmul.f32 -1.442695, %v2306_v13 }
0x282e   :  { %v2303_v55 = vpop.f32.mrf.mxu0 }
0x282f   :  { %4967 = vpow2.f32 %v4269_v16 }
0x2830   :  { %v4586_v15 = vpop.f32.mrf.mxu0 }
0x283a   :  { %v4966_v38 = vpop.eup %4965 }
0x283b   :  { %2369 = vrot.lane.b32.xlu0 %v4966_v38, %s5423_s8 }
0x283c   :  { %v4968_v48 = vpop.eup %4967 }
0x283d   :  { %v2363_v18 = vadd.f32 1.0, %v4968_v48 }
0x2897   :  { %v2399_v10 = vpop.permute.xlu0 %2398 }
0x2898   :  { %v6019_v60 = vadd.f32 %v2399_v10, %v2391_v23 }
0x289a   :  { %4969 = vtanh.f32 %v6019_v60 }
0x289b   :  { %4971 = vrcp.f32 %v2363_v18 }
0x28a7   :  { %v4970_v20 = vpop.eup %4969 }
0x28a8   :  { %2404 = vrot.lane.b32.xlu1 %v4970_v20, %s5425_s29  ;;  %v4972_v21 = vpop.eup %4971 }
0x28a9   :  { %v2367_v27 = vmul.f32 %v4972_v21, %v2217_v42  ;;  %v2467_v42 = vld [vmem:[#allocation4 + $0x4] sm:$0x3] }
0x28ad   :  { %v2370_v22 = vpop.permute.xlu0 %2369 }
0x28ae   :  { %v2372_v24 = vmul.f32 %v4972_v21, %v2370_v22 }
0x28b0   :  { %2374 = vrot.lane.b32.xlu0 %v2372_v24, %s5424_s11 }
0x291a   :  { %v2405_v44 = vpop.permute.xlu1 %2404 }
0x291b   :  { %v6024_v26 = vmul.f32 %v4964_v6, %v2405_v44 }
0x291d   :  { %v2468_v25 = vpack.c.bf16 %v6024_v26, %v6024_v26 }
0x291f   :  { %2470 = vrot.lane.b32.xlu1 %v2468_v25, %s5424_s11 }
0x2922   :  { %v2375_v12 = vpop.permute.xlu0 %2374 }
0x2923   :  { %v2377_v59 = vadd.f32 %v2375_v12, %v2367_v27 }
0x2925   :  { %4973 = vtanh.f32 %v2377_v59 }
0x2932   :  { %v4974_v46 = vpop.eup %4973 }
0x2933   :  { %2380 = vrot.lane.b32.xlu1 %v4974_v46, %s5425_s29 }
0x2991   :  { %v2471_v29 = vpop.permute.xlu1 %2470 }
0x2992   :  { %4602 = vmatmul.mubr.msk.bf16.vlgmr.msra.gmra.mxu1 %vm213_vm1, %v2471_v29  ;;  %v2578_v29 = vld [vmem:[#allocation4 + $0xc] sm:$0x3] }
0x2993   :  { %4612 = vmatpush3.bf16.msra.mxu1 %v5867_v36  ;;  %4613 = vmatprep.mubr.msk.bf16.mxu1 %vm5421_vm0, %v5420_v0 }
0x2994   :  { %4623 = vmatprep.subr.bf16.mxu1 %v5420_v0 }
0x29a5   :  { %v2381_v30 = vpop.permute.xlu1 %2380 }
0x29a6   :  { %v6035_v32 = vmul.f32 %v4972_v21, %v2381_v30 }
0x29a8   :  { %v2419_v33 = vpack.c.bf16 %v6035_v32, %v6035_v32 }
0x29aa   :  { %2421 = vrot.lane.b32.xlu0 %v2419_v33, %s5426_s10 }
0x2a1c   :  { %v2422_v34 = vpop.permute.xlu0 %2421 }
0x2a1d   :  { %4596 = vmatmul.mubr.msk.bf16.vlgmr.msra.gmra.mxu0 %vm213_vm1, %v2422_v34 }
0x2a1e   :  { %4606 = vmatpush3.bf16.msra.mxu0 %v5845_v51  ;;  %4607 = vmatprep.mubr.msk.bf16.mxu0 %vm5421_vm0, %v5420_v0 }
0x2a1f   :  { %4617 = vmatprep.subr.bf16.mxu0 %v5420_v0 }
0x2a52   :  { %v2509_v35 = vpop.f32.mrf.mxu1 }
0x2a53   :  { %2516 = vrot.lane.b32.xlu1 %v2509_v35, %s5406_s28 }
0x2a54   :  { %v4603_v37 = vpop.f32.mrf.mxu1 }
0x2a56   :  { %v2512_v39 = vpop.f32.mrf.mxu1 }
0x2a58   :  { %v4604_v40 = vpop.f32.mrf.mxu1 }
0x2ac5   :  { %v2517_v43 = vpop.permute.xlu1 %2516 }
0x2ac6   :  { %v2519_v45 = vadd.f32 %v2517_v43, %v2467_v42 }
0x2ac8   :  { %4975 = vtanh.f32 %v2519_v45  ;;  %v4274_v58 = vmul.f32 -1.442695, %v2519_v45 }
0x2ad5   :  { %v4976_v47 = vpop.eup %4975 }
0x2ad6   :  { %2553 = vrot.lane.b32.xlu0 %v4976_v47, %s5423_s8 }
0x2add   :  { %v2460_v52 = vpop.f32.mrf.mxu0 }
0x2ade   :  { %v2466_v53 = vadd.f32 %v2460_v52, %v2418_v49 }
0x2adf   :  { %v4597_v54 = vpop.f32.mrf.mxu0 }
0x2ae0   :  { %4977 = vtanh.f32 %v2466_v53  ;;  %v4273_v1 = vmul.f32 -1.442695, %v2466_v53 }
0x2ae1   :  { %v2463_v5 = vpop.f32.mrf.mxu0  ;;  %4979 = vpow2.f32 %v4274_v58 }
0x2ae3   :  { %v4598_v56 = vpop.f32.mrf.mxu0 }
0x2aed   :  { %v4978_v57 = vpop.eup %4977 }
0x2aee   :  { %2529 = vrot.lane.b32.xlu0 %v4978_v57, %s5423_s8  ;;  %v4980_v61 = vpop.eup %4979 }
0x2aef   :  { %v2547_v62 = vadd.f32 1.0, %v4980_v61 }
0x2af1   :  { %4981 = vrcp.f32 %v2547_v62 }
0x2af2   :  { %4983 = vpow2.f32 %v4273_v1 }
0x2afe   :  { %v4982_v2 = vpop.eup %4981 }
0x2aff   :  { %v4984_v8 = vpop.eup %4983  ;;  %v2551_v55 = vmul.f32 %v4982_v2, %v6019_v60 }
0x2b00   :  { %v2523_v9 = vadd.f32 1.0, %v4984_v8 }
0x2b02   :  { %4985 = vrcp.f32 %v2523_v9 }
0x2b0f   :  { %v4986_v11 = vpop.eup %4985 }
0x2b10   :  { %v2527_v23 = vmul.f32 %v4986_v11, %v2377_v59 }
0x2b48   :  { %v2554_v6 = vpop.permute.xlu0 %2553 }
0x2b49   :  { %v2556_v4 = vmul.f32 %v4982_v2, %v2554_v6 }
0x2b4b   :  { %2558 = vrot.lane.b32.xlu1 %v2556_v4, %s5424_s11 }
0x2b60   :  { %v2530_v13 = vpop.permute.xlu0 %2529 }
0x2b61   :  { %v2532_v14 = vmul.f32 %v4986_v11, %v2530_v13 }
0x2b63   :  { %2534 = vrot.lane.b32.xlu0 %v2532_v14, %s5424_s11 }
0x2bbd   :  { %v2559_v15 = vpop.permute.xlu1 %2558 }
0x2bbe   :  { %v6051_v38 = vadd.f32 %v2559_v15, %v2551_v55 }
0x2bc0   :  { %4987 = vtanh.f32 %v6051_v38 }
0x2bcd   :  { %v4988_v16 = vpop.eup %4987 }
0x2bce   :  { %2564 = vrot.lane.b32.xlu1 %v4988_v16, %s5425_s29 }
0x2bd5   :  { %v2535_v10 = vpop.permute.xlu0 %2534 }
0x2bd6   :  { %v2537_v48 = vadd.f32 %v2535_v10, %v2527_v23 }
0x2bd8   :  { %4989 = vtanh.f32 %v2537_v48 }
0x2be5   :  { %v4990_v18 = vpop.eup %4989 }
0x2be6   :  { %2540 = vrot.lane.b32.xlu0 %v4990_v18, %s5425_s29  ;;  %v2738_v18 = vld [vmem:[#allocation4 + $0xe] sm:$0x3] }
0x2c40   :  { %v2565_v20 = vpop.permute.xlu1 %2564 }
0x2c41   :  { %v6056_v21 = vmul.f32 %v4982_v2, %v2565_v20 }
0x2c43   :  { %v2628_v60 = vpack.c.bf16 %v6056_v21, %v6056_v21 }
0x2c45   :  { %2630 = vrot.lane.b32.xlu1 %v2628_v60, %s5424_s11 }
0x2c58   :  { %v2541_v22 = vpop.permute.xlu0 %2540 }
0x2c59   :  { %v6061_v24 = vmul.f32 %v4986_v11, %v2541_v22 }
0x2c5b   :  { %v2579_v44 = vpack.c.bf16 %v6061_v24, %v6061_v24 }
0x2c5d   :  { %2581 = vrot.lane.b32.xlu1 %v2579_v44, %s5426_s10 }
0x2cb7   :  { %v2631_v25 = vpop.permute.xlu1 %2630 }
0x2cb8   :  { %4614 = vmatmul.mubr.msk.bf16.vlgmr.msra.gmra.mxu1 %vm213_vm1, %v2631_v25 }
0x2cb9   :  { %4624 = vmatpush3.bf16.msra.mxu1 %v5867_v36  ;;  %4625 = vmatprep.mubr.msk.bf16.mxu1 %vm5421_vm0, %v5420_v0 }
0x2cba   :  { %4637 = vmatprep.subr.bf16.mxu1 %v5420_v0 }
0x2ccf   :  { %v2582_v27 = vpop.permute.xlu1 %2581 }
0x2cd0   :  { %4608 = vmatmul.mubr.msk.bf16.vlgmr.msra.gmra.mxu0 %vm213_vm1, %v2582_v27 }
0x2cd1   :  { %4618 = vmatpush3.bf16.msra.mxu0 %v5845_v51  ;;  %4619 = vmatprep.mubr.msk.bf16.mxu0 %vm5421_vm0, %v5420_v0  ;;  %v2627_v51 = vld [vmem:[#allocation4 + $0x2] sm:$0x3] }
0x2cd2   :  { %4629 = vmatprep.subr.bf16.mxu0 %v5420_v0 }
0x2d78   :  { %v2669_v12 = vpop.f32.mrf.mxu1 }
0x2d79   :  { %2676 = vrot.lane.b32.xlu0 %v2669_v12, %s5406_s28 }
0x2d7a   :  { %v4615_v59 = vpop.f32.mrf.mxu1 }
0x2d7c   :  { %v2672_v36 = vpop.f32.mrf.mxu1 }
0x2d7e   :  { %v4616_v46 = vpop.f32.mrf.mxu1 }
0x2d90   :  { %v2620_v30 = vpop.f32.mrf.mxu0 }
0x2d91   :  { %v2626_v33 = vadd.f32 %v2620_v30, %v2578_v29 }
0x2d92   :  { %v4609_v34 = vpop.f32.mrf.mxu0 }
0x2d93   :  { %4991 = vtanh.f32 %v2626_v33  ;;  %v4277_v43 = vmul.f32 -1.442695, %v2626_v33 }
0x2d94   :  { %v2623_v35 = vpop.f32.mrf.mxu0 }
0x2d96   :  { %v4610_v37 = vpop.f32.mrf.mxu0 }
0x2da0   :  { %v4992_v39 = vpop.eup %4991 }
0x2da1   :  { %2689 = vrot.lane.b32.xlu0 %v4992_v39, %s5423_s8  ;;  %v2787_v39 = vld [vmem:[#allocation4] sm:$0x3] }
0x2deb   :  { %v2677_v40 = vpop.permute.xlu0 %2676 }
0x2dec   :  { %v2679_v42 = vadd.f32 %v2677_v40, %v2627_v51 }
0x2dee   :  { %4993 = vtanh.f32 %v2679_v42  ;;  %v4278_v5 = vmul.f32 -1.442695, %v2679_v42 }
0x2def   :  { %4995 = vpow2.f32 %v4277_v43 }
0x2dfb   :  { %v4994_v45 = vpop.eup %4993 }
0x2dfc   :  { %2713 = vrot.lane.b32.xlu1 %v4994_v45, %s5423_s8  ;;  %v4996_v47 = vpop.eup %4995 }
0x2dfd   :  { %v2683_v49 = vadd.f32 1.0, %v4996_v47 }
0x2dff   :  { %4997 = vrcp.f32 %v2683_v49 }
0x2e00   :  { %4999 = vpow2.f32 %v4278_v5 }
0x2e0c   :  { %v4998_v52 = vpop.eup %4997 }
0x2e0d   :  { %v5000_v56 = vpop.eup %4999  ;;  %v2687_v1 = vmul.f32 %v4998_v52, %v2537_v48 }
0x2e0e   :  { %v2707_v57 = vadd.f32 1.0, %v5000_v56 }
0x2e10   :  { %5001 = vrcp.f32 %v2707_v57 }
0x2e13   :  { %v2690_v53 = vpop.permute.xlu0 %2689 }
0x2e14   :  { %v2692_v54 = vmul.f32 %v4998_v52, %v2690_v53 }
0x2e16   :  { %2694 = vrot.lane.b32.xlu0 %v2692_v54, %s5424_s11 }
0x2e1d   :  { %v5002_v58 = vpop.eup %5001 }
0x2e1e   :  { %v2711_v8 = vmul.f32 %v5002_v58, %v6051_v38 }
0x2e6e   :  { %v2714_v61 = vpop.permute.xlu1 %2713 }
0x2e6f   :  { %v2716_v62 = vmul.f32 %v5002_v58, %v2714_v61 }
0x2e71   :  { %2718 = vrot.lane.b32.xlu1 %v2716_v62, %s5424_s11 }
0x2e88   :  { %v2695_v2 = vpop.permute.xlu0 %2694 }
0x2e89   :  { %v2697_v6 = vadd.f32 %v2695_v2, %v2687_v1 }
0x2e8b   :  { %5003 = vtanh.f32 %v2697_v6 }
0x2e98   :  { %v5004_v4 = vpop.eup %5003 }
0x2e99   :  { %2700 = vrot.lane.b32.xlu0 %v5004_v4, %s5425_s29 }
0x2ee3   :  { %v2719_v9 = vpop.permute.xlu1 %2718 }
0x2ee4   :  { %v6083_v11 = vadd.f32 %v2719_v9, %v2711_v8 }
0x2ee6   :  { %5005 = vtanh.f32 %v6083_v11 }
0x2ef3   :  { %v5006_v13 = vpop.eup %5005 }
0x2ef4   :  { %2724 = vrot.lane.b32.xlu1 %v5006_v13, %s5425_s29 }
0x2f0b   :  { %v2701_v14 = vpop.permute.xlu0 %2700 }
0x2f0c   :  { %v2703_v55 = vmul.f32 %v4998_v52, %v2701_v14 }
0x2f0e   :  { %v2739_v15 = vpack.c.bf16 %v2703_v55, %v2703_v55 }
0x2f10   :  { %2741 = vrot.lane.b32.xlu0 %v2739_v15, %s5426_s10 }
0x2f66   :  { %v2725_v16 = vpop.permute.xlu1 %2724 }
0x2f67   :  { %v6088_v23 = vmul.f32 %v5002_v58, %v2725_v16 }
0x2f69   :  { %v2788_v10 = vpack.c.bf16 %v6088_v23, %v6088_v23 }
0x2f6b   :  { %2790 = vrot.lane.b32.xlu1 %v2788_v10, %s5424_s11 }
0x2f82   :  { %v2742_v38 = vpop.permute.xlu0 %2741 }
0x2f83   :  { %4620 = vmatmul.mubr.msk.bf16.vlgmr.msra.gmra.mxu0 %vm213_vm1, %v2742_v38  ;;  %v6169_v38 = vld [vmem:[#allocation22] sm:$0xff]  }
0x2f84   :  { %4633 = vmatprep.mubr.msk.bf16.mxu0 %vm5421_vm0, %v5420_v0 }
0x2fdd   :  { %v2791_v48 = vpop.permute.xlu1 %2790 }
0x2fde   :  { %4626 = vmatmul.mubr.msk.bf16.vlgmr.msra.gmra.mxu1 %vm213_vm1, %v2791_v48 }
0x2fdf   :  { %4639 = vmatprep.mubr.msk.bf16.mxu1 %vm5421_vm0, %v5420_v0 }
0x3043   :  { %v2780_v20 = vpop.f32.mrf.mxu0 }
0x3044   :  { %v2786_v60 = vadd.f32 %v2780_v20, %v2738_v18 }
0x3045   :  { %v4621_v22 = vpop.f32.mrf.mxu0 }
0x3046   :  { %5007 = vtanh.f32 %v2786_v60  ;;  %v4281_v36 = vmul.f32 -1.442695, %v2786_v60 }
0x3047   :  { %v2783_v44 = vpop.f32.mrf.mxu0 }
0x3048   :  { %5009 = vpow2.f32 %v4281_v36  ;;  %v4283_v44 = vld [vmem:[%s6441_s12] ss:$0 sm:$0xff]  ;;  %s5427_s12 = smov [#allocation23]  }
0x3049   :  { %v4622_v25 = vpop.f32.mrf.mxu0 }
0x3053   :  { %v5008_v27 = vpop.eup %5007 }
0x3054   :  { %2849 = vrot.lane.b32.xlu0 %v5008_v27, %s5423_s8 }
0x3055   :  { %v5010_v30 = vpop.eup %5009 }
0x3056   :  { %v2843_v33 = vadd.f32 1.0, %v5010_v30 }
0x3058   :  { %5011 = vrcp.f32 %v2843_v33 }
0x3065   :  { %v5012_v34 = vpop.eup %5011 }
0x3066   :  { %v2847_v43 = vmul.f32 %v5012_v34, %v2697_v6  ;;  %v6147_v6 = vld [vmem:[#allocation20] sm:$0xff]  }
0x3067   :  { %4638 = vmatpush3.bf16.msra.mxu1 %v6147_v6 }
0x3068   :  { %4649 = vmatprep.subr.bf16.mxu1 %v5420_v0 }
0x306a   :  { %4640 = vmatmul.mubr.bf16.vlgmr.msra.gmra.mxu1 %v5422_v7 }
0x306b   :  { %4650 = vmatpush3.bf16.msra.mxu1 %v6147_v6  ;;  %4651 = vmatprep.mubr.msk.bf16.mxu1 %vm5421_vm0, %v5420_v0 }
0x306c   :  { %4661 = vmatprep.subr.bf16.mxu1 %v5420_v0 }
0x309e   :  { %v2829_v12 = vpop.f32.mrf.mxu1 }
0x309f   :  { %2836 = vrot.lane.b32.xlu1 %v2829_v12, %s5406_s28 }
0x30a0   :  { %v4627_v59 = vpop.f32.mrf.mxu1 }
0x30a2   :  { %v2832_v46 = vpop.f32.mrf.mxu1 }
0x30a4   :  { %v4628_v29 = vpop.f32.mrf.mxu1 }
0x30c6   :  { %v2850_v35 = vpop.permute.xlu0 %2849 }
0x30c7   :  { %v2852_v37 = vmul.f32 %v5012_v34, %v2850_v35 }
0x30c9   :  { %2854 = vrot.lane.b32.xlu0 %v2852_v37, %s5424_s11 }
0x3111   :  { %v2837_v51 = vpop.permute.xlu1 %2836 }
0x3112   :  { %v2839_v40 = vadd.f32 %v2837_v51, %v2787_v39 }
0x3114   :  { %5013 = vtanh.f32 %v2839_v40  ;;  %v4282_v52 = vmul.f32 -1.442695, %v2839_v40 }
0x3121   :  { %v5014_v42 = vpop.eup %5013 }
0x3122   :  { %2873 = vrot.lane.b32.xlu1 %v5014_v42, %s5423_s8 }
0x312a   :  { %v3015_v18 = vpop.f32.mrf.mxu1 }
0x312c   :  { %v4641_v20 = vpop.f32.mrf.mxu1 }
0x312e   :  { %v3018_v60 = vpop.f32.mrf.mxu1 }
0x3130   :  { %v4642_v22 = vpop.f32.mrf.mxu1 }
0x313b   :  { %v2855_v45 = vpop.permute.xlu0 %2854 }
0x313c   :  { %v2857_v47 = vadd.f32 %v2855_v45, %v2847_v43 }
0x313e   :  { %5015 = vtanh.f32 %v2857_v47 }
0x313f   :  { %5017 = vpow2.f32 %v4282_v52 }
0x314b   :  { %v5016_v49 = vpop.eup %5015 }
0x314c   :  { %2860 = vrot.lane.b32.xlu0 %v5016_v49, %s5425_s29 }
0x3150   :  { %1769 = vrot.lane.b32.xlu0 %v5902_v28, %s5426_s10  ;;  %v5018_v28 = vpop.eup %5017 }
0x3151   :  { %v2867_v53 = vadd.f32 1.0, %v5018_v28 }
0x3153   :  { %5019 = vrcp.f32 %v2867_v53 }
0x3154   :  { %1929 = vrot.lane.b32.xlu0 %v5937_v17, %s5426_s10 }
0x3158   :  { %2089 = vrot.lane.b32.xlu0 %v5972_v63, %s5426_s10 }
0x315c   :  { %2249 = vrot.lane.b32.xlu0 %v6004_v41, %s5426_s10 }
0x3160   :  { %2409 = vrot.lane.b32.xlu0 %v6035_v32, %s5426_s10  ;;  %v5020_v17 = vpop.eup %5019 }
0x3161   :  { %v2871_v58 = vmul.f32 %v5020_v17, %v6083_v11 }
0x3164   :  { %2569 = vrot.lane.b32.xlu0 %v6061_v24, %s5426_s10 }
0x3168   :  { %2729 = vrot.lane.b32.xlu0 %v2703_v55, %s5426_s10 }
0x3194   :  { %v2874_v54 = vpop.permute.xlu1 %2873 }
0x3195   :  { %v2876_v5 = vmul.f32 %v5020_v17, %v2874_v54 }
0x3197   :  { %2878 = vrot.lane.b32.xlu1 %v2876_v5, %s5424_s11 }
0x31be   :  { %v2861_v63 = vpop.permute.xlu0 %2860 }
0x31bf   :  { %v2863_v41 = vmul.f32 %v5012_v34, %v2861_v63 }
0x31c1   :  { %2889 = vrot.lane.b32.xlu0 %v2863_v41, %s5426_s10 }
0x31c2   :  { %v1770_v32 = vpop.permute.xlu0 %1769 }
0x31c3   :  { %1772 = vst.msk [vmem:[#allocation3] sm:$0x3] %vm415_vm2, %v1770_v32 }
0x31c6   :  { %v1930_v24 = vpop.permute.xlu0 %1929 }
0x31c7   :  { %1932 = vst.msk [vmem:[#allocation3 + $0x2] sm:$0x3] %vm415_vm2, %v1930_v24 }
0x31ca   :  { %v2090_v56 = vpop.permute.xlu0 %2089 }
0x31cb   :  { %2092 = vst.msk [vmem:[#allocation3 + $0x4] sm:$0x3] %vm415_vm2, %v2090_v56 }
0x31ce   :  { %v2250_v57 = vpop.permute.xlu0 %2249 }
0x31cf   :  { %2252 = vst.msk [vmem:[#allocation3 + $0x6] sm:$0x3] %vm415_vm2, %v2250_v57 }
0x31d2   :  { %v2410_v2 = vpop.permute.xlu0 %2409 }
0x3209   :  { %v2879_v61 = vpop.permute.xlu1 %2878 }
0x320a   :  { %v2881_v62 = vadd.f32 %v2879_v61, %v2871_v58 }
0x320c   :  { %5021 = vtanh.f32 %v2881_v62 }
0x3219   :  { %v5022_v1 = vpop.eup %5021 }
0x321a   :  { %2884 = vrot.lane.b32.xlu1 %v5022_v1, %s5425_s29 }
0x321e   :  { %1774 = vrot.lane.b32.xlu1 %v5887_v19, %s5425_s29  ;;  %v4763_v19 = vld [vmem:[%s6438_s9 + $0x8] sm:$0xff]  }
0x321f   :  { %4630 = vmatpush3.bf16.msra.mxu0 %v4763_v19 }
0x3220   :  { %4631 = vmatprep.subr.bf16.mxu0 %v5420_v0 }
0x3222   :  { %1934 = vrot.lane.b32.xlu1 %v5921_v3, %s5425_s29  ;;  %v4764_v3 = vld [vmem:[%s6438_s9] sm:$0xff]  }
0x3223   :  { %4632 = vmatpush3.bf16.msra.mxu0 %v4764_v3 }
0x3224   :  { %4643 = vmatprep.subr.bf16.mxu0 %v5420_v0 }
0x3226   :  { %2094 = vrot.lane.b32.xlu1 %v5956_v50, %s5425_s29  ;;  %v2570_v50 = vpop.permute.xlu0 %2569 }
0x322a   :  { %2254 = vrot.lane.b32.xlu1 %v5991_v31, %s5425_s29 }
0x322e   :  { %2414 = vrot.lane.b32.xlu1 %v6024_v26, %s5425_s29  ;;  %v2730_v26 = vpop.permute.xlu0 %2729 }
0x3232   :  { %2574 = vrot.lane.b32.xlu1 %v6056_v21, %s5425_s29 }
0x3233   :  { %v2890_v8 = vpop.permute.xlu0 %2889 }
0x3236   :  { %2734 = vrot.lane.b32.xlu1 %v6088_v23, %s5425_s29 }
0x328c   :  { %v2885_v31 = vpop.permute.xlu1 %2884 }
0x328d   :  { %v2887_v21 = vmul.f32 %v5020_v17, %v2885_v31 }
0x328f   :  { %2894 = vrot.lane.b32.xlu1 %v2887_v21, %s5425_s29 }
0x3290   :  { %v1775_v4 = vpop.permute.xlu1 %1774 }
0x3291   :  { %1777 = vst.msk [vmem:[#allocation3 + $0xe] sm:$0x3] %vm421_vm3, %v1775_v4 }
0x3292   :  { %2892 = vst.msk [vmem:[#allocation3 + $0xe] sm:$0x3] %vm415_vm2, %v2890_v8 }
0x3294   :  { %v1935_v9 = vpop.permute.xlu1 %1934 }
0x3295   :  { %1937 = vst.msk [vmem:[#allocation3 + $0xc] sm:$0x3] %vm421_vm3, %v1935_v9 }
0x3296   :  { %2732 = vst.msk [vmem:[#allocation3 + $0xc] sm:$0x3] %vm415_vm2, %v2730_v26 }
0x3298   :  { %v2095_v11 = vpop.permute.xlu1 %2094 }
0x3299   :  { %2097 = vst.msk [vmem:[#allocation3 + $0xa] sm:$0x3] %vm421_vm3, %v2095_v11 }
0x329a   :  { %2572 = vst.msk [vmem:[#allocation3 + $0xa] sm:$0x3] %vm415_vm2, %v2570_v50 }
0x329c   :  { %v2255_v13 = vpop.permute.xlu1 %2254 }
0x329d   :  { %2257 = vst.msk [vmem:[#allocation3 + $0x8] sm:$0x3] %vm421_vm3, %v2255_v13 }
0x329e   :  { %2412 = vst.msk [vmem:[#allocation3 + $0x8] sm:$0x3] %vm415_vm2, %v2410_v2 }
0x32a0   :  { %v2415_v14 = vpop.permute.xlu1 %2414 }
0x32a1   :  { %2417 = vst.msk [vmem:[#allocation3 + $0x6] sm:$0x3] %vm421_vm3, %v2415_v14 }
0x32a4   :  { %v2575_v55 = vpop.permute.xlu1 %2574 }
0x32a5   :  { %2577 = vst.msk [vmem:[#allocation3 + $0x4] sm:$0x3] %vm421_vm3, %v2575_v55  ;;  %v2908_v10 = vld [vmem:[#allocation3 + $0x8] sm:$0xff] }
0x32a8   :  { %v2735_v15 = vpop.permute.xlu1 %2734 }
0x32a9   :  { %2737 = vst.msk [vmem:[#allocation3 + $0x2] sm:$0x3] %vm421_vm3, %v2735_v15 }
0x3301   :  { %v2895_v16 = vpop.permute.xlu1 %2894 }
0x3302   :  { %2897 = vst.msk [vmem:[#allocation3] sm:$0x3] %vm421_vm3, %v2895_v16 }
0x3309   :  { %v2907_v23 = vld [vmem:[#allocation3] sm:$0xff] }
0x330a   :  { %v2909_v48 = vpack.c.bf16 %v2908_v10, %v2907_v23 }
0x330c   :  { %4634 = vmatmul.mubr.msk.bf16.vlgmr.msra.gmra.mxu0 %vm1573_vm4, %v2909_v48 }
0x330d   :  { %4644 = vmatpush3.bf16.msra.mxu0 %v6169_v38  ;;  %4645 = vmatprep.mubr.msk.bf16.mxu0 %vm5421_vm0, %v5420_v0 }
0x330e   :  { %4655 = vmatprep.subr.bf16.mxu0 %v5420_v0 }
0x3314   :  { %4646 = vmatmul.mubr.bf16.vlgmr.msra.gmra.mxu0 %v5422_v7 }
0x3315   :  { %4656 = vmatpush3.bf16.msra.mxu0 %v6169_v38  ;;  %4657 = vmatprep.mubr.msk.bf16.mxu0 %vm5421_vm0, %v5420_v0 }
0x3316   :  { %4667 = vmatprep.subr.bf16.mxu0 %v5420_v0 }
0x33cc   :  { %v2965_v25 = vpop.f32.mrf.mxu0 }
0x33cd   :  { %v2966_v27 = vadd.f32 %v4283_v44, %v2965_v25 }
0x33ce   :  { %v4635_v12 = vpop.f32.mrf.mxu0 }
0x33cf   :  { %2972 = vst [vmem:[#allocation4] sm:$0xff] %v2966_v27 }
0x33d0   :  { %v2968_v7 = vpop.f32.mrf.mxu0 }
0x33d1   :  { %v2969_v59 = vadd.f32 %v4283_v44, %v2968_v7 }
0x33d2   :  { %v4636_v36 = vpop.f32.mrf.mxu0 }
0x33d3   :  { %2973 = vst [vmem:[#allocation4 + $0x8] sm:$0xff] %v2969_v59 }
0x33d4   :  { %v3063_v46 = vpop.f32.mrf.mxu0 }
0x33d5   :  { %3070 = vrot.lane.b32.xlu0 %v3063_v46, %s5406_s28 }
0x33d6   :  { %v4647_v29 = vpop.f32.mrf.mxu0  ;;  %v6190_v52 = vld [vmem:[#allocation4] sm:$0x3]  ;;  %v6232_v36 = vld [vmem:[#allocation4 + $0x2] sm:$0x3] }
0x33d7   :  { %v3021_v17 = vadd.f32 %v3015_v18, %v6190_v52 }
0x33d8   :  { %v3066_v30 = vpop.f32.mrf.mxu0 }
0x33d9   :  { %v4289_v63 = vmul.f32 -1.442695, %v3021_v17 }
0x33da   :  { %v4648_v33 = vpop.f32.mrf.mxu0  ;;  %v6185_v34 = vld [vmem:[#allocation4 + $0xe] sm:$0x3]  ;;  %v6224_v14 = vld [vmem:[#allocation4 + $0xc] sm:$0x3] }
0x3447   :  { %v3071_v35 = vpop.permute.xlu0 %3070 }
0x3448   :  { %v3073_v37 = vadd.f32 %v3071_v35, %v6185_v34 }
0x344a   :  { %5023 = vtanh.f32 %v3073_v37  ;;  %v4290_v51 = vmul.f32 -1.442695, %v3073_v37 }
0x344c   :  { %5025 = vpow2.f32 %v4290_v51 }
0x3457   :  { %v5024_v39 = vpop.eup %5023 }
0x3458   :  { %3107 = vrot.lane.b32.xlu1 %v5024_v39, %s5423_s8 }
0x3459   :  { %v5026_v40 = vpop.eup %5025 }
0x345a   :  { %v3101_v42 = vadd.f32 1.0, %v5026_v40 }
0x345c   :  { %5027 = vrcp.f32 %v3101_v42 }
0x3469   :  { %v5028_v43 = vpop.eup %5027 }
0x346a   :  { %v3105_v49 = vmul.f32 0.0, %v5028_v43 }
0x34ca   :  { %v3108_v45 = vpop.permute.xlu1 %3107 }
0x34cb   :  { %v3110_v47 = vmul.f32 %v5028_v43, %v3108_v45 }
0x34cd   :  { %3112 = vrot.lane.b32.xlu0 %v3110_v47, %s5424_s11 }
0x353f   :  { %v3113_v28 = vpop.permute.xlu0 %3112 }
0x3540   :  { %v6192_v53 = vadd.f32 %v3113_v28, %v3105_v49 }
0x3542   :  { %5029 = vtanh.f32 %v6192_v53 }
0x3543   :  { %5031 = vtanh.f32 %v3021_v17 }
0x3544   :  { %5033 = vpow2.f32 %v4289_v63 }
0x354f   :  { %v5030_v54 = vpop.eup %5029 }
0x3550   :  { %3118 = vrot.lane.b32.xlu1 %v5030_v54, %s5425_s29  ;;  %v5032_v5 = vpop.eup %5031 }
0x3551   :  { %v5034_v41 = vpop.eup %5033 }
0x3552   :  { %v3077_v32 = vadd.f32 1.0, %v5034_v41 }
0x3554   :  { %3083 = vrot.lane.b32.xlu1 %v5032_v5, %s5423_s8  ;;  %5035 = vrcp.f32 %v3077_v32 }
0x3561   :  { %v5036_v58 = vpop.eup %5035 }
0x3562   :  { %v3081_v2 = vmul.f32 0.0, %v5036_v58 }
0x35c2   :  { %v3119_v24 = vpop.permute.xlu1 %3118 }
0x35c3   :  { %v6198_v56 = vmul.f32 %v5028_v43, %v3119_v24 }
0x35c5   :  { %v3174_v57 = vpack.c.bf16 %v6198_v56, %v6198_v56 }
0x35c6   :  { %v3084_v61 = vpop.permute.xlu1 %3083 }
0x35c7   :  { %v3086_v62 = vmul.f32 %v5036_v58, %v3084_v61  ;;  %3176 = vrot.lane.b32.xlu0 %v3174_v57, %s5424_s11  ;;  %v6265_v61 = vld [vmem:[#allocation4 + $0xa] sm:$0x3] }
0x35c9   :  { %3088 = vrot.lane.b32.xlu1 %v3086_v62, %s5424_s11 }
0x3639   :  { %v3177_v1 = vpop.permute.xlu0 %3176 }
0x363a   :  { %4658 = vmatmul.mubr.msk.bf16.vlgmr.msra.gmra.mxu0 %vm213_vm1, %v3177_v1 }
0x363b   :  { %v3089_v19 = vpop.permute.xlu1 %3088  ;;  %4668 = vmatpush3.bf16.msra.mxu0 %v6169_v38  ;;  %4669 = vmatprep.mubr.msk.bf16.mxu0 %vm5421_vm0, %v5420_v0 }
0x363c   :  { %v6208_v3 = vadd.f32 %v3089_v19, %v3081_v2  ;;  %4679 = vmatprep.subr.bf16.mxu0 %v5420_v0 }
0x363e   :  { %5037 = vtanh.f32 %v6208_v3 }
0x364b   :  { %v5038_v50 = vpop.eup %5037 }
0x364c   :  { %3094 = vrot.lane.b32.xlu1 %v5038_v50, %s5425_s29 }
0x36be   :  { %v3095_v31 = vpop.permute.xlu1 %3094 }
0x36bf   :  { %v6213_v26 = vmul.f32 %v5036_v58, %v3095_v31 }
0x36c1   :  { %v3125_v21 = vpack.c.bf16 %v6213_v26, %v6213_v26 }
0x36c3   :  { %3127 = vrot.lane.b32.xlu1 %v3125_v21, %s5426_s10 }
0x36fa   :  { %v3215_v4 = vpop.f32.mrf.mxu0 }
0x36fb   :  { %3222 = vrot.lane.b32.xlu0 %v3215_v4, %s5406_s28 }
0x36fc   :  { %v4659_v8 = vpop.f32.mrf.mxu0 }
0x36fe   :  { %v3218_v9 = vpop.f32.mrf.mxu0 }
0x3700   :  { %v4660_v11 = vpop.f32.mrf.mxu0 }
0x3735   :  { %v3128_v13 = vpop.permute.xlu1 %3127 }
0x3736   :  { %4652 = vmatmul.mubr.msk.bf16.vlgmr.msra.gmra.mxu1 %vm213_vm1, %v3128_v13 }
0x3737   :  { %4662 = vmatpush3.bf16.msra.mxu1 %v6147_v6  ;;  %4663 = vmatprep.mubr.msk.bf16.mxu1 %vm5421_vm0, %v5420_v0 }
0x3738   :  { %4673 = vmatprep.subr.bf16.mxu1 %v5420_v0 }
0x376d   :  { %v3223_v55 = vpop.permute.xlu0 %3222 }
0x376e   :  { %v3225_v15 = vadd.f32 %v3223_v55, %v6224_v14 }
0x3770   :  { %5039 = vtanh.f32 %v3225_v15  ;;  %v4294_v23 = vmul.f32 -1.442695, %v3225_v15 }
0x3772   :  { %5041 = vpow2.f32 %v4294_v23  ;;  %v6273_v23 = vld [vmem:[#allocation4 + $0x4] sm:$0x3] }
0x377d   :  { %v5040_v16 = vpop.eup %5039 }
0x377e   :  { %3259 = vrot.lane.b32.xlu0 %v5040_v16, %s5423_s8 }
0x377f   :  { %v5042_v10 = vpop.eup %5041 }
0x3780   :  { %v3253_v48 = vadd.f32 1.0, %v5042_v10 }
0x3782   :  { %5043 = vrcp.f32 %v3253_v48 }
0x378f   :  { %v5044_v18 = vpop.eup %5043 }
0x3790   :  { %v3257_v12 = vmul.f32 %v5044_v18, %v6192_v53 }
0x37f0   :  { %v3260_v20 = vpop.permute.xlu0 %3259 }
0x37f1   :  { %v3262_v60 = vmul.f32 %v5044_v18, %v3260_v20 }
0x37f3   :  { %3264 = vrot.lane.b32.xlu0 %v3262_v60, %s5424_s11 }
0x37f6   :  { %v3166_v22 = vpop.f32.mrf.mxu1 }
0x37f7   :  { %v3172_v46 = vadd.f32 %v3166_v22, %v6232_v36 }
0x37f8   :  { %v4653_v44 = vpop.f32.mrf.mxu1 }
0x37f9   :  { %v4293_v33 = vmul.f32 -1.442695, %v3172_v46 }
0x37fa   :  { %v3169_v25 = vpop.f32.mrf.mxu1 }
0x37fc   :  { %v4654_v27 = vpop.f32.mrf.mxu1 }
0x3865   :  { %v3265_v7 = vpop.permute.xlu0 %3264 }
0x3866   :  { %v6230_v59 = vadd.f32 %v3265_v7, %v3257_v12 }
0x3868   :  { %5045 = vtanh.f32 %v6230_v59 }
0x3869   :  { %5047 = vtanh.f32 %v3172_v46 }
0x386a   :  { %5049 = vpow2.f32 %v4293_v33 }
0x3875   :  { %v5046_v29 = vpop.eup %5045 }
0x3876   :  { %3270 = vrot.lane.b32.xlu0 %v5046_v29, %s5425_s29  ;;  %v5048_v30 = vpop.eup %5047 }
0x3877   :  { %v5050_v35 = vpop.eup %5049 }
0x3878   :  { %v3229_v37 = vadd.f32 1.0, %v5050_v35 }
0x387a   :  { %3235 = vrot.lane.b32.xlu0 %v5048_v30, %s5423_s8  ;;  %5051 = vrcp.f32 %v3229_v37 }
0x3887   :  { %v5052_v43 = vpop.eup %5051 }
0x3888   :  { %v3233_v49 = vmul.f32 %v5052_v43, %v6208_v3 }
0x38e8   :  { %v3271_v39 = vpop.permute.xlu0 %3270 }
0x38e9   :  { %v6238_v51 = vmul.f32 %v5044_v18, %v3271_v39 }
0x38eb   :  { %v3326_v40 = vpack.c.bf16 %v6238_v51, %v6238_v51  ;;  %v3275_v25 = vadd.f32 %v6238_v51, %v6198_v56 }
0x38ec   :  { %v3236_v42 = vpop.permute.xlu0 %3235 }
0x38ed   :  { %3328 = vrot.lane.b32.xlu1 %v3326_v40, %s5424_s11  ;;  %v3238_v45 = vmul.f32 %v5052_v43, %v3236_v42 }
0x38f1   :  { %3240 = vrot.lane.b32.xlu1 %v3238_v45, %s5424_s11 }
0x395f   :  { %v3329_v47 = vpop.permute.xlu1 %3328 }
0x3960   :  { %4670 = vmatmul.mubr.msk.bf16.vlgmr.msra.gmra.mxu0 %vm213_vm1, %v3329_v47 }
0x3961   :  { %4680 = vmatpush3.bf16.msra.mxu0 %v6169_v38  ;;  %4681 = vmatprep.mubr.msk.bf16.mxu0 %vm5421_vm0, %v5420_v0 }
0x3962   :  { %4691 = vmatprep.subr.bf16.mxu0 %v5420_v0 }
0x3963   :  { %v3241_v28 = vpop.permute.xlu1 %3240 }
0x3964   :  { %v6250_v53 = vadd.f32 %v3241_v28, %v3233_v49 }
0x3966   :  { %5053 = vtanh.f32 %v6250_v53 }
0x3973   :  { %v5054_v17 = vpop.eup %5053 }
0x3974   :  { %3246 = vrot.lane.b32.xlu1 %v5054_v17, %s5425_s29 }
0x39e6   :  { %v3247_v54 = vpop.permute.xlu1 %3246 }
0x39e7   :  { %v6254_v5 = vmul.f32 %v5052_v43, %v3247_v54 }
0x39e9   :  { %v3277_v63 = vpack.c.bf16 %v6254_v5, %v6254_v5  ;;  %v3274_v51 = vadd.f32 %v6254_v5, %v6213_v26  ;;  %v6306_v26 = vld [vmem:[#allocation4 + $0x8] sm:$0x3] }
0x39eb   :  { %3279 = vrot.lane.b32.xlu1 %v3277_v63, %s5426_s10 }
0x3a20   :  { %v3367_v41 = vpop.f32.mrf.mxu0 }
0x3a21   :  { %3374 = vrot.lane.b32.xlu0 %v3367_v41, %s5406_s28 }
0x3a22   :  { %v4671_v32 = vpop.f32.mrf.mxu0 }
0x3a24   :  { %v3370_v24 = vpop.f32.mrf.mxu0 }
0x3a26   :  { %v4672_v57 = vpop.f32.mrf.mxu0 }
0x3a5d   :  { %v3280_v58 = vpop.permute.xlu1 %3279 }
0x3a5e   :  { %4664 = vmatmul.mubr.msk.bf16.vlgmr.msra.gmra.mxu1 %vm213_vm1, %v3280_v58 }
0x3a5f   :  { %4674 = vmatpush3.bf16.msra.mxu1 %v6147_v6  ;;  %4675 = vmatprep.mubr.msk.bf16.mxu1 %vm5421_vm0, %v5420_v0 }
0x3a60   :  { %4685 = vmatprep.subr.bf16.mxu1 %v5420_v0 }
0x3a93   :  { %v3375_v62 = vpop.permute.xlu0 %3374 }
0x3a94   :  { %v3377_v1 = vadd.f32 %v3375_v62, %v6265_v61 }
0x3a96   :  { %5055 = vtanh.f32 %v3377_v1  ;;  %v4298_v19 = vmul.f32 -1.442695, %v3377_v1 }
0x3a98   :  { %5057 = vpow2.f32 %v4298_v19 }
0x3aa3   :  { %v5056_v2 = vpop.eup %5055 }
0x3aa4   :  { %3411 = vrot.lane.b32.xlu0 %v5056_v2, %s5423_s8 }
0x3aa5   :  { %v5058_v3 = vpop.eup %5057 }
0x3aa6   :  { %v3405_v50 = vadd.f32 1.0, %v5058_v3 }
0x3aa8   :  { %5059 = vrcp.f32 %v3405_v50 }
0x3ab5   :  { %v5060_v31 = vpop.eup %5059 }
0x3ab6   :  { %v3409_v55 = vmul.f32 %v5060_v31, %v6230_v59 }
0x3b16   :  { %v3412_v21 = vpop.permute.xlu0 %3411 }
0x3b17   :  { %v3414_v4 = vmul.f32 %v5060_v31, %v3412_v21  ;;  %v3428_v21 = vld [vmem:[#allocation4 + $0x6] sm:$0x3] }
0x3b19   :  { %3416 = vrot.lane.b32.xlu0 %v3414_v4, %s5424_s11 }
0x3b1e   :  { %v3318_v8 = vpop.f32.mrf.mxu1 }
0x3b1f   :  { %v3324_v10 = vadd.f32 %v3318_v8, %v6273_v23 }
0x3b20   :  { %v4665_v9 = vpop.f32.mrf.mxu1 }
0x3b21   :  { %v4297_v20 = vmul.f32 -1.442695, %v3324_v10 }
0x3b22   :  { %v3321_v11 = vpop.f32.mrf.mxu1 }
0x3b24   :  { %v4666_v13 = vpop.f32.mrf.mxu1 }
0x3b8b   :  { %v3417_v15 = vpop.permute.xlu0 %3416 }
0x3b8c   :  { %v6271_v16 = vadd.f32 %v3417_v15, %v3409_v55 }
0x3b8e   :  { %5061 = vtanh.f32 %v6271_v16 }
0x3b8f   :  { %5063 = vtanh.f32 %v3324_v10 }
0x3b90   :  { %5065 = vpow2.f32 %v4297_v20 }
0x3b9b   :  { %v5062_v48 = vpop.eup %5061 }
0x3b9c   :  { %3422 = vrot.lane.b32.xlu1 %v5062_v48, %s5425_s29  ;;  %v5064_v18 = vpop.eup %5063 }
0x3b9d   :  { %v5066_v60 = vpop.eup %5065 }
0x3b9e   :  { %v3381_v22 = vadd.f32 1.0, %v5066_v60 }
0x3ba0   :  { %3387 = vrot.lane.b32.xlu1 %v5064_v18, %s5423_s8  ;;  %5067 = vrcp.f32 %v3381_v22 }
0x3bad   :  { %v5068_v46 = vpop.eup %5067 }
0x3bae   :  { %v3385_v56 = vmul.f32 %v5068_v46, %v6250_v53 }
0x3c0e   :  { %v3423_v44 = vpop.permute.xlu1 %3422 }
0x3c0f   :  { %v3425_v27 = vmul.f32 %v5060_v31, %v3423_v44 }
0x3c11   :  { %v6281_v12 = vadd.f32 %v3425_v27, %v3275_v25  ;;  %v3478_v7 = vpack.c.bf16 %v3425_v27, %v3425_v27 }
0x3c12   :  { %v3388_v59 = vpop.permute.xlu1 %3387 }
0x3c13   :  { %3480 = vrot.lane.b32.xlu0 %v3478_v7, %s5424_s11  ;;  %v3390_v29 = vmul.f32 %v5068_v46, %v3388_v59 }
0x3c17   :  { %3392 = vrot.lane.b32.xlu0 %v3390_v29, %s5424_s11 }
0x3c85   :  { %v3481_v30 = vpop.permute.xlu0 %3480 }
0x3c86   :  { %4682 = vmatmul.mubr.msk.bf16.vlgmr.msra.gmra.mxu0 %vm213_vm1, %v3481_v30 }
0x3c87   :  { %4692 = vmatpush3.bf16.msra.mxu0 %v6169_v38  ;;  %4693 = vmatprep.mubr.msk.bf16.mxu0 %vm5421_vm0, %v5420_v0 }
0x3c88   :  { %4703 = vmatprep.subr.bf16.mxu0 %v5420_v0 }
0x3c89   :  { %v3393_v33 = vpop.permute.xlu0 %3392 }
0x3c8a   :  { %v6291_v35 = vadd.f32 %v3393_v33, %v3385_v56 }
0x3c8c   :  { %5069 = vtanh.f32 %v6291_v35 }
0x3c99   :  { %v5070_v37 = vpop.eup %5069 }
0x3c9a   :  { %3398 = vrot.lane.b32.xlu1 %v5070_v37, %s5425_s29 }
0x3d0c   :  { %v3399_v39 = vpop.permute.xlu1 %3398 }
0x3d0d   :  { %v3401_v40 = vmul.f32 %v5068_v46, %v3399_v39 }
0x3d0f   :  { %v6297_v42 = vadd.f32 %v3401_v40, %v3274_v51  ;;  %v3429_v43 = vpack.c.bf16 %v3401_v40, %v3401_v40 }
0x3d11   :  { %3431 = vrot.lane.b32.xlu1 %v3429_v43, %s5426_s10 }
0x3d46   :  { %v3519_v45 = vpop.f32.mrf.mxu0 }
0x3d47   :  { %3526 = vrot.lane.b32.xlu0 %v3519_v45, %s5406_s28 }
0x3d48   :  { %v4683_v47 = vpop.f32.mrf.mxu0 }
0x3d4a   :  { %v3522_v49 = vpop.f32.mrf.mxu0 }
0x3d4c   :  { %v4684_v28 = vpop.f32.mrf.mxu0 }
0x3d83   :  { %v3432_v53 = vpop.permute.xlu1 %3431 }
0x3d84   :  { %4676 = vmatmul.mubr.msk.bf16.vlgmr.msra.gmra.mxu1 %vm213_vm1, %v3432_v53 }
0x3d85   :  { %4686 = vmatpush3.bf16.msra.mxu1 %v6147_v6  ;;  %4687 = vmatprep.mubr.msk.bf16.mxu1 %vm5421_vm0, %v5420_v0 }
0x3d86   :  { %4697 = vmatprep.subr.bf16.mxu1 %v5420_v0 }
0x3db9   :  { %v3527_v17 = vpop.permute.xlu0 %3526 }
0x3dba   :  { %v3529_v54 = vadd.f32 %v3527_v17, %v6306_v26 }
0x3dbc   :  { %5071 = vtanh.f32 %v3529_v54  ;;  %v4302_v63 = vmul.f32 -1.442695, %v3529_v54 }
0x3dbe   :  { %5073 = vpow2.f32 %v4302_v63 }
0x3dc9   :  { %v5072_v5 = vpop.eup %5071 }
0x3dca   :  { %3563 = vrot.lane.b32.xlu0 %v5072_v5, %s5423_s8 }
0x3dcb   :  { %v5074_v41 = vpop.eup %5073 }
0x3dcc   :  { %v3557_v32 = vadd.f32 1.0, %v5074_v41 }
0x3dce   :  { %5075 = vrcp.f32 %v3557_v32 }
0x3ddb   :  { %v5076_v24 = vpop.eup %5075 }
0x3ddc   :  { %v3561_v3 = vmul.f32 %v5076_v24, %v6271_v16 }
0x3e3c   :  { %v3564_v57 = vpop.permute.xlu0 %3563 }
0x3e3d   :  { %v3566_v58 = vmul.f32 %v5076_v24, %v3564_v57 }
0x3e3f   :  { %3568 = vrot.lane.b32.xlu1 %v3566_v58, %s5424_s11 }
0x3e44   :  { %v3470_v62 = vpop.f32.mrf.mxu1 }
0x3e45   :  { %v3476_v4 = vadd.f32 %v3470_v62, %v3428_v21 }
0x3e46   :  { %v4677_v1 = vpop.f32.mrf.mxu1 }
0x3e47   :  { %v4301_v11 = vmul.f32 -1.442695, %v3476_v4 }
0x3e48   :  { %v3473_v2 = vpop.f32.mrf.mxu1 }
0x3e4a   :  { %v4678_v19 = vpop.f32.mrf.mxu1 }
0x3eb1   :  { %v3569_v50 = vpop.permute.xlu1 %3568 }
0x3eb2   :  { %v6312_v31 = vadd.f32 %v3569_v50, %v3561_v3 }
0x3eb4   :  { %5077 = vtanh.f32 %v6312_v31 }
0x3eb5   :  { %5079 = vtanh.f32 %v3476_v4 }
0x3eb6   :  { %5081 = vpow2.f32 %v4301_v11 }
0x3ec1   :  { %v5078_v8 = vpop.eup %5077 }
0x3ec2   :  { %3574 = vrot.lane.b32.xlu0 %v5078_v8, %s5425_s29  ;;  %v5080_v9 = vpop.eup %5079 }
0x3ec3   :  { %v5082_v13 = vpop.eup %5081 }
0x3ec4   :  { %v3533_v55 = vadd.f32 1.0, %v5082_v13 }
0x3ec6   :  { %3539 = vrot.lane.b32.xlu0 %v5080_v9, %s5423_s8  ;;  %5083 = vrcp.f32 %v3533_v55 }
0x3ed3   :  { %v5084_v20 = vpop.eup %5083 }
0x3ed4   :  { %v3537_v44 = vmul.f32 %v5084_v20, %v6291_v35 }
0x3f34   :  { %v3575_v15 = vpop.permute.xlu0 %3574 }
0x3f35   :  { %v3577_v16 = vmul.f32 %v5076_v24, %v3575_v15 }
0x3f37   :  { %v6318_v10 = vadd.f32 %v3577_v16, %v6281_v12  ;;  %v3628_v48 = vpack.c.bf16 %v3577_v16, %v3577_v16 }
0x3f38   :  { %v3540_v18 = vpop.permute.xlu0 %3539 }
0x3f39   :  { %3630 = vrot.lane.b32.xlu1 %v3628_v48, %s5424_s11  ;;  %v3542_v60 = vmul.f32 %v5084_v20, %v3540_v18 }
0x3f3d   :  { %3544 = vrot.lane.b32.xlu1 %v3542_v60, %s5424_s11 }
0x3fab   :  { %v3631_v22 = vpop.permute.xlu1 %3630 }
0x3fac   :  { %4694 = vmatmul.mubr.msk.bf16.vlgmr.msra.gmra.mxu0 %vm213_vm1, %v3631_v22 }
0x3fad   :  { %4704 = vmatpush3.bf16.msra.mxu0 %v6169_v38  ;;  %4705 = vmatprep.mubr.msk.bf16.mxu0 %vm5421_vm0, %v5420_v0 }
0x3fae   :  { %4715 = vmatprep.subr.bf16.mxu0 %v5420_v0 }
0x3faf   :  { %v3545_v25 = vpop.permute.xlu1 %3544 }
0x3fb0   :  { %v3547_v27 = vadd.f32 %v3545_v25, %v3537_v44 }
0x3fb2   :  { %5085 = vtanh.f32 %v3547_v27 }
0x3fbf   :  { %v5086_v12 = vpop.eup %5085 }
0x3fc0   :  { %3550 = vrot.lane.b32.xlu0 %v5086_v12, %s5425_s29 }
0x4032   :  { %v3551_v7 = vpop.permute.xlu0 %3550 }
0x4033   :  { %v3553_v59 = vmul.f32 %v5084_v20, %v3551_v7 }
0x4035   :  { %v6330_v46 = vadd.f32 %v3553_v59, %v6297_v42  ;;  %v3580_v29 = vpack.c.bf16 %v3553_v59, %v3553_v59 }
0x4037   :  { %3582 = vrot.lane.b32.xlu1 %v3580_v29, %s5426_s10 }
0x406c   :  { %v3669_v30 = vpop.f32.mrf.mxu0 }
0x406d   :  { %3676 = vrot.lane.b32.xlu0 %v3669_v30, %s5406_s28 }
0x406e   :  { %v4695_v56 = vpop.f32.mrf.mxu0 }
0x4070   :  { %v3672_v33 = vpop.f32.mrf.mxu0 }
0x4072   :  { %v4696_v35 = vpop.f32.mrf.mxu0 }
0x40a9   :  { %v3583_v37 = vpop.permute.xlu1 %3582 }
0x40aa   :  { %4688 = vmatmul.mubr.msk.bf16.vlgmr.msra.gmra.mxu1 %vm213_vm1, %v3583_v37 }
0x40ab   :  { %4698 = vmatpush3.bf16.msra.mxu1 %v6147_v6  ;;  %4699 = vmatprep.mubr.msk.bf16.mxu1 %vm5421_vm0, %v5420_v0 }
0x40ac   :  { %4709 = vmatprep.subr.bf16.mxu1 %v5420_v0 }
0x40df   :  { %v3677_v39 = vpop.permute.xlu0 %3676 }
0x40e0   :  { %v3679_v51 = vadd.f32 %v3677_v39, %v3428_v21 }
0x40e2   :  { %5087 = vtanh.f32 %v3679_v51  ;;  %v4306_v42 = vmul.f32 -1.442695, %v3679_v51 }
0x40e4   :  { %5089 = vpow2.f32 %v4306_v42 }
0x40ef   :  { %v5088_v40 = vpop.eup %5087 }
0x40f0   :  { %3713 = vrot.lane.b32.xlu1 %v5088_v40, %s5423_s8 }
0x40f1   :  { %v5090_v43 = vpop.eup %5089 }
0x40f2   :  { %v3707_v45 = vadd.f32 1.0, %v5090_v43 }
0x40f4   :  { %5091 = vrcp.f32 %v3707_v45 }
0x4101   :  { %v5092_v47 = vpop.eup %5091 }
0x4102   :  { %v3711_v24 = vmul.f32 %v5092_v47, %v6312_v31 }
0x4162   :  { %v3714_v49 = vpop.permute.xlu1 %3713 }
0x4163   :  { %v3716_v28 = vmul.f32 %v5092_v47, %v3714_v49 }
0x4165   :  { %3718 = vrot.lane.b32.xlu0 %v3716_v28, %s5424_s11 }
0x416a   :  { %v3621_v53 = vpop.f32.mrf.mxu1 }
0x416b   :  { %v3627_v17 = vadd.f32 %v3621_v53, %v6306_v26 }
0x416c   :  { %v4689_v54 = vpop.f32.mrf.mxu1 }
0x416d   :  { %5093 = vtanh.f32 %v3627_v17  ;;  %v4305_v32 = vmul.f32 -1.442695, %v3627_v17 }
0x416e   :  { %v3624_v5 = vpop.f32.mrf.mxu1 }
0x416f   :  { %5095 = vpow2.f32 %v4305_v32 }
0x4170   :  { %v4690_v63 = vpop.f32.mrf.mxu1 }
0x417a   :  { %v5094_v41 = vpop.eup %5093 }
0x417b   :  { %3689 = vrot.lane.b32.xlu0 %v5094_v41, %s5423_s8 }
0x417c   :  { %v5096_v62 = vpop.eup %5095 }
0x417d   :  { %v3683_v1 = vadd.f32 1.0, %v5096_v62 }
0x41d7   :  { %v3719_v57 = vpop.permute.xlu0 %3718 }
0x41d8   :  { %v6344_v58 = vadd.f32 %v3719_v57, %v3711_v24 }
0x41da   :  { %5097 = vtanh.f32 %v6344_v58 }
0x41db   :  { %5099 = vrcp.f32 %v3683_v1 }
0x41e7   :  { %v5098_v26 = vpop.eup %5097 }
0x41e8   :  { %3724 = vrot.lane.b32.xlu1 %v5098_v26, %s5425_s29  ;;  %v5100_v2 = vpop.eup %5099 }
0x41e9   :  { %v3687_v8 = vmul.f32 %v5100_v2, %v3547_v27 }
0x41ed   :  { %v3690_v19 = vpop.permute.xlu0 %3689 }
0x41ee   :  { %v3692_v3 = vmul.f32 %v5100_v2, %v3690_v19 }
0x41f0   :  { %3694 = vrot.lane.b32.xlu0 %v3692_v3, %s5424_s11 }
0x425a   :  { %v3725_v50 = vpop.permute.xlu1 %3724 }
0x425b   :  { %v3727_v21 = vmul.f32 %v5092_v47, %v3725_v50 }
0x425d   :  { %v6350_v31 = vadd.f32 %v3727_v21, %v6318_v10  ;;  %v3778_v4 = vpack.c.bf16 %v3727_v21, %v3727_v21 }
0x425f   :  { %3780 = vrot.lane.b32.xlu1 %v3778_v4, %s5424_s11 }
0x4262   :  { %v3695_v9 = vpop.permute.xlu0 %3694 }
0x4263   :  { %v3697_v11 = vadd.f32 %v3695_v9, %v3687_v8 }
0x4265   :  { %5101 = vtanh.f32 %v3697_v11 }
0x4272   :  { %v5102_v13 = vpop.eup %5101 }
0x4273   :  { %3700 = vrot.lane.b32.xlu1 %v5102_v13, %s5425_s29 }
0x42d1   :  { %v3781_v55 = vpop.permute.xlu1 %3780 }
0x42d2   :  { %4706 = vmatmul.mubr.msk.bf16.vlgmr.msra.gmra.mxu0 %vm213_vm1, %v3781_v55 }
0x42d3   :  { %4716 = vmatpush3.bf16.msra.mxu0 %v6169_v38  ;;  %4717 = vmatprep.mubr.msk.bf16.mxu0 %vm5421_vm0, %v5420_v0 }
0x42d4   :  { %4727 = vmatprep.subr.bf16.mxu0 %v5420_v0 }
0x42e5   :  { %v3701_v15 = vpop.permute.xlu1 %3700 }
0x42e6   :  { %v3703_v16 = vmul.f32 %v5100_v2, %v3701_v15 }
0x42e8   :  { %v6360_v10 = vadd.f32 %v3703_v16, %v6330_v46  ;;  %v3730_v48 = vpack.c.bf16 %v3703_v16, %v3703_v16 }
0x42ea   :  { %3732 = vrot.lane.b32.xlu0 %v3730_v48, %s5426_s10 }
0x435c   :  { %v3733_v18 = vpop.permute.xlu0 %3732 }
0x435d   :  { %4700 = vmatmul.mubr.msk.bf16.vlgmr.msra.gmra.mxu1 %vm213_vm1, %v3733_v18 }
0x435e   :  { %4710 = vmatpush3.bf16.msra.mxu1 %v6147_v6  ;;  %4711 = vmatprep.mubr.msk.bf16.mxu1 %vm5421_vm0, %v5420_v0 }
0x435f   :  { %4721 = vmatprep.subr.bf16.mxu1 %v5420_v0 }
0x4392   :  { %v3819_v20 = vpop.f32.mrf.mxu0 }
0x4393   :  { %3826 = vrot.lane.b32.xlu1 %v3819_v20, %s5406_s28 }
0x4394   :  { %v4707_v60 = vpop.f32.mrf.mxu0 }
0x4396   :  { %v3822_v22 = vpop.f32.mrf.mxu0 }
0x4398   :  { %v4708_v44 = vpop.f32.mrf.mxu0 }
0x4405   :  { %v3827_v25 = vpop.permute.xlu1 %3826 }
0x4406   :  { %v3829_v27 = vadd.f32 %v3827_v25, %v6273_v23 }
0x4408   :  { %5103 = vtanh.f32 %v3829_v27  ;;  %v4310_v33 = vmul.f32 -1.442695, %v3829_v27 }
0x4415   :  { %v5104_v12 = vpop.eup %5103 }
0x4416   :  { %3863 = vrot.lane.b32.xlu0 %v5104_v12, %s5423_s8 }
0x441d   :  { %v3771_v7 = vpop.f32.mrf.mxu1 }
0x441e   :  { %v3777_v59 = vadd.f32 %v3771_v7, %v6265_v61 }
0x441f   :  { %v4701_v46 = vpop.f32.mrf.mxu1 }
0x4420   :  { %5105 = vtanh.f32 %v3777_v59  ;;  %v4309_v23 = vmul.f32 -1.442695, %v3777_v59 }
0x4421   :  { %v3774_v29 = vpop.f32.mrf.mxu1  ;;  %5107 = vpow2.f32 %v4310_v33 }
0x4423   :  { %v4702_v30 = vpop.f32.mrf.mxu1 }
0x442d   :  { %v5106_v56 = vpop.eup %5105 }
0x442e   :  { %3839 = vrot.lane.b32.xlu0 %v5106_v56, %s5423_s8  ;;  %v5108_v35 = vpop.eup %5107 }
0x442f   :  { %v3857_v37 = vadd.f32 1.0, %v5108_v35 }
0x4431   :  { %5109 = vrcp.f32 %v3857_v37 }
0x4432   :  { %5111 = vpow2.f32 %v4309_v23 }
0x443e   :  { %v5110_v39 = vpop.eup %5109 }
0x443f   :  { %v5112_v61 = vpop.eup %5111  ;;  %v3861_v49 = vmul.f32 %v5110_v39, %v6344_v58 }
0x4440   :  { %v3833_v42 = vadd.f32 1.0, %v5112_v61 }
0x4442   :  { %5113 = vrcp.f32 %v3833_v42 }
0x444f   :  { %v5114_v43 = vpop.eup %5113 }
0x4450   :  { %v3837_v54 = vmul.f32 %v5114_v43, %v3697_v11 }
0x4488   :  { %v3864_v51 = vpop.permute.xlu0 %3863 }
0x4489   :  { %v3866_v40 = vmul.f32 %v5110_v39, %v3864_v51 }
0x448b   :  { %3868 = vrot.lane.b32.xlu1 %v3866_v40, %s5424_s11 }
0x44a0   :  { %v3840_v45 = vpop.permute.xlu0 %3839 }
0x44a1   :  { %v3842_v47 = vmul.f32 %v5114_v43, %v3840_v45 }
0x44a3   :  { %3844 = vrot.lane.b32.xlu0 %v3842_v47, %s5424_s11 }
0x44fd   :  { %v3869_v28 = vpop.permute.xlu1 %3868 }
0x44fe   :  { %v6376_v53 = vadd.f32 %v3869_v28, %v3861_v49 }
0x4500   :  { %5115 = vtanh.f32 %v6376_v53 }
0x450d   :  { %v5116_v17 = vpop.eup %5115 }
0x450e   :  { %3874 = vrot.lane.b32.xlu1 %v5116_v17, %s5425_s29 }
0x4515   :  { %v3845_v5 = vpop.permute.xlu0 %3844 }
0x4516   :  { %v3847_v63 = vadd.f32 %v3845_v5, %v3837_v54 }
0x4518   :  { %5117 = vtanh.f32 %v3847_v63 }
0x4525   :  { %v5118_v41 = vpop.eup %5117 }
0x4526   :  { %3850 = vrot.lane.b32.xlu0 %v5118_v41, %s5425_s29 }
0x4580   :  { %v3875_v32 = vpop.permute.xlu1 %3874 }
0x4581   :  { %v3877_v24 = vmul.f32 %v5110_v39, %v3875_v32 }
0x4583   :  { %v6382_v57 = vadd.f32 %v3877_v24, %v6350_v31  ;;  %v3928_v58 = vpack.c.bf16 %v3877_v24, %v3877_v24 }
0x4585   :  { %3930 = vrot.lane.b32.xlu1 %v3928_v58, %s5424_s11 }
0x4598   :  { %v3851_v62 = vpop.permute.xlu0 %3850 }
0x4599   :  { %v3853_v1 = vmul.f32 %v5114_v43, %v3851_v62 }
0x459b   :  { %v3878_v26 = vadd.f32 %v3853_v1, %v6360_v10  ;;  %v3880_v2 = vpack.c.bf16 %v3853_v1, %v3853_v1 }
0x459d   :  { %3882 = vrot.lane.b32.xlu1 %v3880_v2, %s5426_s10 }
0x45f7   :  { %v3931_v19 = vpop.permute.xlu1 %3930 }
0x45f8   :  { %4718 = vmatmul.mubr.msk.bf16.vlgmr.msra.gmra.mxu0 %vm213_vm1, %v3931_v19 }
0x45f9   :  { %4728 = vmatpush3.bf16.msra.mxu0 %v6169_v38  ;;  %4729 = vmatprep.mubr.msk.bf16.mxu0 %vm5421_vm0, %v5420_v0 }
0x460f   :  { %v3883_v3 = vpop.permute.xlu1 %3882 }
0x4610   :  { %4712 = vmatmul.mubr.msk.bf16.vlgmr.msra.gmra.mxu1 %vm213_vm1, %v3883_v3 }
0x4611   :  { %4722 = vmatpush3.bf16.msra.mxu1 %v6147_v6  ;;  %4723 = vmatprep.mubr.msk.bf16.mxu1 %vm5421_vm0, %v5420_v0 }
0x46b8   :  { %v3969_v50 = vpop.f32.mrf.mxu0 }
0x46b9   :  { %3976 = vrot.lane.b32.xlu0 %v3969_v50, %s5406_s28 }
0x46ba   :  { %v4719_v21 = vpop.f32.mrf.mxu0 }
0x46bc   :  { %v3972_v31 = vpop.f32.mrf.mxu0 }
0x46be   :  { %v4720_v4 = vpop.f32.mrf.mxu0 }
0x46d0   :  { %v3921_v8 = vpop.f32.mrf.mxu1 }
0x46d1   :  { %v3927_v38 = vadd.f32 %v3921_v8, %v6224_v14 }
0x46d2   :  { %v4713_v9 = vpop.f32.mrf.mxu1 }
0x46d3   :  { %5119 = vtanh.f32 %v3927_v38  ;;  %v4313_v0 = vmul.f32 -1.442695, %v3927_v38 }
0x46d4   :  { %v3924_v11 = vpop.f32.mrf.mxu1 }
0x46d6   :  { %v4714_v13 = vpop.f32.mrf.mxu1 }
0x46e0   :  { %v5120_v55 = vpop.eup %5119 }
0x46e1   :  { %3989 = vrot.lane.b32.xlu0 %v5120_v55, %s5423_s8 }
0x472b   :  { %v3977_v6 = vpop.permute.xlu0 %3976 }
0x472c   :  { %v3979_v15 = vadd.f32 %v3977_v6, %v6232_v36 }
0x472e   :  { %5121 = vtanh.f32 %v3979_v15  ;;  %v4314_v60 = vmul.f32 -1.442695, %v3979_v15 }
0x472f   :  { %5123 = vpow2.f32 %v4313_v0 }
0x473b   :  { %v5122_v16 = vpop.eup %5121 }
0x473c   :  { %4013 = vrot.lane.b32.xlu1 %v5122_v16, %s5423_s8  ;;  %v5124_v10 = vpop.eup %5123 }
0x473d   :  { %v3983_v48 = vadd.f32 1.0, %v5124_v10 }
0x473f   :  { %5125 = vrcp.f32 %v3983_v48 }
0x4740   :  { %5127 = vpow2.f32 %v4314_v60 }
0x474c   :  { %v5126_v14 = vpop.eup %5125 }
0x474d   :  { %v5128_v22 = vpop.eup %5127  ;;  %v3987_v12 = vmul.f32 %v5126_v14, %v3847_v63 }
0x474e   :  { %v4007_v44 = vadd.f32 1.0, %v5128_v22 }
0x4750   :  { %5129 = vrcp.f32 %v4007_v44 }
0x4753   :  { %v3990_v18 = vpop.permute.xlu0 %3989 }
0x4754   :  { %v3992_v20 = vmul.f32 %v5126_v14, %v3990_v18 }
0x4756   :  { %3994 = vrot.lane.b32.xlu0 %v3992_v20, %s5424_s11 }
0x475d   :  { %v5130_v36 = vpop.eup %5129 }
0x475e   :  { %v4011_v29 = vmul.f32 %v5130_v36, %v6376_v53 }
0x47ae   :  { %v4014_v25 = vpop.permute.xlu1 %4013 }
0x47af   :  { %v4016_v27 = vmul.f32 %v5130_v36, %v4014_v25 }
0x47b1   :  { %4018 = vrot.lane.b32.xlu1 %v4016_v27, %s5424_s11 }
0x47c8   :  { %v3995_v7 = vpop.permute.xlu0 %3994 }
0x47c9   :  { %v3997_v59 = vadd.f32 %v3995_v7, %v3987_v12 }
0x47cb   :  { %5131 = vtanh.f32 %v3997_v59 }
0x47d8   :  { %v5132_v46 = vpop.eup %5131 }
0x47d9   :  { %4000 = vrot.lane.b32.xlu0 %v5132_v46, %s5425_s29 }
0x4823   :  { %v4019_v30 = vpop.permute.xlu1 %4018 }
0x4824   :  { %v6404_v56 = vadd.f32 %v4019_v30, %v4011_v29 }
0x4826   :  { %5133 = vtanh.f32 %v6404_v56 }
0x4833   :  { %v5134_v33 = vpop.eup %5133 }
0x4834   :  { %4024 = vrot.lane.b32.xlu1 %v5134_v33, %s5425_s29 }
0x484b   :  { %v4001_v35 = vpop.permute.xlu0 %4000 }
0x484c   :  { %v4003_v37 = vmul.f32 %v5126_v14, %v4001_v35 }
0x484e   :  { %v4028_v23 = vadd.f32 %v4003_v37, %v3878_v26  ;;  %v4030_v39 = vpack.c.bf16 %v4003_v37, %v4003_v37 }
0x4850   :  { %4032 = vrot.lane.b32.xlu0 %v4030_v39, %s5426_s10 }
0x48a6   :  { %v4025_v51 = vpop.permute.xlu1 %4024 }
0x48a7   :  { %v4027_v40 = vmul.f32 %v5130_v36, %v4025_v51 }
0x48a9   :  { %v4029_v61 = vadd.f32 %v4027_v40, %v6382_v57  ;;  %v4078_v42 = vpack.c.bf16 %v4027_v40, %v4027_v40 }
0x48ab   :  { %4080 = vrot.lane.b32.xlu1 %v4078_v42, %s5424_s11 }
0x48c2   :  { %v4033_v43 = vpop.permute.xlu0 %4032 }
0x48c3   :  { %4724 = vmatmul.mubr.msk.bf16.vlgmr.msra.gmra.mxu1 %vm213_vm1, %v4033_v43 }
0x491d   :  { %v4081_v45 = vpop.permute.xlu1 %4080 }
0x491e   :  { %4730 = vmatmul.mubr.msk.bf16.vlgmr.msra.gmra.mxu0 %vm213_vm1, %v4081_v45 }
0x4983   :  { %v4071_v47 = vpop.f32.mrf.mxu1 }
0x4984   :  { %v4077_v49 = vadd.f32 %v4071_v47, %v6185_v34 }
0x4985   :  { %v4725_v28 = vpop.f32.mrf.mxu1 }
0x4986   :  { %5135 = vtanh.f32 %v4077_v49  ;;  %v4317_v41 = vmul.f32 -1.442695, %v4077_v49 }
0x4987   :  { %v4074_v53 = vpop.f32.mrf.mxu1 }
0x4988   :  { %5137 = vpow2.f32 %v4317_v41 }
0x4989   :  { %v4726_v17 = vpop.f32.mrf.mxu1 }
0x4993   :  { %v5136_v54 = vpop.eup %5135 }
0x4994   :  { %4139 = vrot.lane.b32.xlu0 %v5136_v54, %s5423_s8 }
0x4995   :  { %v5138_v57 = vpop.eup %5137 }
0x4996   :  { %v4133_v58 = vadd.f32 1.0, %v5138_v57 }
0x4998   :  { %5139 = vrcp.f32 %v4133_v58 }
0x49a5   :  { %v5140_v62 = vpop.eup %5139 }
0x49a6   :  { %v4137_v3 = vmul.f32 %v5140_v62, %v3997_v59 }
0x49de   :  { %v4119_v5 = vpop.f32.mrf.mxu0 }
0x49df   :  { %4126 = vrot.lane.b32.xlu1 %v4119_v5, %s5406_s28  ;;  %s4198_s28 = sshll.u32 %s5427_s12, 4  ;;  %s4199_s28 = int_to_ptr.vmem [resolvable:$true] %s4198_s28 }
0x49e0   :  { %v4731_v63 = vpop.f32.mrf.mxu0  ;;  %s5371_s30 = scalar_lea.vmem %s4199_s28, 32  ;;  %p5376_p0 = scmp.lt.s32.totalorder %s4199_s28, %s4199_s28 }
0x49e1   :  { %p5372_p13 = scmp.ne.s32.totalorder %s4199_s28, %s5371_s30  ;;  %p5377_p1 = scmp.lt.s32.totalorder %s5371_s30, %s5371_s30 }
0x49e2   :  { %v4122_v32 = vpop.f32.mrf.mxu0 }
0x49e3   :  { %p5378_p2 = por %p5377_p1, %p5376_p0 }
0x49e4   :  { %v4732_v24 = vpop.f32.mrf.mxu0 }
0x49e5   :  { %p5379_p3 = pnand %p5378_p2, %p5372_p13 }
0x4a06   :  { %v4140_v34 = vpop.permute.xlu0 %4139 }
0x4a07   :  { %v4142_v1 = vmul.f32 %v5140_v62, %v4140_v34 }
0x4a09   :  { %4144 = vrot.lane.b32.xlu0 %v4142_v1, %s5424_s11 }
0x4a51   :  { %v4127_v26 = vpop.permute.xlu1 %4126 }
0x4a52   :  { %v4129_v2 = vadd.f32 %v4127_v26, %v6190_v52 }
0x4a54   :  { %5141 = vtanh.f32 %v4129_v2  ;;  %v4318_v4 = vmul.f32 -1.442695, %v4129_v2 }
0x4a61   :  { %v5142_v19 = vpop.eup %5141 }
0x4a62   :  { %4163 = vrot.lane.b32.xlu1 %v5142_v19, %s5423_s8 }
0x4a7b   :  { %v4145_v50 = vpop.permute.xlu0 %4144 }
0x4a7c   :  { %v4147_v21 = vadd.f32 %v4145_v50, %v4137_v3 }
0x4a7e   :  { %5143 = vtanh.f32 %v4147_v21 }
0x4a7f   :  { %5145 = vpow2.f32 %v4318_v4 }
0x4a8b   :  { %v5144_v31 = vpop.eup %5143 }
0x4a8c   :  { %4150 = vrot.lane.b32.xlu0 %v5144_v31, %s5425_s29  ;;  %v5146_v8 = vpop.eup %5145 }
0x4a8d   :  { %v4157_v38 = vadd.f32 1.0, %v5146_v8 }
0x4a8f   :  { %5147 = vrcp.f32 %v4157_v38 }
0x4a9c   :  { %v5148_v9 = vpop.eup %5147 }
0x4a9d   :  { %v4161_v15 = vmul.f32 %v5148_v9, %v6404_v56 }
0x4ad4   :  { %v4164_v11 = vpop.permute.xlu1 %4163 }
0x4ad5   :  { %v4166_v13 = vmul.f32 %v5148_v9, %v4164_v11 }
0x4ad7   :  { %4168 = vrot.lane.b32.xlu1 %v4166_v13, %s5424_s11 }
0x4afe   :  { %v4151_v52 = vpop.permute.xlu0 %4150 }
0x4aff   :  { %v4153_v55 = vmul.f32 %v5140_v62, %v4151_v52 }
0x4b01   :  { %v4178_v6 = vadd.f32 %v4153_v55, %v4028_v23 }
0x4b03   :  { %4181 = vrot.lane.b32.xlu0 %v4178_v6, %s5426_s10 }
0x4b49   :  { %v4169_v0 = vpop.permute.xlu1 %4168 }
0x4b4a   :  { %v4171_v16 = vadd.f32 %v4169_v0, %v4161_v15 }
0x4b4c   :  { %5149 = vtanh.f32 %v4171_v16 }
0x4b59   :  { %v5150_v10 = vpop.eup %5149 }
0x4b5a   :  { %4174 = vrot.lane.b32.xlu1 %v5150_v10, %s5425_s29 }
0x4b75   :  { %v4182_v20 = vpop.permute.xlu0 %4181 }
0x4bcc   :  { %v4175_v48 = vpop.permute.xlu1 %4174 }
0x4bcd   :  { %v4177_v14 = vmul.f32 %v5148_v9, %v4175_v48 }
0x4bcf   :  { %v4179_v18 = vadd.f32 %v4177_v14, %v4029_v61 }
0x4bd1   :  { %4185 = vrot.lane.b32.xlu1 %v4179_v18, %s5425_s29 }
0x4c43   :  { %v4186_v60 = vpop.permute.xlu1 %4185 }
0x4c44   :  { %v4188_v22 = vsel %vm213_vm1, %v4182_v20, %v4186_v60 }
0x4c45   :  { %v4189_v44 = vmul.f32 0.125, %v4188_v22 }
0x4c47   :  { %4191 = vst.msk [vmem:[#allocation23] sm:$0x3] %vm4190_vm5, %v4189_v44 }
0x4c48   :  { %5382 = shalt.err (!%p5379_p3)
}
0x4c49   :  { %4201 = dma.vmem_to_hbm [thread:$0]  %s4199_s28, 32, %s6442_s13, [#allocation7]  }
0x4c4a   :  { %5403 = dma.done.wait [#allocation7], 32  }
0x4c4b   :  { %5404 = vsyncadd [#allocation7], 4294967264 }
0x4c4c   :  { %4205 = vsyncpa [#allocation6], 1 }
0x4c4d   :  { %4206 = vsyncpa [#allocation9], 1 }
0x4c4e   :  { %4207 = vsyncpa [#allocation12], 1 }
0x4c4f   :  { %4208 = vsyncpa [#allocation15], 1 }
0x4c50   :  { %4209 = vsyncpa [#allocation18], 1 }
0x4c51   :  { %4210 = vsyncpa [#allocation21], 1 }
0x4c52   :  { %4211 = vsyncpa [#allocation7], 1 }

</bundles_post_ra>
